<compile_context>
chip_gen: v6e
topology: v6e:2x2x1
jax: 0.10.0
libtpu: 0.0.40
codegen_flags: <defaults>
</compile_context>

<pallas_src>
import functools

import jax
import jax.numpy as jnp
from jax.experimental import pallas as pl
from jax.experimental.pallas import tpu as pltpu

LATENT_DIM = 16
NOISE_DIM = 8
N_BETAS = 10
N_ROT = 42
OUT_W = 128          # head output padded to one full 128-lane vreg width


def _round8(x):
    return -(-x // 8) * 8


def _slab_layout(E_t, E_a, H, ND):
    """Row offsets of the packed weight slab (lane width = max(12H, OUT_W))."""
    L = max(12 * H, OUT_W)
    off = {}
    cur = 0
    off["wblk"] = cur;   cur += _round8(4 * H)        # blockdiag(t_wh, a_wh, d_wh, d_wia)
    off["t_wi"] = cur;   cur += _round8(E_t)          # text input proj   (E_t, 3H)
    off["an_wi"] = cur;  cur += _round8(E_a + ND)     # blockdiag(a_wi, d_win) (E_a+ND, 6H)
    off["d_wit"] = cur;  cur += _round8(H)            # decoder text proj (H, 3H)
    off["head_w"] = cur; cur += _round8(H)            # fused heads       (H, OUT_W)
    off["bias"] = cur;   cur += 8                     # 5 bias rows (+ padding)
    return off, cur, L


# ----------------------------------------------------------------------------
# GRU gate math for one block (PyTorch gate order r, z, n).
# gi = x_t @ W_i + b_i, gh = h_prev @ W_h + b_h  (both (B, 3H)).
# Single sigmoid over the contiguous [r|z] lanes; blend as n + z*(h - n).
# ----------------------------------------------------------------------------
def _gru_block(gi, gh, h_prev, H):
    rz = jax.nn.sigmoid(gi[:, :2 * H] + gh[:, :2 * H])
    r, z = rz[:, :H], rz[:, H:]
    n = jnp.tanh(gi[:, 2 * H:] + r * gh[:, 2 * H:])
    return n + z * (h_prev - n)


# ----------------------------------------------------------------------------
# Fused Generator kernel: both encoders + decoder + output heads, single call.
# Inputs are flattened time-major 2-D slabs: row index = t * B + b.
# ----------------------------------------------------------------------------
def _generator_kernel(text_ref, an_ref, w_ref, out_ref, *,
                      T_t, T_a, B, H, E_t, E_a, ND, off):
    f32 = jnp.float32
    H3, H6, H9, H12 = 3 * H, 6 * H, 9 * H, 12 * H

    # -------- one-time weight loads (static slices of the packed slab) ------
    ow, ot, oa, od, oh, ob = (off["wblk"], off["t_wi"], off["an_wi"],
                              off["d_wit"], off["head_w"], off["bias"])
    w_blk = w_ref[ow:ow + 4 * H, 0:H12]       # blockdiag(t_wh, a_wh, d_wh, d_wia)
    t_wi = w_ref[ot:ot + E_t, 0:H3]
    an_wi = w_ref[oa:oa + E_a + ND, 0:H6]     # blockdiag(a_wi, d_win)
    d_wit = w_ref[od:od + H, 0:H3]
    head_w = w_ref[oh:oh + H, 0:OUT_W]
    bias_rows = w_ref[ob:ob + 8, 0:H12]       # aligned (8, 12H) load
    t_bi = bias_rows[0:1, 0:H3]
    an_bi = bias_rows[1:2, 0:H6]              # [a_bi | 0]
    d_bi = bias_rows[2:3, 0:H3]
    b_blk = bias_rows[3:4, 0:H12]             # [t_bh | a_bh | d_bh | 0]
    head_b = bias_rows[4:5, 0:OUT_W]

    # per-phase recurrent weights: contiguous sub-blocks of the block diagonal
    w_ta = w_blk[0:2 * H, 0:H6]               # [h_t|h_a]          -> [gh_t|gh_a]
    b_ta = b_blk[:, 0:H6]
    w_ad = w_blk[H:4 * H, H3:H12]             # [h_a|h_d|aenc_d]   -> [gh_a|gh_d|gia_d]
    b_ad = b_blk[:, H3:H12]
    w_d = w_blk[2 * H:4 * H, H6:H12]          # [h_d|aenc_d]       -> [gh_d|gia_d]
    b_d = b_blk[:, H6:H12]
    w_t = w_blk[0:H, 0:H3]                    # text-only tail (if T_t > T_a)
    b_t = b_blk[:, 0:H3]

    # -------- batched input projections (hoisted off the recurrence) --------
    gi_text = jnp.dot(text_ref[...], t_wi, preferred_element_type=f32) + t_bi   # (T_t*B, 3H)
    gi_an = jnp.dot(an_ref[...], an_wi, preferred_element_type=f32) + an_bi     # (T_a*B, 6H)

    h_t = jnp.zeros((B, H), f32)
    h_a = jnp.zeros((B, H), f32)
    h_d = jnp.zeros((B, H), f32)
    aenc = []      # audio hidden history; fully unrolled => plain SSA values

    # -------- phase 1: text + audio encoders fused (block-diagonal step) ----
    for s in range(min(T_t, T_a)):
        lhs = jnp.concatenate([h_t, h_a], axis=1)                               # (B, 2H)
        gh = jnp.dot(lhs, w_ta, preferred_element_type=f32) + b_ta              # (B, 6H)
        h_t = _gru_block(gi_text[s * B:(s + 1) * B], gh[:, 0:H3], h_t, H)
        h_a = _gru_block(gi_an[s * B:(s + 1) * B, 0:H3], gh[:, H3:H6], h_a, H)
        aenc.append(h_a)

    # -------- phase 1b: text-only tail (only if T_t > T_a) -------------------
    for s in range(T_a, T_t):
        gh = jnp.dot(h_t, w_t, preferred_element_type=f32) + b_t                # (B, 3H)
        h_t = _gru_block(gi_text[s * B:(s + 1) * B], gh, h_t, H)

    # decoder's time-invariant input term: text_state @ W_it + b_i
    txt_bias = jnp.dot(h_t, d_wit, preferred_element_type=f32) + d_bi           # (B, 3H)

    def _dec_step(d, gia_d, gh_d, h_prev):
        # gia_d = aenc[d] @ W_ia (folded into the block matmul, no bias)
        gi_d = gia_d + gi_an[d * B:(d + 1) * B, H3:H6] + txt_bias
        h_new = _gru_block(gi_d, gh_d, h_prev, H)
        head = jnp.dot(h_new, head_w, preferred_element_type=f32) + head_b      # (B, 128)
        out_ref[d * B:(d + 1) * B, :] = head
        return h_new

    # -------- phase 2: audio encoder + decoder overlapped (T_a > T_t) -------
    for s in range(T_t, T_a):
        d = s - T_t
        lhs = jnp.concatenate([h_a, h_d, aenc[d]], axis=1)                      # (B, 3H)
        gh = jnp.dot(lhs, w_ad, preferred_element_type=f32) + b_ad              # (B, 9H)
        h_a_new = _gru_block(gi_an[s * B:(s + 1) * B, 0:H3], gh[:, 0:H3], h_a, H)
        h_d = _dec_step(d, gh[:, H6:H9], gh[:, H3:H6], h_d)
        h_a = h_a_new
        aenc.append(h_a)

    # -------- phase 3: decoder-only tail -------------------------------------
    for d in range(max(0, T_a - T_t), T_a):
        lhs = jnp.concatenate([h_d, aenc[d]], axis=1)                           # (B, 2H)
        gh = jnp.dot(lhs, w_d, preferred_element_type=f32) + b_d                # (B, 6H)
        h_d = _dec_step(d, gh[:, H3:H6], gh[:, 0:H3], h_d)


# ----------------------------------------------------------------------------
# Parameter construction (deterministic, PyTorch-style uniform init).
# GRU weights use the fused layout: W_i (D, 3H), W_h (H, 3H), gates [r|z|n].
# ----------------------------------------------------------------------------
def _uniform(key, shape, bound):
    return jax.random.uniform(key, shape, jnp.float32, minval=-bound, maxval=bound)


def make_gru_params(key, input_dim, hidden_dim):
    bound = 1.0 / (hidden_dim ** 0.5)
    k = jax.random.split(key, 4)
    wi = _uniform(k[0], (input_dim, 3 * hidden_dim), bound)
    wh = _uniform(k[1], (hidden_dim, 3 * hidden_dim), bound)
    bi = _uniform(k[2], (1, 3 * hidden_dim), bound)
    bh = _uniform(k[3], (1, 3 * hidden_dim), bound)
    return wi, wh, bi, bh


def make_linear_params(key, in_dim, out_dim):
    bound = 1.0 / (in_dim ** 0.5)
    k = jax.random.split(key, 2)
    return _uniform(k[0], (in_dim, out_dim), bound), _uniform(k[1], (1, out_dim), bound)


def make_generator_params(key, text_embedding_dim, audio_embedding_dim,
                          latent_dim=LATENT_DIM, noise_dim=NOISE_DIM):
    keys = jax.random.split(key, 5)
    return {
        "text_gru": make_gru_params(keys[0], text_embedding_dim, latent_dim),
        "audio_gru": make_gru_params(keys[1], audio_embedding_dim, latent_dim),
        "decoder_gru": make_gru_params(keys[2], 2 * latent_dim + noise_dim, latent_dim),
        "fc_betas": make_linear_params(keys[3], latent_dim, N_BETAS),
        "fc_rot_mats": make_linear_params(keys[4], latent_dim, N_ROT),
    }


def pack_generator_params(params):
    """One-time packing of every weight/bias into a single f32 VMEM slab.

    If loading real PyTorch weights: weight_ih/weight_hh are (3H, D)/(3H, H)
    and must be transposed to the (D, 3H)/(H, 3H) fused layout used here.
    """
    H, ND = LATENT_DIM, NOISE_DIM
    H3, H6, H9, H12 = 3 * H, 6 * H, 9 * H, 12 * H
    t_wi, t_wh, t_bi, t_bh = params["text_gru"]
    a_wi, a_wh, a_bi, a_bh = params["audio_gru"]
    d_wi, d_wh, d_bi, d_bh = params["decoder_gru"]
    wb, bb = params["fc_betas"]
    wr, br = params["fc_rot_mats"]
    E_t, E_a = t_wi.shape[0], a_wi.shape[0]
    # split decoder W_i along the [audio | text | noise] input concat
    d_wia, d_wit, d_win = d_wi[:H], d_wi[H:2 * H], d_wi[2 * H:]

    off, rows, L = _slab_layout(E_t, E_a, H, ND)
    s = jnp.zeros((rows, L), jnp.float32)
    ow = off["wblk"]                          # blockdiag(t_wh, a_wh, d_wh, d_wia)
    s = s.at[ow:ow + H, 0:H3].set(t_wh)
    s = s.at[ow + H:ow + 2 * H, H3:H6].set(a_wh)
    s = s.at[ow + 2 * H:ow + 3 * H, H6:H9].set(d_wh)
    s = s.at[ow + 3 * H:ow + 4 * H, H9:H12].set(d_wia)
    ot = off["t_wi"]
    s = s.at[ot:ot + E_t, 0:H3].set(t_wi)
    oa = off["an_wi"]                         # blockdiag(a_wi, d_win)
    s = s.at[oa:oa + E_a, 0:H3].set(a_wi)
    s = s.at[oa + E_a:oa + E_a + ND, H3:H6].set(d_win)
    od = off["d_wit"]
    s = s.at[od:od + H, 0:H3].set(d_wit)
    oh = off["head_w"]                        # fused, lane-padded heads
    s = s.at[oh:oh + H, 0:N_BETAS].set(wb)
    s = s.at[oh:oh + H, N_BETAS:N_BETAS + N_ROT].set(wr)
    ob = off["bias"]
    s = s.at[ob + 0, 0:H3].set(t_bi[0])
    s = s.at[ob + 1, 0:H3].set(a_bi[0])       # [a_bi | 0] (noise proj has no bias)
    s = s.at[ob + 2, 0:H3].set(d_bi[0])
    s = s.at[ob + 3, 0:H3].set(t_bh[0])
    s = s.at[ob + 3, H3:H6].set(a_bh[0])
    s = s.at[ob + 3, H6:H9].set(d_bh[0])
    s = s.at[ob + 4, 0:N_BETAS].set(bb[0])
    s = s.at[ob + 4, N_BETAS:N_BETAS + N_ROT].set(br[0])
    return s


# ----------------------------------------------------------------------------
# Generator forward: thin JAX glue (layout only), hot path in one Pallas call.
# ----------------------------------------------------------------------------
@jax.jit
def generator_forward(weight_slab, text_input, audio_input, noise):
    # text_input:  (B, T_text, E_text)   batch-first (PyTorch convention)
    # audio_input: (B, T_audio, E_audio)
    # noise:       (B, T_audio, NOISE_DIM)
    B, T_t, E_t = text_input.shape
    _, T_a, E_a = audio_input.shape
    H, ND = LATENT_DIM, NOISE_DIM
    off, rows, L = _slab_layout(E_t, E_a, H, ND)
    assert weight_slab.shape == (rows, L), weight_slab.shape

    # flatten to time-major 2-D slabs (row = t * B + b); audio & noise fused
    text_2d = jnp.transpose(text_input, (1, 0, 2)).reshape(T_t * B, E_t).astype(jnp.float32)
    an = jnp.concatenate([audio_input.astype(jnp.float32),
                          noise.astype(jnp.float32)], axis=-1)
    an_2d = jnp.transpose(an, (1, 0, 2)).reshape(T_a * B, E_a + ND)

    kernel = functools.partial(_generator_kernel, T_t=T_t, T_a=T_a, B=B, H=H,
                               E_t=E_t, E_a=E_a, ND=ND, off=off)
    out2d = pl.pallas_call(
        kernel,
        out_shape=jax.ShapeDtypeStruct((T_a * B, OUT_W), jnp.float32),
        in_specs=[pl.BlockSpec(memory_space=pltpu.MemorySpace.VMEM)] * 3,
        out_specs=pl.BlockSpec(memory_space=pltpu.MemorySpace.VMEM),
    )(text_2d, an_2d, weight_slab)

    out = jnp.transpose(out2d.reshape(T_a, B, OUT_W), (1, 0, 2))   # (B, T_a, 128)
    return out[:, :, :N_BETAS], out[:, :, N_BETAS:N_BETAS + N_ROT]


# ----------------------------------------------------------------------------
# Pure-JAX reference (mirrors the PyTorch module) for a correctness check.
# ----------------------------------------------------------------------------
def _gru_ref(x_btd, wi, wh, bi, bh):
    B, T, _ = x_btd.shape
    H = wh.shape[0]
    h = jnp.zeros((B, H), jnp.float32)
    outs = []
    for t in range(T):
        gi = x_btd[:, t, :] @ wi + bi
        gh = h @ wh + bh
        r = jax.nn.sigmoid(gi[:, :H] + gh[:, :H])
        z = jax.nn.sigmoid(gi[:, H:2 * H] + gh[:, H:2 * H])
        n = jnp.tanh(gi[:, 2 * H:] + r * gh[:, 2 * H:])
        h = (1.0 - z) * n + z * h
        outs.append(h)
    return jnp.stack(outs, axis=1), h


def generator_reference(params, text_input, audio_input, noise):
    _, text_state = _gru_ref(text_input, *params["text_gru"])
    audio_enc, _ = _gru_ref(audio_input, *params["audio_gru"])
    rep = jnp.broadcast_to(text_state[:, None, :], audio_enc.shape)
    x = jnp.concatenate([audio_enc, rep, noise], axis=-1)
    dec, _ = _gru_ref(x, *params["decoder_gru"])
    wb, bb = params["fc_betas"]
    wr, br = params["fc_rot_mats"]
    return dec @ wb + bb, dec @ wr + br


if __name__ == "__main__":
    B = 2
    T_TEXT = 8
    T_AUDIO = 10
    TEXT_EMB = 32
    AUDIO_EMB = 24

    root = jax.random.PRNGKey(0)
    k_params, k_text, k_audio, k_noise = jax.random.split(root, 4)

    params = make_generator_params(k_params, TEXT_EMB, AUDIO_EMB)
    weight_slab = pack_generator_params(params)      # one-time weight packing
    text_input = jax.random.normal(k_text, (B, T_TEXT, TEXT_EMB), jnp.float32)
    audio_input = jax.random.normal(k_audio, (B, T_AUDIO, AUDIO_EMB), jnp.float32)
    # TODO(synk): torch.randn replaced by JAX PRNG (same distribution, different stream).
    noise = jax.random.normal(k_noise, (B, T_AUDIO, NOISE_DIM), jnp.float32)

    betas, rot_mats = generator_forward(weight_slab, text_input, audio_input, noise)
    jax.block_until_ready((betas, rot_mats))

    assert betas.shape == (B, T_AUDIO, N_BETAS), betas.shape
    assert rot_mats.shape == (B, T_AUDIO, N_ROT), rot_mats.shape
    assert bool(jnp.all(jnp.isfinite(betas))) and bool(jnp.all(jnp.isfinite(rot_mats)))

    betas_ref, rot_ref = generator_reference(params, text_input, audio_input, noise)
    assert float(jnp.max(jnp.abs(betas - betas_ref))) < 2e-3
    assert float(jnp.max(jnp.abs(rot_mats - rot_ref))) < 2e-3

    print("KERNEL_OK")
</pallas_src>

<mosaic_0001>
module attributes {stable_mosaic.version = 11 : i64} {
  func.func @_generator_kernel(%arg0: memref<16x32xf32, #tpu.memory_space<vmem>>, %arg1: memref<20x32xf32, #tpu.memory_space<vmem>>, %arg2: memref<168x192xf32, #tpu.memory_space<vmem>>, %arg3: memref<20x128xf32, #tpu.memory_space<vmem>>) attributes {dimension_semantics = [], scalar_prefetch = 0 : i64, scratch_operands = 0 : i64, tpu.core_type = #tpu.core_type<tc>} {
    %c0 = arith.constant 0 : index
    %c0_0 = arith.constant 0 : index
    %0 = vector.load %arg2[%c0, %c0_0] : memref<168x192xf32, #tpu.memory_space<vmem>>, vector<64x192xf32>
    %c64 = arith.constant 64 : index
    %c0_1 = arith.constant 0 : index
    %1 = vector.load %arg2[%c64, %c0_1] : memref<168x192xf32, #tpu.memory_space<vmem>>, vector<32x48xf32>
    %c96 = arith.constant 96 : index
    %c0_2 = arith.constant 0 : index
    %2 = vector.load %arg2[%c96, %c0_2] : memref<168x192xf32, #tpu.memory_space<vmem>>, vector<32x96xf32>
    %c128 = arith.constant 128 : index
    %c0_3 = arith.constant 0 : index
    %3 = vector.load %arg2[%c128, %c0_3] : memref<168x192xf32, #tpu.memory_space<vmem>>, vector<16x48xf32>
    %c144 = arith.constant 144 : index
    %c0_4 = arith.constant 0 : index
    %4 = vector.load %arg2[%c144, %c0_4] : memref<168x192xf32, #tpu.memory_space<vmem>>, vector<16x128xf32>
    %c160 = arith.constant 160 : index
    %c0_5 = arith.constant 0 : index
    %5 = vector.load %arg2[%c160, %c0_5] : memref<168x192xf32, #tpu.memory_space<vmem>>, vector<8x192xf32>
    %6 = vector.extract_strided_slice %5 {offsets = [0, 0], sizes = [1, 48], strides = [1, 1]} : vector<8x192xf32> to vector<1x48xf32>
    %7 = vector.extract_strided_slice %5 {offsets = [1, 0], sizes = [1, 96], strides = [1, 1]} : vector<8x192xf32> to vector<1x96xf32>
    %8 = vector.extract_strided_slice %5 {offsets = [2, 0], sizes = [1, 48], strides = [1, 1]} : vector<8x192xf32> to vector<1x48xf32>
    %9 = vector.extract_strided_slice %5 {offsets = [3, 0], sizes = [1, 192], strides = [1, 1]} : vector<8x192xf32> to vector<1x192xf32>
    %10 = vector.extract_strided_slice %5 {offsets = [4, 0], sizes = [1, 128], strides = [1, 1]} : vector<8x192xf32> to vector<1x128xf32>
    %11 = vector.extract_strided_slice %0 {offsets = [0, 0], sizes = [32, 96], strides = [1, 1]} : vector<64x192xf32> to vector<32x96xf32>
    %12 = vector.extract_strided_slice %9 {offsets = [0, 0], sizes = [1, 96], strides = [1, 1]} : vector<1x192xf32> to vector<1x96xf32>
    %13 = vector.extract_strided_slice %0 {offsets = [16, 48], sizes = [48, 144], strides = [1, 1]} : vector<64x192xf32> to vector<48x144xf32>
    %14 = vector.extract_strided_slice %9 {offsets = [0, 48], sizes = [1, 144], strides = [1, 1]} : vector<1x192xf32> to vector<1x144xf32>
    %15 = vector.extract_strided_slice %0 {offsets = [32, 96], sizes = [32, 96], strides = [1, 1]} : vector<64x192xf32> to vector<32x96xf32>
    %16 = vector.extract_strided_slice %9 {offsets = [0, 96], sizes = [1, 96], strides = [1, 1]} : vector<1x192xf32> to vector<1x96xf32>
    %c0_6 = arith.constant 0 : index
    %c0_7 = arith.constant 0 : index
    %17 = vector.load %arg0[%c0_6, %c0_7] : memref<16x32xf32, #tpu.memory_space<vmem>>, vector<16x32xf32>
    %cst = arith.constant dense<0.000000e+00> : vector<16x48xf32>
    %18 = tpu.matmul %17, %1, %cst {dimension_numbers = #tpu.dot_dimension_numbers<[1], [0], [0], [1], [0, 0, 1, 1], [], []>} : vector<16x32xf32>, vector<32x48xf32>, vector<16x48xf32> -> vector<16x48xf32>
    %19 = vector.broadcast %6 : vector<1x48xf32> to vector<16x48xf32>
    %20 = arith.addf %18, %19 : vector<16x48xf32>
    %c0_8 = arith.constant 0 : index
    %c0_9 = arith.constant 0 : index
    %21 = vector.load %arg1[%c0_8, %c0_9] : memref<20x32xf32, #tpu.memory_space<vmem>>, vector<20x32xf32>
    %cst_10 = arith.constant dense<0.000000e+00> : vector<20x96xf32>
    %22 = tpu.matmul %21, %2, %cst_10 {dimension_numbers = #tpu.dot_dimension_numbers<[1], [0], [0], [1], [0, 0, 1, 1], [], []>} : vector<20x32xf32>, vector<32x96xf32>, vector<20x96xf32> -> vector<20x96xf32>
    %23 = vector.broadcast %7 : vector<1x96xf32> to vector<20x96xf32>
    %24 = arith.addf %22, %23 : vector<20x96xf32>
    %cst_11 = arith.constant 0.000000e+00 : f32
    %25 = vector.broadcast %cst_11 : f32 to vector<2x16xf32>
    %cst_12 = arith.constant 0.000000e+00 : f32
    %26 = vector.broadcast %cst_12 : f32 to vector<2x16xf32>
    %cst_13 = arith.constant 0.000000e+00 : f32
    %27 = vector.broadcast %cst_13 : f32 to vector<2x16xf32>
    %28 = tpu.concatenate %25, %26 in 1 : vector<2x16xf32>, vector<2x16xf32> -> vector<2x32xf32>
    %cst_14 = arith.constant dense<0.000000e+00> : vector<2x96xf32>
    %29 = tpu.matmul %28, %11, %cst_14 {dimension_numbers = #tpu.dot_dimension_numbers<[1], [0], [0], [1], [0, 0, 1, 1], [], []>} : vector<2x32xf32>, vector<32x96xf32>, vector<2x96xf32> -> vector<2x96xf32>
    %30 = vector.broadcast %12 : vector<1x96xf32> to vector<2x96xf32>
    %31 = arith.addf %29, %30 : vector<2x96xf32>
    %32 = vector.extract_strided_slice %20 {offsets = [0, 0], sizes = [2, 48], strides = [1, 1]} : vector<16x48xf32> to vector<2x48xf32>
    %33 = vector.extract_strided_slice %31 {offsets = [0, 0], sizes = [2, 48], strides = [1, 1]} : vector<2x96xf32> to vector<2x48xf32>
    %34 = vector.extract_strided_slice %32 {offsets = [0, 0], sizes = [2, 32], strides = [1, 1]} : vector<2x48xf32> to vector<2x32xf32>
    %35 = vector.extract_strided_slice %33 {offsets = [0, 0], sizes = [2, 32], strides = [1, 1]} : vector<2x48xf32> to vector<2x32xf32>
    %36 = arith.addf %34, %35 : vector<2x32xf32>
    %37 = arith.negf %36 : vector<2x32xf32>
    %38 = math.exp %37 : vector<2x32xf32>
    %cst_15 = arith.constant 1.000000e+00 : f32
    %39 = vector.broadcast %cst_15 : f32 to vector<2x32xf32>
    %40 = arith.addf %39, %38 : vector<2x32xf32>
    %41 = arith.divf %39, %40 : vector<2x32xf32>
    %42 = vector.extract_strided_slice %41 {offsets = [0, 0], sizes = [2, 16], strides = [1, 1]} : vector<2x32xf32> to vector<2x16xf32>
    %43 = vector.extract_strided_slice %41 {offsets = [0, 16], sizes = [2, 16], strides = [1, 1]} : vector<2x32xf32> to vector<2x16xf32>
    %44 = vector.extract_strided_slice %32 {offsets = [0, 32], sizes = [2, 16], strides = [1, 1]} : vector<2x48xf32> to vector<2x16xf32>
    %45 = vector.extract_strided_slice %33 {offsets = [0, 32], sizes = [2, 16], strides = [1, 1]} : vector<2x48xf32> to vector<2x16xf32>
    %46 = arith.mulf %42, %45 : vector<2x16xf32>
    %47 = arith.addf %44, %46 : vector<2x16xf32>
    %48 = math.tanh %47 : vector<2x16xf32>
    %49 = arith.subf %25, %48 : vector<2x16xf32>
    %50 = arith.mulf %43, %49 : vector<2x16xf32>
    %51 = arith.addf %48, %50 : vector<2x16xf32>
    %52 = vector.extract_strided_slice %24 {offsets = [0, 0], sizes = [2, 48], strides = [1, 1]} : vector<20x96xf32> to vector<2x48xf32>
    %53 = vector.extract_strided_slice %31 {offsets = [0, 48], sizes = [2, 48], strides = [1, 1]} : vector<2x96xf32> to vector<2x48xf32>
    %54 = vector.extract_strided_slice %52 {offsets = [0, 0], sizes = [2, 32], strides = [1, 1]} : vector<2x48xf32> to vector<2x32xf32>
    %55 = vector.extract_strided_slice %53 {offsets = [0, 0], sizes = [2, 32], strides = [1, 1]} : vector<2x48xf32> to vector<2x32xf32>
    %56 = arith.addf %54, %55 : vector<2x32xf32>
    %57 = arith.negf %56 : vector<2x32xf32>
    %58 = math.exp %57 : vector<2x32xf32>
    %cst_16 = arith.constant 1.000000e+00 : f32
    %59 = vector.broadcast %cst_16 : f32 to vector<2x32xf32>
    %60 = arith.addf %59, %58 : vector<2x32xf32>
    %61 = arith.divf %59, %60 : vector<2x32xf32>
    %62 = vector.extract_strided_slice %61 {offsets = [0, 0], sizes = [2, 16], strides = [1, 1]} : vector<2x32xf32> to vector<2x16xf32>
    %63 = vector.extract_strided_slice %61 {offsets = [0, 16], sizes = [2, 16], strides = [1, 1]} : vector<2x32xf32> to vector<2x16xf32>
    %64 = vector.extract_strided_slice %52 {offsets = [0, 32], sizes = [2, 16], strides = [1, 1]} : vector<2x48xf32> to vector<2x16xf32>
    %65 = vector.extract_strided_slice %53 {offsets = [0, 32], sizes = [2, 16], strides = [1, 1]} : vector<2x48xf32> to vector<2x16xf32>
    %66 = arith.mulf %62, %65 : vector<2x16xf32>
    %67 = arith.addf %64, %66 : vector<2x16xf32>
    %68 = math.tanh %67 : vector<2x16xf32>
    %69 = arith.subf %26, %68 : vector<2x16xf32>
    %70 = arith.mulf %63, %69 : vector<2x16xf32>
    %71 = arith.addf %68, %70 : vector<2x16xf32>
    %72 = tpu.concatenate %51, %71 in 1 : vector<2x16xf32>, vector<2x16xf32> -> vector<2x32xf32>
    %cst_17 = arith.constant dense<0.000000e+00> : vector<2x96xf32>
    %73 = tpu.matmul %72, %11, %cst_17 {dimension_numbers = #tpu.dot_dimension_numbers<[1], [0], [0], [1], [0, 0, 1, 1], [], []>} : vector<2x32xf32>, vector<32x96xf32>, vector<2x96xf32> -> vector<2x96xf32>
    %74 = vector.broadcast %12 : vector<1x96xf32> to vector<2x96xf32>
    %75 = arith.addf %73, %74 : vector<2x96xf32>
    %76 = vector.extract_strided_slice %20 {offsets = [2, 0], sizes = [2, 48], strides = [1, 1]} : vector<16x48xf32> to vector<2x48xf32>
    %77 = vector.extract_strided_slice %75 {offsets = [0, 0], sizes = [2, 48], strides = [1, 1]} : vector<2x96xf32> to vector<2x48xf32>
    %78 = vector.extract_strided_slice %76 {offsets = [0, 0], sizes = [2, 32], strides = [1, 1]} : vector<2x48xf32> to vector<2x32xf32>
    %79 = vector.extract_strided_slice %77 {offsets = [0, 0], sizes = [2, 32], strides = [1, 1]} : vector<2x48xf32> to vector<2x32xf32>
    %80 = arith.addf %78, %79 : vector<2x32xf32>
    %81 = arith.negf %80 : vector<2x32xf32>
    %82 = math.exp %81 : vector<2x32xf32>
    %cst_18 = arith.constant 1.000000e+00 : f32
    %83 = vector.broadcast %cst_18 : f32 to vector<2x32xf32>
    %84 = arith.addf %83, %82 : vector<2x32xf32>
    %85 = arith.divf %83, %84 : vector<2x32xf32>
    %86 = vector.extract_strided_slice %85 {offsets = [0, 0], sizes = [2, 16], strides = [1, 1]} : vector<2x32xf32> to vector<2x16xf32>
    %87 = vector.extract_strided_slice %85 {offsets = [0, 16], sizes = [2, 16], strides = [1, 1]} : vector<2x32xf32> to vector<2x16xf32>
    %88 = vector.extract_strided_slice %76 {offsets = [0, 32], sizes = [2, 16], strides = [1, 1]} : vector<2x48xf32> to vector<2x16xf32>
    %89 = vector.extract_strided_slice %77 {offsets = [0, 32], sizes = [2, 16], strides = [1, 1]} : vector<2x48xf32> to vector<2x16xf32>
    %90 = arith.mulf %86, %89 : vector<2x16xf32>
    %91 = arith.addf %88, %90 : vector<2x16xf32>
    %92 = math.tanh %91 : vector<2x16xf32>
    %93 = arith.subf %51, %92 : vector<2x16xf32>
    %94 = arith.mulf %87, %93 : vector<2x16xf32>
    %95 = arith.addf %92, %94 : vector<2x16xf32>
    %96 = vector.extract_strided_slice %24 {offsets = [2, 0], sizes = [2, 48], strides = [1, 1]} : vector<20x96xf32> to vector<2x48xf32>
    %97 = vector.extract_strided_slice %75 {offsets = [0, 48], sizes = [2, 48], strides = [1, 1]} : vector<2x96xf32> to vector<2x48xf32>
    %98 = vector.extract_strided_slice %96 {offsets = [0, 0], sizes = [2, 32], strides = [1, 1]} : vector<2x48xf32> to vector<2x32xf32>
    %99 = vector.extract_strided_slice %97 {offsets = [0, 0], sizes = [2, 32], strides = [1, 1]} : vector<2x48xf32> to vector<2x32xf32>
    %100 = arith.addf %98, %99 : vector<2x32xf32>
    %101 = arith.negf %100 : vector<2x32xf32>
    %102 = math.exp %101 : vector<2x32xf32>
    %cst_19 = arith.constant 1.000000e+00 : f32
    %103 = vector.broadcast %cst_19 : f32 to vector<2x32xf32>
    %104 = arith.addf %103, %102 : vector<2x32xf32>
    %105 = arith.divf %103, %104 : vector<2x32xf32>
    %106 = vector.extract_strided_slice %105 {offsets = [0, 0], sizes = [2, 16], strides = [1, 1]} : vector<2x32xf32> to vector<2x16xf32>
    %107 = vector.extract_strided_slice %105 {offsets = [0, 16], sizes = [2, 16], strides = [1, 1]} : vector<2x32xf32> to vector<2x16xf32>
    %108 = vector.extract_strided_slice %96 {offsets = [0, 32], sizes = [2, 16], strides = [1, 1]} : vector<2x48xf32> to vector<2x16xf32>
    %109 = vector.extract_strided_slice %97 {offsets = [0, 32], sizes = [2, 16], strides = [1, 1]} : vector<2x48xf32> to vector<2x16xf32>
    %110 = arith.mulf %106, %109 : vector<2x16xf32>
    %111 = arith.addf %108, %110 : vector<2x16xf32>
    %112 = math.tanh %111 : vector<2x16xf32>
    %113 = arith.subf %71, %112 : vector<2x16xf32>
    %114 = arith.mulf %107, %113 : vector<2x16xf32>
    %115 = arith.addf %112, %114 : vector<2x16xf32>
    %116 = tpu.concatenate %95, %115 in 1 : vector<2x16xf32>, vector<2x16xf32> -> vector<2x32xf32>
    %cst_20 = arith.constant dense<0.000000e+00> : vector<2x96xf32>
    %117 = tpu.matmul %116, %11, %cst_20 {dimension_numbers = #tpu.dot_dimension_numbers<[1], [0], [0], [1], [0, 0, 1, 1], [], []>} : vector<2x32xf32>, vector<32x96xf32>, vector<2x96xf32> -> vector<2x96xf32>
    %118 = vector.broadcast %12 : vector<1x96xf32> to vector<2x96xf32>
    %119 = arith.addf %117, %118 : vector<2x96xf32>
    %120 = vector.extract_strided_slice %20 {offsets = [4, 0], sizes = [2, 48], strides = [1, 1]} : vector<16x48xf32> to vector<2x48xf32>
    %121 = vector.extract_strided_slice %119 {offsets = [0, 0], sizes = [2, 48], strides = [1, 1]} : vector<2x96xf32> to vector<2x48xf32>
    %122 = vector.extract_strided_slice %120 {offsets = [0, 0], sizes = [2, 32], strides = [1, 1]} : vector<2x48xf32> to vector<2x32xf32>
    %123 = vector.extract_strided_slice %121 {offsets = [0, 0], sizes = [2, 32], strides = [1, 1]} : vector<2x48xf32> to vector<2x32xf32>
    %124 = arith.addf %122, %123 : vector<2x32xf32>
    %125 = arith.negf %124 : vector<2x32xf32>
    %126 = math.exp %125 : vector<2x32xf32>
    %cst_21 = arith.constant 1.000000e+00 : f32
    %127 = vector.broadcast %cst_21 : f32 to vector<2x32xf32>
    %128 = arith.addf %127, %126 : vector<2x32xf32>
    %129 = arith.divf %127, %128 : vector<2x32xf32>
    %130 = vector.extract_strided_slice %129 {offsets = [0, 0], sizes = [2, 16], strides = [1, 1]} : vector<2x32xf32> to vector<2x16xf32>
    %131 = vector.extract_strided_slice %129 {offsets = [0, 16], sizes = [2, 16], strides = [1, 1]} : vector<2x32xf32> to vector<2x16xf32>
    %132 = vector.extract_strided_slice %120 {offsets = [0, 32], sizes = [2, 16], strides = [1, 1]} : vector<2x48xf32> to vector<2x16xf32>
    %133 = vector.extract_strided_slice %121 {offsets = [0, 32], sizes = [2, 16], strides = [1, 1]} : vector<2x48xf32> to vector<2x16xf32>
    %134 = arith.mulf %130, %133 : vector<2x16xf32>
    %135 = arith.addf %132, %134 : vector<2x16xf32>
    %136 = math.tanh %135 : vector<2x16xf32>
    %137 = arith.subf %95, %136 : vector<2x16xf32>
    %138 = arith.mulf %131, %137 : vector<2x16xf32>
    %139 = arith.addf %136, %138 : vector<2x16xf32>
    %140 = vector.extract_strided_slice %24 {offsets = [4, 0], sizes = [2, 48], strides = [1, 1]} : vector<20x96xf32> to vector<2x48xf32>
    %141 = vector.extract_strided_slice %119 {offsets = [0, 48], sizes = [2, 48], strides = [1, 1]} : vector<2x96xf32> to vector<2x48xf32>
    %142 = vector.extract_strided_slice %140 {offsets = [0, 0], sizes = [2, 32], strides = [1, 1]} : vector<2x48xf32> to vector<2x32xf32>
    %143 = vector.extract_strided_slice %141 {offsets = [0, 0], sizes = [2, 32], strides = [1, 1]} : vector<2x48xf32> to vector<2x32xf32>
    %144 = arith.addf %142, %143 : vector<2x32xf32>
    %145 = arith.negf %144 : vector<2x32xf32>
    %146 = math.exp %145 : vector<2x32xf32>
    %cst_22 = arith.constant 1.000000e+00 : f32
    %147 = vector.broadcast %cst_22 : f32 to vector<2x32xf32>
    %148 = arith.addf %147, %146 : vector<2x32xf32>
    %149 = arith.divf %147, %148 : vector<2x32xf32>
    %150 = vector.extract_strided_slice %149 {offsets = [0, 0], sizes = [2, 16], strides = [1, 1]} : vector<2x32xf32> to vector<2x16xf32>
    %151 = vector.extract_strided_slice %149 {offsets = [0, 16], sizes = [2, 16], strides = [1, 1]} : vector<2x32xf32> to vector<2x16xf32>
    %152 = vector.extract_strided_slice %140 {offsets = [0, 32], sizes = [2, 16], strides = [1, 1]} : vector<2x48xf32> to vector<2x16xf32>
    %153 = vector.extract_strided_slice %141 {offsets = [0, 32], sizes = [2, 16], strides = [1, 1]} : vector<2x48xf32> to vector<2x16xf32>
    %154 = arith.mulf %150, %153 : vector<2x16xf32>
    %155 = arith.addf %152, %154 : vector<2x16xf32>
    %156 = math.tanh %155 : vector<2x16xf32>
    %157 = arith.subf %115, %156 : vector<2x16xf32>
    %158 = arith.mulf %151, %157 : vector<2x16xf32>
    %159 = arith.addf %156, %158 : vector<2x16xf32>
    %160 = tpu.concatenate %139, %159 in 1 : vector<2x16xf32>, vector<2x16xf32> -> vector<2x32xf32>
    %cst_23 = arith.constant dense<0.000000e+00> : vector<2x96xf32>
    %161 = tpu.matmul %160, %11, %cst_23 {dimension_numbers = #tpu.dot_dimension_numbers<[1], [0], [0], [1], [0, 0, 1, 1], [], []>} : vector<2x32xf32>, vector<32x96xf32>, vector<2x96xf32> -> vector<2x96xf32>
    %162 = vector.broadcast %12 : vector<1x96xf32> to vector<2x96xf32>
    %163 = arith.addf %161, %162 : vector<2x96xf32>
    %164 = vector.extract_strided_slice %20 {offsets = [6, 0], sizes = [2, 48], strides = [1, 1]} : vector<16x48xf32> to vector<2x48xf32>
    %165 = vector.extract_strided_slice %163 {offsets = [0, 0], sizes = [2, 48], strides = [1, 1]} : vector<2x96xf32> to vector<2x48xf32>
    %166 = vector.extract_strided_slice %164 {offsets = [0, 0], sizes = [2, 32], strides = [1, 1]} : vector<2x48xf32> to vector<2x32xf32>
    %167 = vector.extract_strided_slice %165 {offsets = [0, 0], sizes = [2, 32], strides = [1, 1]} : vector<2x48xf32> to vector<2x32xf32>
    %168 = arith.addf %166, %167 : vector<2x32xf32>
    %169 = arith.negf %168 : vector<2x32xf32>
    %170 = math.exp %169 : vector<2x32xf32>
    %cst_24 = arith.constant 1.000000e+00 : f32
    %171 = vector.broadcast %cst_24 : f32 to vector<2x32xf32>
    %172 = arith.addf %171, %170 : vector<2x32xf32>
    %173 = arith.divf %171, %172 : vector<2x32xf32>
    %174 = vector.extract_strided_slice %173 {offsets = [0, 0], sizes = [2, 16], strides = [1, 1]} : vector<2x32xf32> to vector<2x16xf32>
    %175 = vector.extract_strided_slice %173 {offsets = [0, 16], sizes = [2, 16], strides = [1, 1]} : vector<2x32xf32> to vector<2x16xf32>
    %176 = vector.extract_strided_slice %164 {offsets = [0, 32], sizes = [2, 16], strides = [1, 1]} : vector<2x48xf32> to vector<2x16xf32>
    %177 = vector.extract_strided_slice %165 {offsets = [0, 32], sizes = [2, 16], strides = [1, 1]} : vector<2x48xf32> to vector<2x16xf32>
    %178 = arith.mulf %174, %177 : vector<2x16xf32>
    %179 = arith.addf %176, %178 : vector<2x16xf32>
    %180 = math.tanh %179 : vector<2x16xf32>
    %181 = arith.subf %139, %180 : vector<2x16xf32>
    %182 = arith.mulf %175, %181 : vector<2x16xf32>
    %183 = arith.addf %180, %182 : vector<2x16xf32>
    %184 = vector.extract_strided_slice %24 {offsets = [6, 0], sizes = [2, 48], strides = [1, 1]} : vector<20x96xf32> to vector<2x48xf32>
    %185 = vector.extract_strided_slice %163 {offsets = [0, 48], sizes = [2, 48], strides = [1, 1]} : vector<2x96xf32> to vector<2x48xf32>
    %186 = vector.extract_strided_slice %184 {offsets = [0, 0], sizes = [2, 32], strides = [1, 1]} : vector<2x48xf32> to vector<2x32xf32>
    %187 = vector.extract_strided_slice %185 {offsets = [0, 0], sizes = [2, 32], strides = [1, 1]} : vector<2x48xf32> to vector<2x32xf32>
    %188 = arith.addf %186, %187 : vector<2x32xf32>
    %189 = arith.negf %188 : vector<2x32xf32>
    %190 = math.exp %189 : vector<2x32xf32>
    %cst_25 = arith.constant 1.000000e+00 : f32
    %191 = vector.broadcast %cst_25 : f32 to vector<2x32xf32>
    %192 = arith.addf %191, %190 : vector<2x32xf32>
    %193 = arith.divf %191, %192 : vector<2x32xf32>
    %194 = vector.extract_strided_slice %193 {offsets = [0, 0], sizes = [2, 16], strides = [1, 1]} : vector<2x32xf32> to vector<2x16xf32>
    %195 = vector.extract_strided_slice %193 {offsets = [0, 16], sizes = [2, 16], strides = [1, 1]} : vector<2x32xf32> to vector<2x16xf32>
    %196 = vector.extract_strided_slice %184 {offsets = [0, 32], sizes = [2, 16], strides = [1, 1]} : vector<2x48xf32> to vector<2x16xf32>
    %197 = vector.extract_strided_slice %185 {offsets = [0, 32], sizes = [2, 16], strides = [1, 1]} : vector<2x48xf32> to vector<2x16xf32>
    %198 = arith.mulf %194, %197 : vector<2x16xf32>
    %199 = arith.addf %196, %198 : vector<2x16xf32>
    %200 = math.tanh %199 : vector<2x16xf32>
    %201 = arith.subf %159, %200 : vector<2x16xf32>
    %202 = arith.mulf %195, %201 : vector<2x16xf32>
    %203 = arith.addf %200, %202 : vector<2x16xf32>
    %204 = tpu.concatenate %183, %203 in 1 : vector<2x16xf32>, vector<2x16xf32> -> vector<2x32xf32>
    %cst_26 = arith.constant dense<0.000000e+00> : vector<2x96xf32>
    %205 = tpu.matmul %204, %11, %cst_26 {dimension_numbers = #tpu.dot_dimension_numbers<[1], [0], [0], [1], [0, 0, 1, 1], [], []>} : vector<2x32xf32>, vector<32x96xf32>, vector<2x96xf32> -> vector<2x96xf32>
    %206 = vector.broadcast %12 : vector<1x96xf32> to vector<2x96xf32>
    %207 = arith.addf %205, %206 : vector<2x96xf32>
    %208 = vector.extract_strided_slice %20 {offsets = [8, 0], sizes = [2, 48], strides = [1, 1]} : vector<16x48xf32> to vector<2x48xf32>
    %209 = vector.extract_strided_slice %207 {offsets = [0, 0], sizes = [2, 48], strides = [1, 1]} : vector<2x96xf32> to vector<2x48xf32>
    %210 = vector.extract_strided_slice %208 {offsets = [0, 0], sizes = [2, 32], strides = [1, 1]} : vector<2x48xf32> to vector<2x32xf32>
    %211 = vector.extract_strided_slice %209 {offsets = [0, 0], sizes = [2, 32], strides = [1, 1]} : vector<2x48xf32> to vector<2x32xf32>
    %212 = arith.addf %210, %211 : vector<2x32xf32>
    %213 = arith.negf %212 : vector<2x32xf32>
    %214 = math.exp %213 : vector<2x32xf32>
    %cst_27 = arith.constant 1.000000e+00 : f32
    %215 = vector.broadcast %cst_27 : f32 to vector<2x32xf32>
    %216 = arith.addf %215, %214 : vector<2x32xf32>
    %217 = arith.divf %215, %216 : vector<2x32xf32>
    %218 = vector.extract_strided_slice %217 {offsets = [0, 0], sizes = [2, 16], strides = [1, 1]} : vector<2x32xf32> to vector<2x16xf32>
    %219 = vector.extract_strided_slice %217 {offsets = [0, 16], sizes = [2, 16], strides = [1, 1]} : vector<2x32xf32> to vector<2x16xf32>
    %220 = vector.extract_strided_slice %208 {offsets = [0, 32], sizes = [2, 16], strides = [1, 1]} : vector<2x48xf32> to vector<2x16xf32>
    %221 = vector.extract_strided_slice %209 {offsets = [0, 32], sizes = [2, 16], strides = [1, 1]} : vector<2x48xf32> to vector<2x16xf32>
    %222 = arith.mulf %218, %221 : vector<2x16xf32>
    %223 = arith.addf %220, %222 : vector<2x16xf32>
    %224 = math.tanh %223 : vector<2x16xf32>
    %225 = arith.subf %183, %224 : vector<2x16xf32>
    %226 = arith.mulf %219, %225 : vector<2x16xf32>
    %227 = arith.addf %224, %226 : vector<2x16xf32>
    %228 = vector.extract_strided_slice %24 {offsets = [8, 0], sizes = [2, 48], strides = [1, 1]} : vector<20x96xf32> to vector<2x48xf32>
    %229 = vector.extract_strided_slice %207 {offsets = [0, 48], sizes = [2, 48], strides = [1, 1]} : vector<2x96xf32> to vector<2x48xf32>
    %230 = vector.extract_strided_slice %228 {offsets = [0, 0], sizes = [2, 32], strides = [1, 1]} : vector<2x48xf32> to vector<2x32xf32>
    %231 = vector.extract_strided_slice %229 {offsets = [0, 0], sizes = [2, 32], strides = [1, 1]} : vector<2x48xf32> to vector<2x32xf32>
    %232 = arith.addf %230, %231 : vector<2x32xf32>
    %233 = arith.negf %232 : vector<2x32xf32>
    %234 = math.exp %233 : vector<2x32xf32>
    %cst_28 = arith.constant 1.000000e+00 : f32
    %235 = vector.broadcast %cst_28 : f32 to vector<2x32xf32>
    %236 = arith.addf %235, %234 : vector<2x32xf32>
    %237 = arith.divf %235, %236 : vector<2x32xf32>
    %238 = vector.extract_strided_slice %237 {offsets = [0, 0], sizes = [2, 16], strides = [1, 1]} : vector<2x32xf32> to vector<2x16xf32>
    %239 = vector.extract_strided_slice %237 {offsets = [0, 16], sizes = [2, 16], strides = [1, 1]} : vector<2x32xf32> to vector<2x16xf32>
    %240 = vector.extract_strided_slice %228 {offsets = [0, 32], sizes = [2, 16], strides = [1, 1]} : vector<2x48xf32> to vector<2x16xf32>
    %241 = vector.extract_strided_slice %229 {offsets = [0, 32], sizes = [2, 16], strides = [1, 1]} : vector<2x48xf32> to vector<2x16xf32>
    %242 = arith.mulf %238, %241 : vector<2x16xf32>
    %243 = arith.addf %240, %242 : vector<2x16xf32>
    %244 = math.tanh %243 : vector<2x16xf32>
    %245 = arith.subf %203, %244 : vector<2x16xf32>
    %246 = arith.mulf %239, %245 : vector<2x16xf32>
    %247 = arith.addf %244, %246 : vector<2x16xf32>
    %248 = tpu.concatenate %227, %247 in 1 : vector<2x16xf32>, vector<2x16xf32> -> vector<2x32xf32>
    %cst_29 = arith.constant dense<0.000000e+00> : vector<2x96xf32>
    %249 = tpu.matmul %248, %11, %cst_29 {dimension_numbers = #tpu.dot_dimension_numbers<[1], [0], [0], [1], [0, 0, 1, 1], [], []>} : vector<2x32xf32>, vector<32x96xf32>, vector<2x96xf32> -> vector<2x96xf32>
    %250 = vector.broadcast %12 : vector<1x96xf32> to vector<2x96xf32>
    %251 = arith.addf %249, %250 : vector<2x96xf32>
    %252 = vector.extract_strided_slice %20 {offsets = [10, 0], sizes = [2, 48], strides = [1, 1]} : vector<16x48xf32> to vector<2x48xf32>
    %253 = vector.extract_strided_slice %251 {offsets = [0, 0], sizes = [2, 48], strides = [1, 1]} : vector<2x96xf32> to vector<2x48xf32>
    %254 = vector.extract_strided_slice %252 {offsets = [0, 0], sizes = [2, 32], strides = [1, 1]} : vector<2x48xf32> to vector<2x32xf32>
    %255 = vector.extract_strided_slice %253 {offsets = [0, 0], sizes = [2, 32], strides = [1, 1]} : vector<2x48xf32> to vector<2x32xf32>
    %256 = arith.addf %254, %255 : vector<2x32xf32>
    %257 = arith.negf %256 : vector<2x32xf32>
    %258 = math.exp %257 : vector<2x32xf32>
    %cst_30 = arith.constant 1.000000e+00 : f32
    %259 = vector.broadcast %cst_30 : f32 to vector<2x32xf32>
    %260 = arith.addf %259, %258 : vector<2x32xf32>
    %261 = arith.divf %259, %260 : vector<2x32xf32>
    %262 = vector.extract_strided_slice %261 {offsets = [0, 0], sizes = [2, 16], strides = [1, 1]} : vector<2x32xf32> to vector<2x16xf32>
    %263 = vector.extract_strided_slice %261 {offsets = [0, 16], sizes = [2, 16], strides = [1, 1]} : vector<2x32xf32> to vector<2x16xf32>
    %264 = vector.extract_strided_slice %252 {offsets = [0, 32], sizes = [2, 16], strides = [1, 1]} : vector<2x48xf32> to vector<2x16xf32>
    %265 = vector.extract_strided_slice %253 {offsets = [0, 32], sizes = [2, 16], strides = [1, 1]} : vector<2x48xf32> to vector<2x16xf32>
    %266 = arith.mulf %262, %265 : vector<2x16xf32>
    %267 = arith.addf %264, %266 : vector<2x16xf32>
    %268 = math.tanh %267 : vector<2x16xf32>
    %269 = arith.subf %227, %268 : vector<2x16xf32>
    %270 = arith.mulf %263, %269 : vector<2x16xf32>
    %271 = arith.addf %268, %270 : vector<2x16xf32>
    %272 = vector.extract_strided_slice %24 {offsets = [10, 0], sizes = [2, 48], strides = [1, 1]} : vector<20x96xf32> to vector<2x48xf32>
    %273 = vector.extract_strided_slice %251 {offsets = [0, 48], sizes = [2, 48], strides = [1, 1]} : vector<2x96xf32> to vector<2x48xf32>
    %274 = vector.extract_strided_slice %272 {offsets = [0, 0], sizes = [2, 32], strides = [1, 1]} : vector<2x48xf32> to vector<2x32xf32>
    %275 = vector.extract_strided_slice %273 {offsets = [0, 0], sizes = [2, 32], strides = [1, 1]} : vector<2x48xf32> to vector<2x32xf32>
    %276 = arith.addf %274, %275 : vector<2x32xf32>
    %277 = arith.negf %276 : vector<2x32xf32>
    %278 = math.exp %277 : vector<2x32xf32>
    %cst_31 = arith.constant 1.000000e+00 : f32
    %279 = vector.broadcast %cst_31 : f32 to vector<2x32xf32>
    %280 = arith.addf %279, %278 : vector<2x32xf32>
    %281 = arith.divf %279, %280 : vector<2x32xf32>
    %282 = vector.extract_strided_slice %281 {offsets = [0, 0], sizes = [2, 16], strides = [1, 1]} : vector<2x32xf32> to vector<2x16xf32>
    %283 = vector.extract_strided_slice %281 {offsets = [0, 16], sizes = [2, 16], strides = [1, 1]} : vector<2x32xf32> to vector<2x16xf32>
    %284 = vector.extract_strided_slice %272 {offsets = [0, 32], sizes = [2, 16], strides = [1, 1]} : vector<2x48xf32> to vector<2x16xf32>
    %285 = vector.extract_strided_slice %273 {offsets = [0, 32], sizes = [2, 16], strides = [1, 1]} : vector<2x48xf32> to vector<2x16xf32>
    %286 = arith.mulf %282, %285 : vector<2x16xf32>
    %287 = arith.addf %284, %286 : vector<2x16xf32>
    %288 = math.tanh %287 : vector<2x16xf32>
    %289 = arith.subf %247, %288 : vector<2x16xf32>
    %290 = arith.mulf %283, %289 : vector<2x16xf32>
    %291 = arith.addf %288, %290 : vector<2x16xf32>
    %292 = tpu.concatenate %271, %291 in 1 : vector<2x16xf32>, vector<2x16xf32> -> vector<2x32xf32>
    %cst_32 = arith.constant dense<0.000000e+00> : vector<2x96xf32>
    %293 = tpu.matmul %292, %11, %cst_32 {dimension_numbers = #tpu.dot_dimension_numbers<[1], [0], [0], [1], [0, 0, 1, 1], [], []>} : vector<2x32xf32>, vector<32x96xf32>, vector<2x96xf32> -> vector<2x96xf32>
    %294 = vector.broadcast %12 : vector<1x96xf32> to vector<2x96xf32>
    %295 = arith.addf %293, %294 : vector<2x96xf32>
    %296 = vector.extract_strided_slice %20 {offsets = [12, 0], sizes = [2, 48], strides = [1, 1]} : vector<16x48xf32> to vector<2x48xf32>
    %297 = vector.extract_strided_slice %295 {offsets = [0, 0], sizes = [2, 48], strides = [1, 1]} : vector<2x96xf32> to vector<2x48xf32>
    %298 = vector.extract_strided_slice %296 {offsets = [0, 0], sizes = [2, 32], strides = [1, 1]} : vector<2x48xf32> to vector<2x32xf32>
    %299 = vector.extract_strided_slice %297 {offsets = [0, 0], sizes = [2, 32], strides = [1, 1]} : vector<2x48xf32> to vector<2x32xf32>
    %300 = arith.addf %298, %299 : vector<2x32xf32>
    %301 = arith.negf %300 : vector<2x32xf32>
    %302 = math.exp %301 : vector<2x32xf32>
    %cst_33 = arith.constant 1.000000e+00 : f32
    %303 = vector.broadcast %cst_33 : f32 to vector<2x32xf32>
    %304 = arith.addf %303, %302 : vector<2x32xf32>
    %305 = arith.divf %303, %304 : vector<2x32xf32>
    %306 = vector.extract_strided_slice %305 {offsets = [0, 0], sizes = [2, 16], strides = [1, 1]} : vector<2x32xf32> to vector<2x16xf32>
    %307 = vector.extract_strided_slice %305 {offsets = [0, 16], sizes = [2, 16], strides = [1, 1]} : vector<2x32xf32> to vector<2x16xf32>
    %308 = vector.extract_strided_slice %296 {offsets = [0, 32], sizes = [2, 16], strides = [1, 1]} : vector<2x48xf32> to vector<2x16xf32>
    %309 = vector.extract_strided_slice %297 {offsets = [0, 32], sizes = [2, 16], strides = [1, 1]} : vector<2x48xf32> to vector<2x16xf32>
    %310 = arith.mulf %306, %309 : vector<2x16xf32>
    %311 = arith.addf %308, %310 : vector<2x16xf32>
    %312 = math.tanh %311 : vector<2x16xf32>
    %313 = arith.subf %271, %312 : vector<2x16xf32>
    %314 = arith.mulf %307, %313 : vector<2x16xf32>
    %315 = arith.addf %312, %314 : vector<2x16xf32>
    %316 = vector.extract_strided_slice %24 {offsets = [12, 0], sizes = [2, 48], strides = [1, 1]} : vector<20x96xf32> to vector<2x48xf32>
    %317 = vector.extract_strided_slice %295 {offsets = [0, 48], sizes = [2, 48], strides = [1, 1]} : vector<2x96xf32> to vector<2x48xf32>
    %318 = vector.extract_strided_slice %316 {offsets = [0, 0], sizes = [2, 32], strides = [1, 1]} : vector<2x48xf32> to vector<2x32xf32>
    %319 = vector.extract_strided_slice %317 {offsets = [0, 0], sizes = [2, 32], strides = [1, 1]} : vector<2x48xf32> to vector<2x32xf32>
    %320 = arith.addf %318, %319 : vector<2x32xf32>
    %321 = arith.negf %320 : vector<2x32xf32>
    %322 = math.exp %321 : vector<2x32xf32>
    %cst_34 = arith.constant 1.000000e+00 : f32
    %323 = vector.broadcast %cst_34 : f32 to vector<2x32xf32>
    %324 = arith.addf %323, %322 : vector<2x32xf32>
    %325 = arith.divf %323, %324 : vector<2x32xf32>
    %326 = vector.extract_strided_slice %325 {offsets = [0, 0], sizes = [2, 16], strides = [1, 1]} : vector<2x32xf32> to vector<2x16xf32>
    %327 = vector.extract_strided_slice %325 {offsets = [0, 16], sizes = [2, 16], strides = [1, 1]} : vector<2x32xf32> to vector<2x16xf32>
    %328 = vector.extract_strided_slice %316 {offsets = [0, 32], sizes = [2, 16], strides = [1, 1]} : vector<2x48xf32> to vector<2x16xf32>
    %329 = vector.extract_strided_slice %317 {offsets = [0, 32], sizes = [2, 16], strides = [1, 1]} : vector<2x48xf32> to vector<2x16xf32>
    %330 = arith.mulf %326, %329 : vector<2x16xf32>
    %331 = arith.addf %328, %330 : vector<2x16xf32>
    %332 = math.tanh %331 : vector<2x16xf32>
    %333 = arith.subf %291, %332 : vector<2x16xf32>
    %334 = arith.mulf %327, %333 : vector<2x16xf32>
    %335 = arith.addf %332, %334 : vector<2x16xf32>
    %336 = tpu.concatenate %315, %335 in 1 : vector<2x16xf32>, vector<2x16xf32> -> vector<2x32xf32>
    %cst_35 = arith.constant dense<0.000000e+00> : vector<2x96xf32>
    %337 = tpu.matmul %336, %11, %cst_35 {dimension_numbers = #tpu.dot_dimension_numbers<[1], [0], [0], [1], [0, 0, 1, 1], [], []>} : vector<2x32xf32>, vector<32x96xf32>, vector<2x96xf32> -> vector<2x96xf32>
    %338 = vector.broadcast %12 : vector<1x96xf32> to vector<2x96xf32>
    %339 = arith.addf %337, %338 : vector<2x96xf32>
    %340 = vector.extract_strided_slice %20 {offsets = [14, 0], sizes = [2, 48], strides = [1, 1]} : vector<16x48xf32> to vector<2x48xf32>
    %341 = vector.extract_strided_slice %339 {offsets = [0, 0], sizes = [2, 48], strides = [1, 1]} : vector<2x96xf32> to vector<2x48xf32>
    %342 = vector.extract_strided_slice %340 {offsets = [0, 0], sizes = [2, 32], strides = [1, 1]} : vector<2x48xf32> to vector<2x32xf32>
    %343 = vector.extract_strided_slice %341 {offsets = [0, 0], sizes = [2, 32], strides = [1, 1]} : vector<2x48xf32> to vector<2x32xf32>
    %344 = arith.addf %342, %343 : vector<2x32xf32>
    %345 = arith.negf %344 : vector<2x32xf32>
    %346 = math.exp %345 : vector<2x32xf32>
    %cst_36 = arith.constant 1.000000e+00 : f32
    %347 = vector.broadcast %cst_36 : f32 to vector<2x32xf32>
    %348 = arith.addf %347, %346 : vector<2x32xf32>
    %349 = arith.divf %347, %348 : vector<2x32xf32>
    %350 = vector.extract_strided_slice %349 {offsets = [0, 0], sizes = [2, 16], strides = [1, 1]} : vector<2x32xf32> to vector<2x16xf32>
    %351 = vector.extract_strided_slice %349 {offsets = [0, 16], sizes = [2, 16], strides = [1, 1]} : vector<2x32xf32> to vector<2x16xf32>
    %352 = vector.extract_strided_slice %340 {offsets = [0, 32], sizes = [2, 16], strides = [1, 1]} : vector<2x48xf32> to vector<2x16xf32>
    %353 = vector.extract_strided_slice %341 {offsets = [0, 32], sizes = [2, 16], strides = [1, 1]} : vector<2x48xf32> to vector<2x16xf32>
    %354 = arith.mulf %350, %353 : vector<2x16xf32>
    %355 = arith.addf %352, %354 : vector<2x16xf32>
    %356 = math.tanh %355 : vector<2x16xf32>
    %357 = arith.subf %315, %356 : vector<2x16xf32>
    %358 = arith.mulf %351, %357 : vector<2x16xf32>
    %359 = arith.addf %356, %358 : vector<2x16xf32>
    %360 = vector.extract_strided_slice %24 {offsets = [14, 0], sizes = [2, 48], strides = [1, 1]} : vector<20x96xf32> to vector<2x48xf32>
    %361 = vector.extract_strided_slice %339 {offsets = [0, 48], sizes = [2, 48], strides = [1, 1]} : vector<2x96xf32> to vector<2x48xf32>
    %362 = vector.extract_strided_slice %360 {offsets = [0, 0], sizes = [2, 32], strides = [1, 1]} : vector<2x48xf32> to vector<2x32xf32>
    %363 = vector.extract_strided_slice %361 {offsets = [0, 0], sizes = [2, 32], strides = [1, 1]} : vector<2x48xf32> to vector<2x32xf32>
    %364 = arith.addf %362, %363 : vector<2x32xf32>
    %365 = arith.negf %364 : vector<2x32xf32>
    %366 = math.exp %365 : vector<2x32xf32>
    %cst_37 = arith.constant 1.000000e+00 : f32
    %367 = vector.broadcast %cst_37 : f32 to vector<2x32xf32>
    %368 = arith.addf %367, %366 : vector<2x32xf32>
    %369 = arith.divf %367, %368 : vector<2x32xf32>
    %370 = vector.extract_strided_slice %369 {offsets = [0, 0], sizes = [2, 16], strides = [1, 1]} : vector<2x32xf32> to vector<2x16xf32>
    %371 = vector.extract_strided_slice %369 {offsets = [0, 16], sizes = [2, 16], strides = [1, 1]} : vector<2x32xf32> to vector<2x16xf32>
    %372 = vector.extract_strided_slice %360 {offsets = [0, 32], sizes = [2, 16], strides = [1, 1]} : vector<2x48xf32> to vector<2x16xf32>
    %373 = vector.extract_strided_slice %361 {offsets = [0, 32], sizes = [2, 16], strides = [1, 1]} : vector<2x48xf32> to vector<2x16xf32>
    %374 = arith.mulf %370, %373 : vector<2x16xf32>
    %375 = arith.addf %372, %374 : vector<2x16xf32>
    %376 = math.tanh %375 : vector<2x16xf32>
    %377 = arith.subf %335, %376 : vector<2x16xf32>
    %378 = arith.mulf %371, %377 : vector<2x16xf32>
    %379 = arith.addf %376, %378 : vector<2x16xf32>
    %cst_38 = arith.constant dense<0.000000e+00> : vector<2x48xf32>
    %380 = tpu.matmul %359, %3, %cst_38 {dimension_numbers = #tpu.dot_dimension_numbers<[1], [0], [0], [1], [0, 0, 1, 1], [], []>} : vector<2x16xf32>, vector<16x48xf32>, vector<2x48xf32> -> vector<2x48xf32>
    %381 = vector.broadcast %8 : vector<1x48xf32> to vector<2x48xf32>
    %382 = arith.addf %380, %381 : vector<2x48xf32>
    %383 = tpu.concatenate %379, %27, %71 in 1 : vector<2x16xf32>, vector<2x16xf32>, vector<2x16xf32> -> vector<2x48xf32>
    %cst_39 = arith.constant dense<0.000000e+00> : vector<2x144xf32>
    %384 = tpu.matmul %383, %13, %cst_39 {dimension_numbers = #tpu.dot_dimension_numbers<[1], [0], [0], [1], [0, 0, 1, 1], [], []>} : vector<2x48xf32>, vector<48x144xf32>, vector<2x144xf32> -> vector<2x144xf32>
    %385 = vector.broadcast %14 : vector<1x144xf32> to vector<2x144xf32>
    %386 = arith.addf %384, %385 : vector<2x144xf32>
    %387 = vector.extract_strided_slice %24 {offsets = [16, 0], sizes = [2, 48], strides = [1, 1]} : vector<20x96xf32> to vector<2x48xf32>
    %388 = vector.extract_strided_slice %386 {offsets = [0, 0], sizes = [2, 48], strides = [1, 1]} : vector<2x144xf32> to vector<2x48xf32>
    %389 = vector.extract_strided_slice %387 {offsets = [0, 0], sizes = [2, 32], strides = [1, 1]} : vector<2x48xf32> to vector<2x32xf32>
    %390 = vector.extract_strided_slice %388 {offsets = [0, 0], sizes = [2, 32], strides = [1, 1]} : vector<2x48xf32> to vector<2x32xf32>
    %391 = arith.addf %389, %390 : vector<2x32xf32>
    %392 = arith.negf %391 : vector<2x32xf32>
    %393 = math.exp %392 : vector<2x32xf32>
    %cst_40 = arith.constant 1.000000e+00 : f32
    %394 = vector.broadcast %cst_40 : f32 to vector<2x32xf32>
    %395 = arith.addf %394, %393 : vector<2x32xf32>
    %396 = arith.divf %394, %395 : vector<2x32xf32>
    %397 = vector.extract_strided_slice %396 {offsets = [0, 0], sizes = [2, 16], strides = [1, 1]} : vector<2x32xf32> to vector<2x16xf32>
    %398 = vector.extract_strided_slice %396 {offsets = [0, 16], sizes = [2, 16], strides = [1, 1]} : vector<2x32xf32> to vector<2x16xf32>
    %399 = vector.extract_strided_slice %387 {offsets = [0, 32], sizes = [2, 16], strides = [1, 1]} : vector<2x48xf32> to vector<2x16xf32>
    %400 = vector.extract_strided_slice %388 {offsets = [0, 32], sizes = [2, 16], strides = [1, 1]} : vector<2x48xf32> to vector<2x16xf32>
    %401 = arith.mulf %397, %400 : vector<2x16xf32>
    %402 = arith.addf %399, %401 : vector<2x16xf32>
    %403 = math.tanh %402 : vector<2x16xf32>
    %404 = arith.subf %379, %403 : vector<2x16xf32>
    %405 = arith.mulf %398, %404 : vector<2x16xf32>
    %406 = arith.addf %403, %405 : vector<2x16xf32>
    %407 = vector.extract_strided_slice %386 {offsets = [0, 96], sizes = [2, 48], strides = [1, 1]} : vector<2x144xf32> to vector<2x48xf32>
    %408 = vector.extract_strided_slice %386 {offsets = [0, 48], sizes = [2, 48], strides = [1, 1]} : vector<2x144xf32> to vector<2x48xf32>
    %409 = vector.extract_strided_slice %24 {offsets = [0, 48], sizes = [2, 48], strides = [1, 1]} : vector<20x96xf32> to vector<2x48xf32>
    %410 = arith.addf %407, %409 : vector<2x48xf32>
    %411 = arith.addf %410, %382 : vector<2x48xf32>
    %412 = vector.extract_strided_slice %411 {offsets = [0, 0], sizes = [2, 32], strides = [1, 1]} : vector<2x48xf32> to vector<2x32xf32>
    %413 = vector.extract_strided_slice %408 {offsets = [0, 0], sizes = [2, 32], strides = [1, 1]} : vector<2x48xf32> to vector<2x32xf32>
    %414 = arith.addf %412, %413 : vector<2x32xf32>
    %415 = arith.negf %414 : vector<2x32xf32>
    %416 = math.exp %415 : vector<2x32xf32>
    %cst_41 = arith.constant 1.000000e+00 : f32
    %417 = vector.broadcast %cst_41 : f32 to vector<2x32xf32>
    %418 = arith.addf %417, %416 : vector<2x32xf32>
    %419 = arith.divf %417, %418 : vector<2x32xf32>
    %420 = vector.extract_strided_slice %419 {offsets = [0, 0], sizes = [2, 16], strides = [1, 1]} : vector<2x32xf32> to vector<2x16xf32>
    %421 = vector.extract_strided_slice %419 {offsets = [0, 16], sizes = [2, 16], strides = [1, 1]} : vector<2x32xf32> to vector<2x16xf32>
    %422 = vector.extract_strided_slice %411 {offsets = [0, 32], sizes = [2, 16], strides = [1, 1]} : vector<2x48xf32> to vector<2x16xf32>
    %423 = vector.extract_strided_slice %408 {offsets = [0, 32], sizes = [2, 16], strides = [1, 1]} : vector<2x48xf32> to vector<2x16xf32>
    %424 = arith.mulf %420, %423 : vector<2x16xf32>
    %425 = arith.addf %422, %424 : vector<2x16xf32>
    %426 = math.tanh %425 : vector<2x16xf32>
    %427 = arith.subf %27, %426 : vector<2x16xf32>
    %428 = arith.mulf %421, %427 : vector<2x16xf32>
    %429 = arith.addf %426, %428 : vector<2x16xf32>
    %cst_42 = arith.constant dense<0.000000e+00> : vector<2x128xf32>
    %430 = tpu.matmul %429, %4, %cst_42 {dimension_numbers = #tpu.dot_dimension_numbers<[1], [0], [0], [1], [0, 0, 1, 1], [], []>} : vector<2x16xf32>, vector<16x128xf32>, vector<2x128xf32> -> vector<2x128xf32>
    %431 = vector.broadcast %10 : vector<1x128xf32> to vector<2x128xf32>
    %432 = arith.addf %430, %431 : vector<2x128xf32>
    %c0_43 = arith.constant 0 : index
    %c0_44 = arith.constant 0 : index
    %433 = vector.load %arg3[%c0_43, %c0_44] : memref<20x128xf32, #tpu.memory_space<vmem>>, vector<2x128xf32>
    tpu.vector_store %arg3[%c0_43, %c0_44], %432 {strides = array<i32>} : memref<20x128xf32, #tpu.memory_space<vmem>>, vector<2x128xf32>,
    %434 = tpu.concatenate %406, %429, %115 in 1 : vector<2x16xf32>, vector<2x16xf32>, vector<2x16xf32> -> vector<2x48xf32>
    %cst_45 = arith.constant dense<0.000000e+00> : vector<2x144xf32>
    %435 = tpu.matmul %434, %13, %cst_45 {dimension_numbers = #tpu.dot_dimension_numbers<[1], [0], [0], [1], [0, 0, 1, 1], [], []>} : vector<2x48xf32>, vector<48x144xf32>, vector<2x144xf32> -> vector<2x144xf32>
    %436 = vector.broadcast %14 : vector<1x144xf32> to vector<2x144xf32>
    %437 = arith.addf %435, %436 : vector<2x144xf32>
    %438 = vector.extract_strided_slice %24 {offsets = [18, 0], sizes = [2, 48], strides = [1, 1]} : vector<20x96xf32> to vector<2x48xf32>
    %439 = vector.extract_strided_slice %437 {offsets = [0, 0], sizes = [2, 48], strides = [1, 1]} : vector<2x144xf32> to vector<2x48xf32>
    %440 = vector.extract_strided_slice %438 {offsets = [0, 0], sizes = [2, 32], strides = [1, 1]} : vector<2x48xf32> to vector<2x32xf32>
    %441 = vector.extract_strided_slice %439 {offsets = [0, 0], sizes = [2, 32], strides = [1, 1]} : vector<2x48xf32> to vector<2x32xf32>
    %442 = arith.addf %440, %441 : vector<2x32xf32>
    %443 = arith.negf %442 : vector<2x32xf32>
    %444 = math.exp %443 : vector<2x32xf32>
    %cst_46 = arith.constant 1.000000e+00 : f32
    %445 = vector.broadcast %cst_46 : f32 to vector<2x32xf32>
    %446 = arith.addf %445, %444 : vector<2x32xf32>
    %447 = arith.divf %445, %446 : vector<2x32xf32>
    %448 = vector.extract_strided_slice %447 {offsets = [0, 0], sizes = [2, 16], strides = [1, 1]} : vector<2x32xf32> to vector<2x16xf32>
    %449 = vector.extract_strided_slice %447 {offsets = [0, 16], sizes = [2, 16], strides = [1, 1]} : vector<2x32xf32> to vector<2x16xf32>
    %450 = vector.extract_strided_slice %438 {offsets = [0, 32], sizes = [2, 16], strides = [1, 1]} : vector<2x48xf32> to vector<2x16xf32>
    %451 = vector.extract_strided_slice %439 {offsets = [0, 32], sizes = [2, 16], strides = [1, 1]} : vector<2x48xf32> to vector<2x16xf32>
    %452 = arith.mulf %448, %451 : vector<2x16xf32>
    %453 = arith.addf %450, %452 : vector<2x16xf32>
    %454 = math.tanh %453 : vector<2x16xf32>
    %455 = arith.subf %406, %454 : vector<2x16xf32>
    %456 = arith.mulf %449, %455 : vector<2x16xf32>
    %457 = arith.addf %454, %456 : vector<2x16xf32>
    %458 = vector.extract_strided_slice %437 {offsets = [0, 96], sizes = [2, 48], strides = [1, 1]} : vector<2x144xf32> to vector<2x48xf32>
    %459 = vector.extract_strided_slice %437 {offsets = [0, 48], sizes = [2, 48], strides = [1, 1]} : vector<2x144xf32> to vector<2x48xf32>
    %460 = vector.extract_strided_slice %24 {offsets = [2, 48], sizes = [2, 48], strides = [1, 1]} : vector<20x96xf32> to vector<2x48xf32>
    %461 = arith.addf %458, %460 : vector<2x48xf32>
    %462 = arith.addf %461, %382 : vector<2x48xf32>
    %463 = vector.extract_strided_slice %462 {offsets = [0, 0], sizes = [2, 32], strides = [1, 1]} : vector<2x48xf32> to vector<2x32xf32>
    %464 = vector.extract_strided_slice %459 {offsets = [0, 0], sizes = [2, 32], strides = [1, 1]} : vector<2x48xf32> to vector<2x32xf32>
    %465 = arith.addf %463, %464 : vector<2x32xf32>
    %466 = arith.negf %465 : vector<2x32xf32>
    %467 = math.exp %466 : vector<2x32xf32>
    %cst_47 = arith.constant 1.000000e+00 : f32
    %468 = vector.broadcast %cst_47 : f32 to vector<2x32xf32>
    %469 = arith.addf %468, %467 : vector<2x32xf32>
    %470 = arith.divf %468, %469 : vector<2x32xf32>
    %471 = vector.extract_strided_slice %470 {offsets = [0, 0], sizes = [2, 16], strides = [1, 1]} : vector<2x32xf32> to vector<2x16xf32>
    %472 = vector.extract_strided_slice %470 {offsets = [0, 16], sizes = [2, 16], strides = [1, 1]} : vector<2x32xf32> to vector<2x16xf32>
    %473 = vector.extract_strided_slice %462 {offsets = [0, 32], sizes = [2, 16], strides = [1, 1]} : vector<2x48xf32> to vector<2x16xf32>
    %474 = vector.extract_strided_slice %459 {offsets = [0, 32], sizes = [2, 16], strides = [1, 1]} : vector<2x48xf32> to vector<2x16xf32>
    %475 = arith.mulf %471, %474 : vector<2x16xf32>
    %476 = arith.addf %473, %475 : vector<2x16xf32>
    %477 = math.tanh %476 : vector<2x16xf32>
    %478 = arith.subf %429, %477 : vector<2x16xf32>
    %479 = arith.mulf %472, %478 : vector<2x16xf32>
    %480 = arith.addf %477, %479 : vector<2x16xf32>
    %cst_48 = arith.constant dense<0.000000e+00> : vector<2x128xf32>
    %481 = tpu.matmul %480, %4, %cst_48 {dimension_numbers = #tpu.dot_dimension_numbers<[1], [0], [0], [1], [0, 0, 1, 1], [], []>} : vector<2x16xf32>, vector<16x128xf32>, vector<2x128xf32> -> vector<2x128xf32>
    %482 = vector.broadcast %10 : vector<1x128xf32> to vector<2x128xf32>
    %483 = arith.addf %481, %482 : vector<2x128xf32>
    %c2 = arith.constant 2 : index
    %c0_49 = arith.constant 0 : index
    %484 = vector.load %arg3[%c2, %c0_49] : memref<20x128xf32, #tpu.memory_space<vmem>>, vector<2x128xf32>
    tpu.vector_store %arg3[%c2, %c0_49], %483 {strides = array<i32>} : memref<20x128xf32, #tpu.memory_space<vmem>>, vector<2x128xf32>,
    %485 = tpu.concatenate %480, %159 in 1 : vector<2x16xf32>, vector<2x16xf32> -> vector<2x32xf32>
    %cst_50 = arith.constant dense<0.000000e+00> : vector<2x96xf32>
    %486 = tpu.matmul %485, %15, %cst_50 {dimension_numbers = #tpu.dot_dimension_numbers<[1], [0], [0], [1], [0, 0, 1, 1], [], []>} : vector<2x32xf32>, vector<32x96xf32>, vector<2x96xf32> -> vector<2x96xf32>
    %487 = vector.broadcast %16 : vector<1x96xf32> to vector<2x96xf32>
    %488 = arith.addf %486, %487 : vector<2x96xf32>
    %489 = vector.extract_strided_slice %488 {offsets = [0, 48], sizes = [2, 48], strides = [1, 1]} : vector<2x96xf32> to vector<2x48xf32>
    %490 = vector.extract_strided_slice %488 {offsets = [0, 0], sizes = [2, 48], strides = [1, 1]} : vector<2x96xf32> to vector<2x48xf32>
    %491 = vector.extract_strided_slice %24 {offsets = [4, 48], sizes = [2, 48], strides = [1, 1]} : vector<20x96xf32> to vector<2x48xf32>
    %492 = arith.addf %489, %491 : vector<2x48xf32>
    %493 = arith.addf %492, %382 : vector<2x48xf32>
    %494 = vector.extract_strided_slice %493 {offsets = [0, 0], sizes = [2, 32], strides = [1, 1]} : vector<2x48xf32> to vector<2x32xf32>
    %495 = vector.extract_strided_slice %490 {offsets = [0, 0], sizes = [2, 32], strides = [1, 1]} : vector<2x48xf32> to vector<2x32xf32>
    %496 = arith.addf %494, %495 : vector<2x32xf32>
    %497 = arith.negf %496 : vector<2x32xf32>
    %498 = math.exp %497 : vector<2x32xf32>
    %cst_51 = arith.constant 1.000000e+00 : f32
    %499 = vector.broadcast %cst_51 : f32 to vector<2x32xf32>
    %500 = arith.addf %499, %498 : vector<2x32xf32>
    %501 = arith.divf %499, %500 : vector<2x32xf32>
    %502 = vector.extract_strided_slice %501 {offsets = [0, 0], sizes = [2, 16], strides = [1, 1]} : vector<2x32xf32> to vector<2x16xf32>
    %503 = vector.extract_strided_slice %501 {offsets = [0, 16], sizes = [2, 16], strides = [1, 1]} : vector<2x32xf32> to vector<2x16xf32>
    %504 = vector.extract_strided_slice %493 {offsets = [0, 32], sizes = [2, 16], strides = [1, 1]} : vector<2x48xf32> to vector<2x16xf32>
    %505 = vector.extract_strided_slice %490 {offsets = [0, 32], sizes = [2, 16], strides = [1, 1]} : vector<2x48xf32> to vector<2x16xf32>
    %506 = arith.mulf %502, %505 : vector<2x16xf32>
    %507 = arith.addf %504, %506 : vector<2x16xf32>
    %508 = math.tanh %507 : vector<2x16xf32>
    %509 = arith.subf %480, %508 : vector<2x16xf32>
    %510 = arith.mulf %503, %509 : vector<2x16xf32>
    %511 = arith.addf %508, %510 : vector<2x16xf32>
    %cst_52 = arith.constant dense<0.000000e+00> : vector<2x128xf32>
    %512 = tpu.matmul %511, %4, %cst_52 {dimension_numbers = #tpu.dot_dimension_numbers<[1], [0], [0], [1], [0, 0, 1, 1], [], []>} : vector<2x16xf32>, vector<16x128xf32>, vector<2x128xf32> -> vector<2x128xf32>
    %513 = vector.broadcast %10 : vector<1x128xf32> to vector<2x128xf32>
    %514 = arith.addf %512, %513 : vector<2x128xf32>
    %c4 = arith.constant 4 : index
    %c0_53 = arith.constant 0 : index
    %515 = vector.load %arg3[%c4, %c0_53] : memref<20x128xf32, #tpu.memory_space<vmem>>, vector<2x128xf32>
    tpu.vector_store %arg3[%c4, %c0_53], %514 {strides = array<i32>} : memref<20x128xf32, #tpu.memory_space<vmem>>, vector<2x128xf32>,
    %516 = tpu.concatenate %511, %203 in 1 : vector<2x16xf32>, vector<2x16xf32> -> vector<2x32xf32>
    %cst_54 = arith.constant dense<0.000000e+00> : vector<2x96xf32>
    %517 = tpu.matmul %516, %15, %cst_54 {dimension_numbers = #tpu.dot_dimension_numbers<[1], [0], [0], [1], [0, 0, 1, 1], [], []>} : vector<2x32xf32>, vector<32x96xf32>, vector<2x96xf32> -> vector<2x96xf32>
    %518 = vector.broadcast %16 : vector<1x96xf32> to vector<2x96xf32>
    %519 = arith.addf %517, %518 : vector<2x96xf32>
    %520 = vector.extract_strided_slice %519 {offsets = [0, 48], sizes = [2, 48], strides = [1, 1]} : vector<2x96xf32> to vector<2x48xf32>
    %521 = vector.extract_strided_slice %519 {offsets = [0, 0], sizes = [2, 48], strides = [1, 1]} : vector<2x96xf32> to vector<2x48xf32>
    %522 = vector.extract_strided_slice %24 {offsets = [6, 48], sizes = [2, 48], strides = [1, 1]} : vector<20x96xf32> to vector<2x48xf32>
    %523 = arith.addf %520, %522 : vector<2x48xf32>
    %524 = arith.addf %523, %382 : vector<2x48xf32>
    %525 = vector.extract_strided_slice %524 {offsets = [0, 0], sizes = [2, 32], strides = [1, 1]} : vector<2x48xf32> to vector<2x32xf32>
    %526 = vector.extract_strided_slice %521 {offsets = [0, 0], sizes = [2, 32], strides = [1, 1]} : vector<2x48xf32> to vector<2x32xf32>
    %527 = arith.addf %525, %526 : vector<2x32xf32>
    %528 = arith.negf %527 : vector<2x32xf32>
    %529 = math.exp %528 : vector<2x32xf32>
    %cst_55 = arith.constant 1.000000e+00 : f32
    %530 = vector.broadcast %cst_55 : f32 to vector<2x32xf32>
    %531 = arith.addf %530, %529 : vector<2x32xf32>
    %532 = arith.divf %530, %531 : vector<2x32xf32>
    %533 = vector.extract_strided_slice %532 {offsets = [0, 0], sizes = [2, 16], strides = [1, 1]} : vector<2x32xf32> to vector<2x16xf32>
    %534 = vector.extract_strided_slice %532 {offsets = [0, 16], sizes = [2, 16], strides = [1, 1]} : vector<2x32xf32> to vector<2x16xf32>
    %535 = vector.extract_strided_slice %524 {offsets = [0, 32], sizes = [2, 16], strides = [1, 1]} : vector<2x48xf32> to vector<2x16xf32>
    %536 = vector.extract_strided_slice %521 {offsets = [0, 32], sizes = [2, 16], strides = [1, 1]} : vector<2x48xf32> to vector<2x16xf32>
    %537 = arith.mulf %533, %536 : vector<2x16xf32>
    %538 = arith.addf %535, %537 : vector<2x16xf32>
    %539 = math.tanh %538 : vector<2x16xf32>
    %540 = arith.subf %511, %539 : vector<2x16xf32>
    %541 = arith.mulf %534, %540 : vector<2x16xf32>
    %542 = arith.addf %539, %541 : vector<2x16xf32>
    %cst_56 = arith.constant dense<0.000000e+00> : vector<2x128xf32>
    %543 = tpu.matmul %542, %4, %cst_56 {dimension_numbers = #tpu.dot_dimension_numbers<[1], [0], [0], [1], [0, 0, 1, 1], [], []>} : vector<2x16xf32>, vector<16x128xf32>, vector<2x128xf32> -> vector<2x128xf32>
    %544 = vector.broadcast %10 : vector<1x128xf32> to vector<2x128xf32>
    %545 = arith.addf %543, %544 : vector<2x128xf32>
    %c6 = arith.constant 6 : index
    %c0_57 = arith.constant 0 : index
    %546 = vector.load %arg3[%c6, %c0_57] : memref<20x128xf32, #tpu.memory_space<vmem>>, vector<2x128xf32>
    tpu.vector_store %arg3[%c6, %c0_57], %545 {strides = array<i32>} : memref<20x128xf32, #tpu.memory_space<vmem>>, vector<2x128xf32>,
    %547 = tpu.concatenate %542, %247 in 1 : vector<2x16xf32>, vector<2x16xf32> -> vector<2x32xf32>
    %cst_58 = arith.constant dense<0.000000e+00> : vector<2x96xf32>
    %548 = tpu.matmul %547, %15, %cst_58 {dimension_numbers = #tpu.dot_dimension_numbers<[1], [0], [0], [1], [0, 0, 1, 1], [], []>} : vector<2x32xf32>, vector<32x96xf32>, vector<2x96xf32> -> vector<2x96xf32>
    %549 = vector.broadcast %16 : vector<1x96xf32> to vector<2x96xf32>
    %550 = arith.addf %548, %549 : vector<2x96xf32>
    %551 = vector.extract_strided_slice %550 {offsets = [0, 48], sizes = [2, 48], strides = [1, 1]} : vector<2x96xf32> to vector<2x48xf32>
    %552 = vector.extract_strided_slice %550 {offsets = [0, 0], sizes = [2, 48], strides = [1, 1]} : vector<2x96xf32> to vector<2x48xf32>
    %553 = vector.extract_strided_slice %24 {offsets = [8, 48], sizes = [2, 48], strides = [1, 1]} : vector<20x96xf32> to vector<2x48xf32>
    %554 = arith.addf %551, %553 : vector<2x48xf32>
    %555 = arith.addf %554, %382 : vector<2x48xf32>
    %556 = vector.extract_strided_slice %555 {offsets = [0, 0], sizes = [2, 32], strides = [1, 1]} : vector<2x48xf32> to vector<2x32xf32>
    %557 = vector.extract_strided_slice %552 {offsets = [0, 0], sizes = [2, 32], strides = [1, 1]} : vector<2x48xf32> to vector<2x32xf32>
    %558 = arith.addf %556, %557 : vector<2x32xf32>
    %559 = arith.negf %558 : vector<2x32xf32>
    %560 = math.exp %559 : vector<2x32xf32>
    %cst_59 = arith.constant 1.000000e+00 : f32
    %561 = vector.broadcast %cst_59 : f32 to vector<2x32xf32>
    %562 = arith.addf %561, %560 : vector<2x32xf32>
    %563 = arith.divf %561, %562 : vector<2x32xf32>
    %564 = vector.extract_strided_slice %563 {offsets = [0, 0], sizes = [2, 16], strides = [1, 1]} : vector<2x32xf32> to vector<2x16xf32>
    %565 = vector.extract_strided_slice %563 {offsets = [0, 16], sizes = [2, 16], strides = [1, 1]} : vector<2x32xf32> to vector<2x16xf32>
    %566 = vector.extract_strided_slice %555 {offsets = [0, 32], sizes = [2, 16], strides = [1, 1]} : vector<2x48xf32> to vector<2x16xf32>
    %567 = vector.extract_strided_slice %552 {offsets = [0, 32], sizes = [2, 16], strides = [1, 1]} : vector<2x48xf32> to vector<2x16xf32>
    %568 = arith.mulf %564, %567 : vector<2x16xf32>
    %569 = arith.addf %566, %568 : vector<2x16xf32>
    %570 = math.tanh %569 : vector<2x16xf32>
    %571 = arith.subf %542, %570 : vector<2x16xf32>
    %572 = arith.mulf %565, %571 : vector<2x16xf32>
    %573 = arith.addf %570, %572 : vector<2x16xf32>
    %cst_60 = arith.constant dense<0.000000e+00> : vector<2x128xf32>
    %574 = tpu.matmul %573, %4, %cst_60 {dimension_numbers = #tpu.dot_dimension_numbers<[1], [0], [0], [1], [0, 0, 1, 1], [], []>} : vector<2x16xf32>, vector<16x128xf32>, vector<2x128xf32> -> vector<2x128xf32>
    %575 = vector.broadcast %10 : vector<1x128xf32> to vector<2x128xf32>
    %576 = arith.addf %574, %575 : vector<2x128xf32>
    %c8 = arith.constant 8 : index
    %c0_61 = arith.constant 0 : index
    %577 = vector.load %arg3[%c8, %c0_61] : memref<20x128xf32, #tpu.memory_space<vmem>>, vector<2x128xf32>
    tpu.vector_store %arg3[%c8, %c0_61], %576 {strides = array<i32>} : memref<20x128xf32, #tpu.memory_space<vmem>>, vector<2x128xf32>,
    %578 = tpu.concatenate %573, %291 in 1 : vector<2x16xf32>, vector<2x16xf32> -> vector<2x32xf32>
    %cst_62 = arith.constant dense<0.000000e+00> : vector<2x96xf32>
    %579 = tpu.matmul %578, %15, %cst_62 {dimension_numbers = #tpu.dot_dimension_numbers<[1], [0], [0], [1], [0, 0, 1, 1], [], []>} : vector<2x32xf32>, vector<32x96xf32>, vector<2x96xf32> -> vector<2x96xf32>
    %580 = vector.broadcast %16 : vector<1x96xf32> to vector<2x96xf32>
    %581 = arith.addf %579, %580 : vector<2x96xf32>
    %582 = vector.extract_strided_slice %581 {offsets = [0, 48], sizes = [2, 48], strides = [1, 1]} : vector<2x96xf32> to vector<2x48xf32>
    %583 = vector.extract_strided_slice %581 {offsets = [0, 0], sizes = [2, 48], strides = [1, 1]} : vector<2x96xf32> to vector<2x48xf32>
    %584 = vector.extract_strided_slice %24 {offsets = [10, 48], sizes = [2, 48], strides = [1, 1]} : vector<20x96xf32> to vector<2x48xf32>
    %585 = arith.addf %582, %584 : vector<2x48xf32>
    %586 = arith.addf %585, %382 : vector<2x48xf32>
    %587 = vector.extract_strided_slice %586 {offsets = [0, 0], sizes = [2, 32], strides = [1, 1]} : vector<2x48xf32> to vector<2x32xf32>
    %588 = vector.extract_strided_slice %583 {offsets = [0, 0], sizes = [2, 32], strides = [1, 1]} : vector<2x48xf32> to vector<2x32xf32>
    %589 = arith.addf %587, %588 : vector<2x32xf32>
    %590 = arith.negf %589 : vector<2x32xf32>
    %591 = math.exp %590 : vector<2x32xf32>
    %cst_63 = arith.constant 1.000000e+00 : f32
    %592 = vector.broadcast %cst_63 : f32 to vector<2x32xf32>
    %593 = arith.addf %592, %591 : vector<2x32xf32>
    %594 = arith.divf %592, %593 : vector<2x32xf32>
    %595 = vector.extract_strided_slice %594 {offsets = [0, 0], sizes = [2, 16], strides = [1, 1]} : vector<2x32xf32> to vector<2x16xf32>
    %596 = vector.extract_strided_slice %594 {offsets = [0, 16], sizes = [2, 16], strides = [1, 1]} : vector<2x32xf32> to vector<2x16xf32>
    %597 = vector.extract_strided_slice %586 {offsets = [0, 32], sizes = [2, 16], strides = [1, 1]} : vector<2x48xf32> to vector<2x16xf32>
    %598 = vector.extract_strided_slice %583 {offsets = [0, 32], sizes = [2, 16], strides = [1, 1]} : vector<2x48xf32> to vector<2x16xf32>
    %599 = arith.mulf %595, %598 : vector<2x16xf32>
    %600 = arith.addf %597, %599 : vector<2x16xf32>
    %601 = math.tanh %600 : vector<2x16xf32>
    %602 = arith.subf %573, %601 : vector<2x16xf32>
    %603 = arith.mulf %596, %602 : vector<2x16xf32>
    %604 = arith.addf %601, %603 : vector<2x16xf32>
    %cst_64 = arith.constant dense<0.000000e+00> : vector<2x128xf32>
    %605 = tpu.matmul %604, %4, %cst_64 {dimension_numbers = #tpu.dot_dimension_numbers<[1], [0], [0], [1], [0, 0, 1, 1], [], []>} : vector<2x16xf32>, vector<16x128xf32>, vector<2x128xf32> -> vector<2x128xf32>
    %606 = vector.broadcast %10 : vector<1x128xf32> to vector<2x128xf32>
    %607 = arith.addf %605, %606 : vector<2x128xf32>
    %c10 = arith.constant 10 : index
    %c0_65 = arith.constant 0 : index
    %608 = vector.load %arg3[%c10, %c0_65] : memref<20x128xf32, #tpu.memory_space<vmem>>, vector<2x128xf32>
    tpu.vector_store %arg3[%c10, %c0_65], %607 {strides = array<i32>} : memref<20x128xf32, #tpu.memory_space<vmem>>, vector<2x128xf32>,
    %609 = tpu.concatenate %604, %335 in 1 : vector<2x16xf32>, vector<2x16xf32> -> vector<2x32xf32>
    %cst_66 = arith.constant dense<0.000000e+00> : vector<2x96xf32>
    %610 = tpu.matmul %609, %15, %cst_66 {dimension_numbers = #tpu.dot_dimension_numbers<[1], [0], [0], [1], [0, 0, 1, 1], [], []>} : vector<2x32xf32>, vector<32x96xf32>, vector<2x96xf32> -> vector<2x96xf32>
    %611 = vector.broadcast %16 : vector<1x96xf32> to vector<2x96xf32>
    %612 = arith.addf %610, %611 : vector<2x96xf32>
    %613 = vector.extract_strided_slice %612 {offsets = [0, 48], sizes = [2, 48], strides = [1, 1]} : vector<2x96xf32> to vector<2x48xf32>
    %614 = vector.extract_strided_slice %612 {offsets = [0, 0], sizes = [2, 48], strides = [1, 1]} : vector<2x96xf32> to vector<2x48xf32>
    %615 = vector.extract_strided_slice %24 {offsets = [12, 48], sizes = [2, 48], strides = [1, 1]} : vector<20x96xf32> to vector<2x48xf32>
    %616 = arith.addf %613, %615 : vector<2x48xf32>
    %617 = arith.addf %616, %382 : vector<2x48xf32>
    %618 = vector.extract_strided_slice %617 {offsets = [0, 0], sizes = [2, 32], strides = [1, 1]} : vector<2x48xf32> to vector<2x32xf32>
    %619 = vector.extract_strided_slice %614 {offsets = [0, 0], sizes = [2, 32], strides = [1, 1]} : vector<2x48xf32> to vector<2x32xf32>
    %620 = arith.addf %618, %619 : vector<2x32xf32>
    %621 = arith.negf %620 : vector<2x32xf32>
    %622 = math.exp %621 : vector<2x32xf32>
    %cst_67 = arith.constant 1.000000e+00 : f32
    %623 = vector.broadcast %cst_67 : f32 to vector<2x32xf32>
    %624 = arith.addf %623, %622 : vector<2x32xf32>
    %625 = arith.divf %623, %624 : vector<2x32xf32>
    %626 = vector.extract_strided_slice %625 {offsets = [0, 0], sizes = [2, 16], strides = [1, 1]} : vector<2x32xf32> to vector<2x16xf32>
    %627 = vector.extract_strided_slice %625 {offsets = [0, 16], sizes = [2, 16], strides = [1, 1]} : vector<2x32xf32> to vector<2x16xf32>
    %628 = vector.extract_strided_slice %617 {offsets = [0, 32], sizes = [2, 16], strides = [1, 1]} : vector<2x48xf32> to vector<2x16xf32>
    %629 = vector.extract_strided_slice %614 {offsets = [0, 32], sizes = [2, 16], strides = [1, 1]} : vector<2x48xf32> to vector<2x16xf32>
    %630 = arith.mulf %626, %629 : vector<2x16xf32>
    %631 = arith.addf %628, %630 : vector<2x16xf32>
    %632 = math.tanh %631 : vector<2x16xf32>
    %633 = arith.subf %604, %632 : vector<2x16xf32>
    %634 = arith.mulf %627, %633 : vector<2x16xf32>
    %635 = arith.addf %632, %634 : vector<2x16xf32>
    %cst_68 = arith.constant dense<0.000000e+00> : vector<2x128xf32>
    %636 = tpu.matmul %635, %4, %cst_68 {dimension_numbers = #tpu.dot_dimension_numbers<[1], [0], [0], [1], [0, 0, 1, 1], [], []>} : vector<2x16xf32>, vector<16x128xf32>, vector<2x128xf32> -> vector<2x128xf32>
    %637 = vector.broadcast %10 : vector<1x128xf32> to vector<2x128xf32>
    %638 = arith.addf %636, %637 : vector<2x128xf32>
    %c12 = arith.constant 12 : index
    %c0_69 = arith.constant 0 : index
    %639 = vector.load %arg3[%c12, %c0_69] : memref<20x128xf32, #tpu.memory_space<vmem>>, vector<2x128xf32>
    tpu.vector_store %arg3[%c12, %c0_69], %638 {strides = array<i32>} : memref<20x128xf32, #tpu.memory_space<vmem>>, vector<2x128xf32>,
    %640 = tpu.concatenate %635, %379 in 1 : vector<2x16xf32>, vector<2x16xf32> -> vector<2x32xf32>
    %cst_70 = arith.constant dense<0.000000e+00> : vector<2x96xf32>
    %641 = tpu.matmul %640, %15, %cst_70 {dimension_numbers = #tpu.dot_dimension_numbers<[1], [0], [0], [1], [0, 0, 1, 1], [], []>} : vector<2x32xf32>, vector<32x96xf32>, vector<2x96xf32> -> vector<2x96xf32>
    %642 = vector.broadcast %16 : vector<1x96xf32> to vector<2x96xf32>
    %643 = arith.addf %641, %642 : vector<2x96xf32>
    %644 = vector.extract_strided_slice %643 {offsets = [0, 48], sizes = [2, 48], strides = [1, 1]} : vector<2x96xf32> to vector<2x48xf32>
    %645 = vector.extract_strided_slice %643 {offsets = [0, 0], sizes = [2, 48], strides = [1, 1]} : vector<2x96xf32> to vector<2x48xf32>
    %646 = vector.extract_strided_slice %24 {offsets = [14, 48], sizes = [2, 48], strides = [1, 1]} : vector<20x96xf32> to vector<2x48xf32>
    %647 = arith.addf %644, %646 : vector<2x48xf32>
    %648 = arith.addf %647, %382 : vector<2x48xf32>
    %649 = vector.extract_strided_slice %648 {offsets = [0, 0], sizes = [2, 32], strides = [1, 1]} : vector<2x48xf32> to vector<2x32xf32>
    %650 = vector.extract_strided_slice %645 {offsets = [0, 0], sizes = [2, 32], strides = [1, 1]} : vector<2x48xf32> to vector<2x32xf32>
    %651 = arith.addf %649, %650 : vector<2x32xf32>
    %652 = arith.negf %651 : vector<2x32xf32>
    %653 = math.exp %652 : vector<2x32xf32>
    %cst_71 = arith.constant 1.000000e+00 : f32
    %654 = vector.broadcast %cst_71 : f32 to vector<2x32xf32>
    %655 = arith.addf %654, %653 : vector<2x32xf32>
    %656 = arith.divf %654, %655 : vector<2x32xf32>
    %657 = vector.extract_strided_slice %656 {offsets = [0, 0], sizes = [2, 16], strides = [1, 1]} : vector<2x32xf32> to vector<2x16xf32>
    %658 = vector.extract_strided_slice %656 {offsets = [0, 16], sizes = [2, 16], strides = [1, 1]} : vector<2x32xf32> to vector<2x16xf32>
    %659 = vector.extract_strided_slice %648 {offsets = [0, 32], sizes = [2, 16], strides = [1, 1]} : vector<2x48xf32> to vector<2x16xf32>
    %660 = vector.extract_strided_slice %645 {offsets = [0, 32], sizes = [2, 16], strides = [1, 1]} : vector<2x48xf32> to vector<2x16xf32>
    %661 = arith.mulf %657, %660 : vector<2x16xf32>
    %662 = arith.addf %659, %661 : vector<2x16xf32>
    %663 = math.tanh %662 : vector<2x16xf32>
    %664 = arith.subf %635, %663 : vector<2x16xf32>
    %665 = arith.mulf %658, %664 : vector<2x16xf32>
    %666 = arith.addf %663, %665 : vector<2x16xf32>
    %cst_72 = arith.constant dense<0.000000e+00> : vector<2x128xf32>
    %667 = tpu.matmul %666, %4, %cst_72 {dimension_numbers = #tpu.dot_dimension_numbers<[1], [0], [0], [1], [0, 0, 1, 1], [], []>} : vector<2x16xf32>, vector<16x128xf32>, vector<2x128xf32> -> vector<2x128xf32>
    %668 = vector.broadcast %10 : vector<1x128xf32> to vector<2x128xf32>
    %669 = arith.addf %667, %668 : vector<2x128xf32>
    %c14 = arith.constant 14 : index
    %c0_73 = arith.constant 0 : index
    %670 = vector.load %arg3[%c14, %c0_73] : memref<20x128xf32, #tpu.memory_space<vmem>>, vector<2x128xf32>
    tpu.vector_store %arg3[%c14, %c0_73], %669 {strides = array<i32>} : memref<20x128xf32, #tpu.memory_space<vmem>>, vector<2x128xf32>,
    %671 = tpu.concatenate %666, %406 in 1 : vector<2x16xf32>, vector<2x16xf32> -> vector<2x32xf32>
    %cst_74 = arith.constant dense<0.000000e+00> : vector<2x96xf32>
    %672 = tpu.matmul %671, %15, %cst_74 {dimension_numbers = #tpu.dot_dimension_numbers<[1], [0], [0], [1], [0, 0, 1, 1], [], []>} : vector<2x32xf32>, vector<32x96xf32>, vector<2x96xf32> -> vector<2x96xf32>
    %673 = vector.broadcast %16 : vector<1x96xf32> to vector<2x96xf32>
    %674 = arith.addf %672, %673 : vector<2x96xf32>
    %675 = vector.extract_strided_slice %674 {offsets = [0, 48], sizes = [2, 48], strides = [1, 1]} : vector<2x96xf32> to vector<2x48xf32>
    %676 = vector.extract_strided_slice %674 {offsets = [0, 0], sizes = [2, 48], strides = [1, 1]} : vector<2x96xf32> to vector<2x48xf32>
    %677 = vector.extract_strided_slice %24 {offsets = [16, 48], sizes = [2, 48], strides = [1, 1]} : vector<20x96xf32> to vector<2x48xf32>
    %678 = arith.addf %675, %677 : vector<2x48xf32>
    %679 = arith.addf %678, %382 : vector<2x48xf32>
    %680 = vector.extract_strided_slice %679 {offsets = [0, 0], sizes = [2, 32], strides = [1, 1]} : vector<2x48xf32> to vector<2x32xf32>
    %681 = vector.extract_strided_slice %676 {offsets = [0, 0], sizes = [2, 32], strides = [1, 1]} : vector<2x48xf32> to vector<2x32xf32>
    %682 = arith.addf %680, %681 : vector<2x32xf32>
    %683 = arith.negf %682 : vector<2x32xf32>
    %684 = math.exp %683 : vector<2x32xf32>
    %cst_75 = arith.constant 1.000000e+00 : f32
    %685 = vector.broadcast %cst_75 : f32 to vector<2x32xf32>
    %686 = arith.addf %685, %684 : vector<2x32xf32>
    %687 = arith.divf %685, %686 : vector<2x32xf32>
    %688 = vector.extract_strided_slice %687 {offsets = [0, 0], sizes = [2, 16], strides = [1, 1]} : vector<2x32xf32> to vector<2x16xf32>
    %689 = vector.extract_strided_slice %687 {offsets = [0, 16], sizes = [2, 16], strides = [1, 1]} : vector<2x32xf32> to vector<2x16xf32>
    %690 = vector.extract_strided_slice %679 {offsets = [0, 32], sizes = [2, 16], strides = [1, 1]} : vector<2x48xf32> to vector<2x16xf32>
    %691 = vector.extract_strided_slice %676 {offsets = [0, 32], sizes = [2, 16], strides = [1, 1]} : vector<2x48xf32> to vector<2x16xf32>
    %692 = arith.mulf %688, %691 : vector<2x16xf32>
    %693 = arith.addf %690, %692 : vector<2x16xf32>
    %694 = math.tanh %693 : vector<2x16xf32>
    %695 = arith.subf %666, %694 : vector<2x16xf32>
    %696 = arith.mulf %689, %695 : vector<2x16xf32>
    %697 = arith.addf %694, %696 : vector<2x16xf32>
    %cst_76 = arith.constant dense<0.000000e+00> : vector<2x128xf32>
    %698 = tpu.matmul %697, %4, %cst_76 {dimension_numbers = #tpu.dot_dimension_numbers<[1], [0], [0], [1], [0, 0, 1, 1], [], []>} : vector<2x16xf32>, vector<16x128xf32>, vector<2x128xf32> -> vector<2x128xf32>
    %699 = vector.broadcast %10 : vector<1x128xf32> to vector<2x128xf32>
    %700 = arith.addf %698, %699 : vector<2x128xf32>
    %c16 = arith.constant 16 : index
    %c0_77 = arith.constant 0 : index
    %701 = vector.load %arg3[%c16, %c0_77] : memref<20x128xf32, #tpu.memory_space<vmem>>, vector<2x128xf32>
    tpu.vector_store %arg3[%c16, %c0_77], %700 {strides = array<i32>} : memref<20x128xf32, #tpu.memory_space<vmem>>, vector<2x128xf32>,
    %702 = tpu.concatenate %697, %457 in 1 : vector<2x16xf32>, vector<2x16xf32> -> vector<2x32xf32>
    %cst_78 = arith.constant dense<0.000000e+00> : vector<2x96xf32>
    %703 = tpu.matmul %702, %15, %cst_78 {dimension_numbers = #tpu.dot_dimension_numbers<[1], [0], [0], [1], [0, 0, 1, 1], [], []>} : vector<2x32xf32>, vector<32x96xf32>, vector<2x96xf32> -> vector<2x96xf32>
    %704 = vector.broadcast %16 : vector<1x96xf32> to vector<2x96xf32>
    %705 = arith.addf %703, %704 : vector<2x96xf32>
    %706 = vector.extract_strided_slice %705 {offsets = [0, 48], sizes = [2, 48], strides = [1, 1]} : vector<2x96xf32> to vector<2x48xf32>
    %707 = vector.extract_strided_slice %705 {offsets = [0, 0], sizes = [2, 48], strides = [1, 1]} : vector<2x96xf32> to vector<2x48xf32>
    %708 = vector.extract_strided_slice %24 {offsets = [18, 48], sizes = [2, 48], strides = [1, 1]} : vector<20x96xf32> to vector<2x48xf32>
    %709 = arith.addf %706, %708 : vector<2x48xf32>
    %710 = arith.addf %709, %382 : vector<2x48xf32>
    %711 = vector.extract_strided_slice %710 {offsets = [0, 0], sizes = [2, 32], strides = [1, 1]} : vector<2x48xf32> to vector<2x32xf32>
    %712 = vector.extract_strided_slice %707 {offsets = [0, 0], sizes = [2, 32], strides = [1, 1]} : vector<2x48xf32> to vector<2x32xf32>
    %713 = arith.addf %711, %712 : vector<2x32xf32>
    %714 = arith.negf %713 : vector<2x32xf32>
    %715 = math.exp %714 : vector<2x32xf32>
    %cst_79 = arith.constant 1.000000e+00 : f32
    %716 = vector.broadcast %cst_79 : f32 to vector<2x32xf32>
    %717 = arith.addf %716, %715 : vector<2x32xf32>
    %718 = arith.divf %716, %717 : vector<2x32xf32>
    %719 = vector.extract_strided_slice %718 {offsets = [0, 0], sizes = [2, 16], strides = [1, 1]} : vector<2x32xf32> to vector<2x16xf32>
    %720 = vector.extract_strided_slice %718 {offsets = [0, 16], sizes = [2, 16], strides = [1, 1]} : vector<2x32xf32> to vector<2x16xf32>
    %721 = vector.extract_strided_slice %710 {offsets = [0, 32], sizes = [2, 16], strides = [1, 1]} : vector<2x48xf32> to vector<2x16xf32>
    %722 = vector.extract_strided_slice %707 {offsets = [0, 32], sizes = [2, 16], strides = [1, 1]} : vector<2x48xf32> to vector<2x16xf32>
    %723 = arith.mulf %719, %722 : vector<2x16xf32>
    %724 = arith.addf %721, %723 : vector<2x16xf32>
    %725 = math.tanh %724 : vector<2x16xf32>
    %726 = arith.subf %697, %725 : vector<2x16xf32>
    %727 = arith.mulf %720, %726 : vector<2x16xf32>
    %728 = arith.addf %725, %727 : vector<2x16xf32>
    %cst_80 = arith.constant dense<0.000000e+00> : vector<2x128xf32>
    %729 = tpu.matmul %728, %4, %cst_80 {dimension_numbers = #tpu.dot_dimension_numbers<[1], [0], [0], [1], [0, 0, 1, 1], [], []>} : vector<2x16xf32>, vector<16x128xf32>, vector<2x128xf32> -> vector<2x128xf32>
    %730 = vector.broadcast %10 : vector<1x128xf32> to vector<2x128xf32>
    %731 = arith.addf %729, %730 : vector<2x128xf32>
    %c18 = arith.constant 18 : index
    %c0_81 = arith.constant 0 : index
    %732 = vector.load %arg3[%c18, %c0_81] : memref<20x128xf32, #tpu.memory_space<vmem>>, vector<2x128xf32>
    tpu.vector_store %arg3[%c18, %c0_81], %731 {strides = array<i32>} : memref<20x128xf32, #tpu.memory_space<vmem>>, vector<2x128xf32>,
    return
  }
}

</mosaic_0001>

<bundles_post_ra>
// kernel: generator_forward.1
= control target key start
LH: loop header
LB: loop body
LE: loop exit
PB: predicated region body
PF: predicated region fallthrough
CT: control target
= control target key end

     0   :  { %8 = vsyncpa [#allocation3], 0  ;;  %s4301_s12 = smov [#allocation2]   ;;  %s5177_s0 = inlined_call_operand.vmem [shape: f32[16,32], index: 0, kind: input, shape index: {}]   ;;  %s5178_s1 = inlined_call_operand.vmem [shape: f32[20,32], index: 1, kind: input, shape index: {}]   ;;  %s5179_s2 = inlined_call_operand.hbm [shape: f32[168,192], index: 2, kind: input, shape index: {}]   ;;  %s5180_s3 = inlined_call_operand.vmem [shape: f32[20,128], index: 3, kind: output, shape index: {}]  }
   0x1   :  { %s18_s13 = sshll.u32 %s4301_s12, 4  ;;  %s19_s13 = int_to_ptr.vmem [resolvable:$true] %s18_s13 }
   0x2   :  { %s4287_s14 = scalar_lea.vmem %s19_s13, 5376  ;;  %p4292_p1 = scmp.lt.s32.totalorder %s19_s13, %s19_s13 }
   0x3   :  { %p4288_p0 = scmp.ne.s32.totalorder %s19_s13, %s4287_s14  ;;  %p4293_p2 = scmp.lt.s32.totalorder %s4287_s14, %s4287_s14 }
   0x5   :  { %p4294_p3 = por %p4293_p2, %p4292_p1 }
   0x7   :  { %p4295_p4 = pnand %p4294_p3, %p4288_p0 }
   0x9   :  { %4298 = shalt.err (!%p4295_p4)
}
   0xa   :  { %s4302_s15 = smov 256   ;;  %s4303_s16 = smov 16  }
   0xb   :  { %24 = dma.hbm_to_vmem [thread:$0]  %s5179_s2, 5376, %s19_s13, [#allocation3], %s4302_s15, %s4302_s15, %s4303_s16  }
   0xc   :  { %4299 = dma.done.wait [#allocation3], 5376  }
   0xd   :  { %4300 = vsyncadd [#allocation3], 4294961920  ;;  %v4304_v0 = vmov 0.0   ;;  %vm4305_vm0 = vmmov 0   ;;  %vm62_vm1 = vcmask 261120   ;;  %v45_v1 = vld [vmem:[#allocation2 + $0xb0] sm:$0xff]  ;;  %v58_v16 = vlaneseq }
   0xe   :  { %3825 = vmatprep.subr.mxu1 %v4304_v0  ;;  %3833 = vmatprep.mubr.msk.f32.mxu1 %vm4305_vm0, %v4304_v0  ;;  %v44_v2 = vld [vmem:[#allocation2 + $0xa0] sm:$0xff]  ;;  %v43_v4 = vld [vmem:[#allocation2 + $0x90] sm:$0xff]  ;;  %v57_v9 = vld [vmem:[%s5177_s0 + $0x8] sm:$0xff]  ;;  %s4306_s23 = smov 48   ;;  %s4307_s24 = smov 80   ;;  %vm385_vm2 = vcmask 130048  }
   0xf   :  { %3814 = vmatprep.subr.mxu0 %v45_v1  ;;  %v56_v3 = vld [vmem:[%s5177_s0] sm:$0xff]  ;;  %v49_v5 = vld [vmem:[#allocation2 + $0xf0] sm:$0xff]  ;;  %v4395_v17 = vshrl.u32 %v58_v16, 7  ;;  %s4308_s25 = smov 96   ;;  %s4309_s26 = smov 32   ;;  %v145_v62 = vld [vmem:[%s5178_s1 + $0x8] sm:$0xff] }
  0x10   :  { %3815 = vmatpush3.msra.mxu0 %v45_v1  ;;  %3822 = vmatprep.mubr.msk.f32.mxu0 %vm62_vm1, %v56_v3  ;;  %v48_v6 = vld [vmem:[#allocation2 + $0xe0] sm:$0xff]  ;;  %v47_v8 = vld [vmem:[#allocation2 + $0xd0] sm:$0xff]  ;;  %s4310_s27 = smov 112   ;;  %vm1575_vm3 = vcmask 654336   ;;  %vm1603_vm4 = vcmask 392192   ;;  %s4311_s8 = smov 64  }
  0x11   :  { %3816 = vmatprep.subr.mxu0 %v44_v2  ;;  %v42_v7 = vld [vmem:[#allocation2 + $0x80] sm:$0xff]  ;;  %3826 = vmatpush3.msra.mxu1 %v49_v5  ;;  %v4347_v10 = vld [vmem:[#allocation2 + $0x30] sm:$0xff]  ;;  %v60_v18 = vsub.s32 0, %v4395_v17  ;;  %v242_v23 = vsub.s32 3, %v4395_v17  ;;  %v149_v36 = vsub.s32 1, %v4395_v17 }
  0x12   :  { %3817 = vmatpush3.msra.mxu0 %v44_v2  ;;  %3827 = vmatprep.subr.mxu1 %v4304_v0  ;;  %v4352_v11 = vld [vmem:[#allocation2 + $0x20] sm:$0xff]  ;;  %v4361_v14 = vld [vmem:[#allocation2 + $0x10] sm:$0xff] }
  0x13   :  { %3818 = vmatprep.subr.mxu0 %v43_v4  ;;  %3828 = vmatpush3.msra.mxu1 %v48_v6  ;;  %v46_v12 = vld [vmem:[#allocation2 + $0xc0] sm:$0xff]  ;;  %v146_v63 = vld [vmem:[%s5178_s1 + $0x10] sm:$0xf] }
  0x14   :  { %3819 = vmatpush3.msra.mxu0 %v43_v4  ;;  %3829 = vmatprep.subr.mxu1 %v4304_v0  ;;  %v144_v13 = vld [vmem:[%s5178_s1] sm:$0xff] }
  0x15   :  { %3820 = vmatprep.subr.mxu0 %v42_v7  ;;  %3830 = vmatpush3.msra.mxu1 %v47_v8  ;;  %v4366_v15 = vld [vmem:[#allocation2] sm:$0xff] }
  0x16   :  { %3821 = vmatpush3.msra.mxu0 %v42_v7  ;;  %3831 = vmatprep.subr.mxu1 %v4304_v0  ;;  %v54_v19 = vld [vmem:[#allocation2 + $0x140] sm:$0xff] }
  0x17   :  { %3823 = vmatmul.mubr.msk.f32.vlgmr.msra.gmra.mxu0 %vm62_vm1, %v57_v9  ;;  %3842 = vmatprep.subr.mxu0 %v4304_v0  ;;  %v61_v20 = vrot.slane %v54_v19, %v60_v18  ;;  %v4403_v25 = vrot.slane %v54_v19, %v242_v23  ;;  %v4413_v37 = vrot.slane %v54_v19, %v149_v36 }
  0x18   :  { %3843 = vmatpush3.msra.mxu0 %v4347_v10  ;;  %3850 = vmatprep.mubr.msk.f32.mxu0 %vm4305_vm0, %v4304_v0 }
  0x19   :  { %3844 = vmatprep.subr.mxu0 %v4304_v0  ;;  %3832 = vmatpush3.msra.mxu1 %v46_v12 }
  0x1a   :  { %3845 = vmatpush3.msra.mxu0 %v4352_v11  ;;  %3834 = vmatmul.mubr.msk.f32.vlgmr.msra.gmra.mxu1 %vm62_vm1, %v144_v13 }
  0x1b   :  { %3846 = vmatprep.subr.mxu0 %v4304_v0  ;;  %3853 = vmatprep.subr.mxu1 %v4304_v0 }
  0x1c   :  { %3847 = vmatpush3.msra.mxu0 %v4361_v14  ;;  %3854 = vmatpush3.msra.mxu1 %v4347_v10 }
  0x1d   :  { %3848 = vmatprep.subr.mxu0 %v4304_v0  ;;  %3836 = vmatprep.mubr.msk.f32.mxu1 %vm4305_vm0, %v4304_v0 }
  0x1e   :  { %3849 = vmatpush3.msra.mxu0 %v4366_v15  ;;  %3855 = vmatprep.subr.mxu1 %v4304_v0 }
  0x1f   :  { %3851 = vmatmul.mubr.f32.vlgmr.msra.gmra.mxu0 %v4304_v0  ;;  %3856 = vmatpush3.msra.mxu1 %v4352_v11 }
  0x20   :  { %3864 = vmatprep.subr.mxu0 %v4304_v0  ;;  %3857 = vmatprep.subr.mxu1 %v4304_v0 }
  0x21   :  { %3865 = vmatpush3.msra.mxu0 %v4347_v10  ;;  %3858 = vmatpush3.msra.mxu1 %v4361_v14 }
  0x22   :  { %3866 = vmatprep.subr.mxu0 %v4304_v0  ;;  %3859 = vmatprep.subr.mxu1 %v4304_v0 }
  0x23   :  { %3867 = vmatpush3.msra.mxu0 %v4352_v11  ;;  %3860 = vmatpush3.msra.mxu1 %v4366_v15 }
  0x24   :  { %3868 = vmatprep.subr.mxu0 %v4304_v0  ;;  %3872 = vmatprep.mubr.msk.f32.mxu0 %vm4305_vm0, %v4304_v0 }
  0x25   :  { %3869 = vmatpush3.msra.mxu0 %v4361_v14  ;;  %3875 = vmatprep.subr.mxu1 %v4304_v0 }
  0x26   :  { %3870 = vmatprep.subr.mxu0 %v4304_v0  ;;  %3837 = vmatmul.mubr.msk.f32.gmra.mxu1 %vm62_vm1, %v145_v62 }
  0x27   :  { %3871 = vmatpush3.msra.mxu0 %v4366_v15  ;;  %3839 = vmatprep.mubr.msk.f32.mxu1 %vm4305_vm0, %v4304_v0 }
  0x28   :  { %3886 = vmatprep.subr.mxu0 %v4304_v0 }
  0x2a   :  { %3840 = vmatmul.mubr.msk.f32.gmra.mxu1 %vm62_vm1, %v146_v63 }
  0x2b   :  { %3861 = vmatprep.mubr.msk.f32.mxu1 %vm4305_vm0, %v4304_v0 }
  0xd7   :  { %v3824_v21 = vpop.f32.mrf.mxu0 }
  0xd8   :  { %v4398_v22 = vadd.f32 %v3824_v21, %v61_v20 }
  0xd9   :  { %v135_v26 = vpop.f32.mrf.mxu0 }
  0xda   :  { %v226_v24 = vpop.f32.mrf.mxu1  ;;  %v4409_v31 = vadd.f32 %v135_v26, %v61_v20 }
  0xdb   :  { %v4416_v38 = vadd.f32 %v226_v24, %v4413_v37 }
  0xdc   :  { %v3835_v27 = vpop.f32.mrf.mxu1 }
  0xdf   :  { %v313_v28 = vpop.f32.mrf.mxu0 }
  0xe0   :  { %v314_v29 = vadd.f32 %v313_v28, %v4403_v25 }
  0xe1   :  { %v3852_v30 = vpop.f32.mrf.mxu0 }
  0xe2   :  { %356 = vrot.lane.b32.xlu1 %v314_v29, %s4306_s23  ;;  %346 = vrot.lane.b32.xlu0 %v314_v29, %s4307_s24  ;;  %v317_v32 = vadd.f32 %v314_v29, %v4409_v31 }
  0xe4   :  { %v3632_v33 = vmul.f32 -1.442695, %v317_v32 }
  0xe6   :  { %325 = vrot.lane.b32.xlu0 %v314_v29, %s4308_s25  ;;  %4106 = vpow2.f32 %v3632_v33  ;;  %v4456_v8 = vpop.f32.mrf.mxu1 }
  0xe8   :  { %v3838_v9 = vpop.f32.mrf.mxu1 }
  0xea   :  { %v4458_v12 = vpop.f32.mrf.mxu1 }
  0xec   :  { %v3841_v13 = vpop.f32.mrf.mxu1 }
  0xf3   :  { %v4107_v34 = vpop.eup %4106 }
  0xf4   :  { %v321_v35 = vadd.f32 1.0, %v4107_v34 }
  0xf6   :  { %4108 = vrcp.f32 %v321_v35 }
 0x103   :  { %v4109_v42 = vpop.eup %4108 }
 0x154   :  { %v347_v39 = vpop.permute.xlu0 %346  ;;  %v357_v48 = vpop.permute.xlu1 %356 }
 0x155   :  { %v349_v40 = vadd.f32 %v347_v39, %v4416_v38 }
 0x157   :  { %v3633_v41 = vmul.f32 -1.442695, %v349_v40 }
 0x158   :  { %v326_v43 = vpop.permute.xlu0 %325 }
 0x159   :  { %4110 = vpow2.f32 %v3633_v41  ;;  %v328_v44 = vmul.f32 %v4109_v42, %v326_v43 }
 0x15b   :  { %330 = vrot.lane.b32.xlu1 %v328_v44, %s4309_s26 }
 0x166   :  { %v4111_v45 = vpop.eup %4110 }
 0x167   :  { %v353_v46 = vadd.f32 1.0, %v4111_v45 }
 0x169   :  { %4112 = vrcp.f32 %v353_v46 }
 0x176   :  { %v4113_v47 = vpop.eup %4112 }
 0x177   :  { %v359_v49 = vmul.f32 %v4113_v47, %v357_v48 }
 0x179   :  { %361 = vrot.lane.b32.xlu0 %v359_v49, %s4309_s26 }
 0x1cd   :  { %v331_v50 = vpop.permute.xlu1 %330 }
 0x1ce   :  { %v333_v51 = vadd.f32 %v331_v50, %v4409_v31 }
 0x1d0   :  { %4114 = vtanh.f32 %v333_v51 }
 0x1dd   :  { %v4115_v52 = vpop.eup %4114 }
 0x1de   :  { %v335_v53 = vsub.f32 0.0, %v4115_v52 }
 0x1e0   :  { %337 = vrot.lane.b32.xlu1 %v335_v53, %s4310_s27 }
 0x1eb   :  { %v362_v54 = vpop.permute.xlu0 %361 }
 0x1ec   :  { %v364_v55 = vadd.f32 %v362_v54, %v4416_v38 }
 0x1ee   :  { %4116 = vtanh.f32 %v364_v55 }
 0x1fb   :  { %v4117_v56 = vpop.eup %4116 }
 0x1fc   :  { %v366_v57 = vsub.f32 0.0, %v4117_v56 }
 0x1fe   :  { %368 = vrot.lane.b32.xlu0 %v366_v57, %s4310_s27 }
 0x252   :  { %v338_v58 = vpop.permute.xlu1 %337 }
 0x253   :  { %v340_v59 = vmul.f32 %v4109_v42, %v338_v58 }
 0x255   :  { %342 = vrot.lane.b32.xlu1 %v340_v59, %s4303_s16 }
 0x270   :  { %v369_v60 = vpop.permute.xlu0 %368 }
 0x271   :  { %v371_v61 = vmul.f32 %v4113_v47, %v369_v60 }
 0x273   :  { %373 = vrot.lane.b32.xlu0 %v371_v61, %s4303_s16 }
 0x2c7   :  { %v343_v1 = vpop.permute.xlu1 %342 }
 0x2c8   :  { %v345_v2 = vadd.f32 %v4115_v52, %v343_v1 }
 0x2ca   :  { %378 = vrot.lane.b32.xlu1 %v345_v2, %s4308_s25 }
 0x2e5   :  { %v374_v3 = vpop.permute.xlu0 %373 }
 0x2e6   :  { %v4440_v4 = vadd.f32 %v4117_v56, %v374_v3 }
 0x2e8   :  { %382 = vrot.lane.b32.xlu0 %v4440_v4, %s4310_s27 }
 0x33c   :  { %v379_v5 = vpop.permute.xlu1 %378 }
 0x35a   :  { %v383_v6 = vpop.permute.xlu0 %382 }
 0x35b   :  { %v386_v7 = vsel %vm385_vm2, %v379_v5, %v383_v6 }
 0x35c   :  { %3862 = vmatmul.mubr.msk.f32.vlgmr.msra.gmra.mxu1 %vm62_vm1, %v386_v7 }
 0x35d   :  { %3876 = vmatpush3.msra.mxu1 %v4347_v10  ;;  %3883 = vmatprep.mubr.msk.f32.mxu1 %vm4305_vm0, %v4304_v0 }
 0x35e   :  { %3877 = vmatprep.subr.mxu1 %v4304_v0 }
 0x35f   :  { %3878 = vmatpush3.msra.mxu1 %v4352_v11 }
 0x360   :  { %3879 = vmatprep.subr.mxu1 %v4304_v0 }
 0x361   :  { %3880 = vmatpush3.msra.mxu1 %v4361_v14 }
 0x362   :  { %3881 = vmatprep.subr.mxu1 %v4304_v0 }
 0x363   :  { %3882 = vmatpush3.msra.mxu1 %v4366_v15 }
 0x364   :  { %3897 = vmatprep.subr.mxu1 %v4304_v0 }
 0x41c   :  { %v456_v16 = vpop.f32.mrf.mxu1 }
 0x41d   :  { %v457_v18 = vadd.f32 %v456_v16, %v4403_v25 }
 0x41e   :  { %v3863_v19 = vpop.f32.mrf.mxu1 }
 0x41f   :  { %v461_v20 = vrot.slane %v457_v18, 6 }
 0x421   :  { %470 = vrot.lane.b32.xlu0 %v461_v20, %s4308_s25  ;;  %495 = vrot.lane.b32.xlu1 %v461_v20, %s4307_s24  ;;  %v463_v21 = vadd.f32 %v461_v20, %v4409_v31 }
 0x423   :  { %v3635_v24 = vmul.f32 -1.442695, %v463_v21 }
 0x425   :  { %505 = vrot.lane.b32.xlu1 %v461_v20, %s4306_s23  ;;  %4118 = vpow2.f32 %v3635_v24 }
 0x432   :  { %v4119_v26 = vpop.eup %4118 }
 0x433   :  { %v467_v27 = vadd.f32 1.0, %v4119_v26 }
 0x435   :  { %4120 = vrcp.f32 %v467_v27 }
 0x442   :  { %v4121_v28 = vpop.eup %4120 }
 0x493   :  { %v471_v29 = vpop.permute.xlu0 %470  ;;  %v496_v30 = vpop.permute.xlu1 %495 }
 0x494   :  { %v473_v32 = vmul.f32 %v4121_v28, %v471_v29  ;;  %v498_v33 = vadd.f32 %v496_v30, %v4416_v38 }
 0x496   :  { %v3636_v34 = vmul.f32 -1.442695, %v498_v33  ;;  %475 = vrot.lane.b32.xlu0 %v473_v32, %s4309_s26 }
 0x497   :  { %v506_v40 = vpop.permute.xlu1 %505 }
 0x498   :  { %4122 = vpow2.f32 %v3636_v34 }
 0x4a5   :  { %v4123_v35 = vpop.eup %4122 }
 0x4a6   :  { %v502_v36 = vadd.f32 1.0, %v4123_v35 }
 0x4a8   :  { %4124 = vrcp.f32 %v502_v36 }
 0x4b5   :  { %v4125_v39 = vpop.eup %4124 }
 0x4b6   :  { %v508_v41 = vmul.f32 %v4125_v39, %v506_v40 }
 0x4b8   :  { %510 = vrot.lane.b32.xlu1 %v508_v41, %s4309_s26 }
 0x508   :  { %v476_v42 = vpop.permute.xlu0 %475 }
 0x509   :  { %v478_v43 = vadd.f32 %v476_v42, %v4409_v31 }
 0x50b   :  { %4126 = vtanh.f32 %v478_v43 }
 0x518   :  { %v4127_v44 = vpop.eup %4126 }
 0x519   :  { %v481_v45 = vrot.slane %v4127_v44, 2 }
 0x51b   :  { %v483_v46 = vsub.f32 %v345_v2, %v481_v45 }
 0x51d   :  { %v485_v47 = vrot.slane %v483_v46, 6 }
 0x51f   :  { %486 = vrot.lane.b32.xlu0 %v485_v47, %s4310_s27 }
 0x52a   :  { %v511_v48 = vpop.permute.xlu1 %510 }
 0x52b   :  { %v513_v49 = vadd.f32 %v511_v48, %v4416_v38 }
 0x52d   :  { %4128 = vtanh.f32 %v513_v49 }
 0x53a   :  { %v4129_v50 = vpop.eup %4128 }
 0x53b   :  { %v516_v51 = vrot.slane %v4129_v50, 2 }
 0x53d   :  { %v518_v52 = vsub.f32 %v4440_v4, %v516_v51 }
 0x53f   :  { %v520_v53 = vrot.slane %v518_v52, 6 }
 0x541   :  { %521 = vrot.lane.b32.xlu1 %v520_v53, %s4310_s27 }
 0x591   :  { %v487_v54 = vpop.permute.xlu0 %486 }
 0x592   :  { %v489_v55 = vmul.f32 %v4121_v28, %v487_v54 }
 0x594   :  { %491 = vrot.lane.b32.xlu0 %v489_v55, %s4303_s16 }
 0x5b3   :  { %v522_v56 = vpop.permute.xlu1 %521 }
 0x5b4   :  { %v524_v57 = vmul.f32 %v4125_v39, %v522_v56 }
 0x5b6   :  { %526 = vrot.lane.b32.xlu1 %v524_v57, %s4303_s16 }
 0x606   :  { %v492_v58 = vpop.permute.xlu0 %491 }
 0x607   :  { %v494_v59 = vadd.f32 %v4127_v44, %v492_v58 }
 0x609   :  { %531 = vrot.lane.b32.xlu0 %v494_v59, %s4308_s25 }
 0x628   :  { %v527_v60 = vpop.permute.xlu1 %526 }
 0x629   :  { %v4476_v61 = vadd.f32 %v4129_v50, %v527_v60 }
 0x62b   :  { %535 = vrot.lane.b32.xlu1 %v4476_v61, %s4310_s27 }
 0x67b   :  { %v532_v62 = vpop.permute.xlu0 %531 }
 0x69d   :  { %v536_v63 = vpop.permute.xlu1 %535 }
 0x69e   :  { %v538_v1 = vsel %vm385_vm2, %v532_v62, %v536_v63 }
 0x69f   :  { %v540_v2 = vrot.slane %v538_v1, 2 }
 0x6a1   :  { %3873 = vmatmul.mubr.msk.f32.vlgmr.msra.gmra.mxu0 %vm62_vm1, %v540_v2 }
 0x6a2   :  { %3887 = vmatpush3.msra.mxu0 %v4347_v10  ;;  %3894 = vmatprep.mubr.msk.f32.mxu0 %vm4305_vm0, %v4304_v0 }
 0x6a3   :  { %3888 = vmatprep.subr.mxu0 %v4304_v0 }
 0x6a4   :  { %3889 = vmatpush3.msra.mxu0 %v4352_v11 }
 0x6a5   :  { %3890 = vmatprep.subr.mxu0 %v4304_v0 }
 0x6a6   :  { %3891 = vmatpush3.msra.mxu0 %v4361_v14 }
 0x6a7   :  { %3892 = vmatprep.subr.mxu0 %v4304_v0 }
 0x6a8   :  { %3893 = vmatpush3.msra.mxu0 %v4366_v15 }
 0x6a9   :  { %3908 = vmatprep.subr.mxu0 %v4304_v0 }
 0x761   :  { %v609_v3 = vpop.f32.mrf.mxu0 }
 0x762   :  { %v610_v5 = vadd.f32 %v609_v3, %v4403_v25 }
 0x763   :  { %v3874_v6 = vpop.f32.mrf.mxu0 }
 0x764   :  { %v614_v7 = vrot.slane %v610_v5, 4 }
 0x766   :  { %623 = vrot.lane.b32.xlu1 %v614_v7, %s4308_s25  ;;  %648 = vrot.lane.b32.xlu0 %v614_v7, %s4307_s24  ;;  %v616_v9 = vadd.f32 %v614_v7, %v4409_v31 }
 0x768   :  { %v3638_v13 = vmul.f32 -1.442695, %v616_v9 }
 0x76a   :  { %658 = vrot.lane.b32.xlu0 %v614_v7, %s4306_s23  ;;  %4130 = vpow2.f32 %v3638_v13 }
 0x777   :  { %v4131_v16 = vpop.eup %4130 }
 0x778   :  { %v620_v18 = vadd.f32 1.0, %v4131_v16 }
 0x77a   :  { %4132 = vrcp.f32 %v620_v18 }
 0x787   :  { %v4133_v19 = vpop.eup %4132 }
 0x7d8   :  { %v624_v20 = vpop.permute.xlu1 %623  ;;  %v649_v21 = vpop.permute.xlu0 %648 }
 0x7d9   :  { %v626_v24 = vmul.f32 %v4133_v19, %v624_v20  ;;  %v651_v26 = vadd.f32 %v649_v21, %v4416_v38 }
 0x7db   :  { %v3639_v27 = vmul.f32 -1.442695, %v651_v26  ;;  %628 = vrot.lane.b32.xlu1 %v626_v24, %s4309_s26 }
 0x7dc   :  { %v659_v32 = vpop.permute.xlu0 %658 }
 0x7dd   :  { %4134 = vpow2.f32 %v3639_v27 }
 0x7ea   :  { %v4135_v28 = vpop.eup %4134 }
 0x7eb   :  { %v655_v29 = vadd.f32 1.0, %v4135_v28 }
 0x7ed   :  { %4136 = vrcp.f32 %v655_v29 }
 0x7fa   :  { %v4137_v30 = vpop.eup %4136 }
 0x7fb   :  { %v661_v33 = vmul.f32 %v4137_v30, %v659_v32 }
 0x7fd   :  { %663 = vrot.lane.b32.xlu0 %v661_v33, %s4309_s26 }
 0x84d   :  { %v629_v34 = vpop.permute.xlu1 %628 }
 0x84e   :  { %v631_v35 = vadd.f32 %v629_v34, %v4409_v31 }
 0x850   :  { %4138 = vtanh.f32 %v631_v35 }
 0x85d   :  { %v4139_v36 = vpop.eup %4138 }
 0x85e   :  { %v634_v39 = vrot.slane %v4139_v36, 2 }
 0x860   :  { %v636_v40 = vsub.f32 %v494_v59, %v634_v39 }
 0x862   :  { %v638_v41 = vrot.slane %v636_v40, 6 }
 0x864   :  { %639 = vrot.lane.b32.xlu1 %v638_v41, %s4310_s27 }
 0x86f   :  { %v664_v42 = vpop.permute.xlu0 %663 }
 0x870   :  { %v666_v43 = vadd.f32 %v664_v42, %v4416_v38 }
 0x872   :  { %4140 = vtanh.f32 %v666_v43 }
 0x87f   :  { %v4141_v44 = vpop.eup %4140 }
 0x880   :  { %v669_v45 = vrot.slane %v4141_v44, 2 }
 0x882   :  { %v671_v46 = vsub.f32 %v4476_v61, %v669_v45 }
 0x884   :  { %v673_v47 = vrot.slane %v671_v46, 6 }
 0x886   :  { %674 = vrot.lane.b32.xlu0 %v673_v47, %s4310_s27 }
 0x8d6   :  { %v640_v48 = vpop.permute.xlu1 %639 }
 0x8d7   :  { %v642_v49 = vmul.f32 %v4133_v19, %v640_v48 }
 0x8d9   :  { %644 = vrot.lane.b32.xlu1 %v642_v49, %s4303_s16 }
 0x8f8   :  { %v675_v50 = vpop.permute.xlu0 %674 }
 0x8f9   :  { %v677_v51 = vmul.f32 %v4137_v30, %v675_v50 }
 0x8fb   :  { %679 = vrot.lane.b32.xlu0 %v677_v51, %s4303_s16 }
 0x94b   :  { %v645_v52 = vpop.permute.xlu1 %644 }
 0x94c   :  { %v647_v53 = vadd.f32 %v4139_v36, %v645_v52 }
 0x94e   :  { %684 = vrot.lane.b32.xlu1 %v647_v53, %s4308_s25 }
 0x96d   :  { %v680_v54 = vpop.permute.xlu0 %679 }
 0x96e   :  { %v4508_v55 = vadd.f32 %v4141_v44, %v680_v54 }
 0x970   :  { %688 = vrot.lane.b32.xlu0 %v4508_v55, %s4310_s27 }
 0x9c0   :  { %v685_v56 = vpop.permute.xlu1 %684 }
 0x9e2   :  { %v689_v57 = vpop.permute.xlu0 %688 }
 0x9e3   :  { %v691_v58 = vsel %vm385_vm2, %v685_v56, %v689_v57 }
 0x9e4   :  { %v693_v59 = vrot.slane %v691_v58, 4 }
 0x9e6   :  { %3884 = vmatmul.mubr.msk.f32.vlgmr.msra.gmra.mxu1 %vm62_vm1, %v693_v59 }
 0x9e7   :  { %3898 = vmatpush3.msra.mxu1 %v4347_v10  ;;  %3905 = vmatprep.mubr.msk.f32.mxu1 %vm4305_vm0, %v4304_v0 }
 0x9e8   :  { %3899 = vmatprep.subr.mxu1 %v4304_v0 }
 0x9e9   :  { %3900 = vmatpush3.msra.mxu1 %v4352_v11 }
 0x9ea   :  { %3901 = vmatprep.subr.mxu1 %v4304_v0 }
 0x9eb   :  { %3902 = vmatpush3.msra.mxu1 %v4361_v14 }
 0x9ec   :  { %3903 = vmatprep.subr.mxu1 %v4304_v0 }
 0x9ed   :  { %3904 = vmatpush3.msra.mxu1 %v4366_v15 }
 0x9ee   :  { %3919 = vmatprep.subr.mxu1 %v4304_v0 }
 0xaa6   :  { %v762_v60 = vpop.f32.mrf.mxu1 }
 0xaa7   :  { %v763_v62 = vadd.f32 %v762_v60, %v4403_v25 }
 0xaa8   :  { %v3885_v63 = vpop.f32.mrf.mxu1 }
 0xaa9   :  { %v767_v1 = vrot.slane %v763_v62, 2  ;;  %v4563_v63 = vadd.f32 %v4456_v8, %v4413_v37 }
 0xaab   :  { %776 = vrot.lane.b32.xlu0 %v767_v1, %s4308_s25  ;;  %801 = vrot.lane.b32.xlu1 %v767_v1, %s4307_s24  ;;  %v769_v2 = vadd.f32 %v767_v1, %v4409_v31 }
 0xaad   :  { %v3641_v3 = vmul.f32 -1.442695, %v769_v2 }
 0xaaf   :  { %811 = vrot.lane.b32.xlu1 %v767_v1, %s4306_s23  ;;  %4142 = vpow2.f32 %v3641_v3 }
 0xabc   :  { %v4143_v5 = vpop.eup %4142 }
 0xabd   :  { %v773_v6 = vadd.f32 1.0, %v4143_v5 }
 0xabf   :  { %4144 = vrcp.f32 %v773_v6 }
 0xacc   :  { %v4145_v7 = vpop.eup %4144 }
 0xb1d   :  { %v777_v9 = vpop.permute.xlu0 %776  ;;  %v802_v13 = vpop.permute.xlu1 %801 }
 0xb1e   :  { %v779_v16 = vmul.f32 %v4145_v7, %v777_v9  ;;  %v804_v18 = vadd.f32 %v802_v13, %v4416_v38 }
 0xb20   :  { %v3642_v19 = vmul.f32 -1.442695, %v804_v18  ;;  %781 = vrot.lane.b32.xlu0 %v779_v16, %s4309_s26 }
 0xb21   :  { %v812_v26 = vpop.permute.xlu1 %811 }
 0xb22   :  { %4146 = vpow2.f32 %v3642_v19 }
 0xb2f   :  { %v4147_v20 = vpop.eup %4146 }
 0xb30   :  { %v808_v21 = vadd.f32 1.0, %v4147_v20 }
 0xb32   :  { %4148 = vrcp.f32 %v808_v21 }
 0xb3f   :  { %v4149_v24 = vpop.eup %4148 }
 0xb40   :  { %v814_v27 = vmul.f32 %v4149_v24, %v812_v26 }
 0xb42   :  { %816 = vrot.lane.b32.xlu1 %v814_v27, %s4309_s26 }
 0xb92   :  { %v782_v28 = vpop.permute.xlu0 %781 }
 0xb93   :  { %v784_v29 = vadd.f32 %v782_v28, %v4409_v31 }
 0xb95   :  { %4150 = vtanh.f32 %v784_v29 }
 0xba2   :  { %v4151_v30 = vpop.eup %4150 }
 0xba3   :  { %v787_v32 = vrot.slane %v4151_v30, 2 }
 0xba5   :  { %v789_v33 = vsub.f32 %v647_v53, %v787_v32 }
 0xba7   :  { %v791_v34 = vrot.slane %v789_v33, 6 }
 0xba9   :  { %792 = vrot.lane.b32.xlu0 %v791_v34, %s4310_s27 }
 0xbb4   :  { %v817_v35 = vpop.permute.xlu1 %816 }
 0xbb5   :  { %v819_v36 = vadd.f32 %v817_v35, %v4416_v38 }
 0xbb7   :  { %4152 = vtanh.f32 %v819_v36 }
 0xbc4   :  { %v4153_v39 = vpop.eup %4152 }
 0xbc5   :  { %v822_v40 = vrot.slane %v4153_v39, 2 }
 0xbc7   :  { %v824_v41 = vsub.f32 %v4508_v55, %v822_v40 }
 0xbc9   :  { %v826_v42 = vrot.slane %v824_v41, 6 }
 0xbcb   :  { %827 = vrot.lane.b32.xlu1 %v826_v42, %s4310_s27 }
 0xc1b   :  { %v793_v43 = vpop.permute.xlu0 %792 }
 0xc1c   :  { %v795_v31 = vmul.f32 %v4145_v7, %v793_v43 }
 0xc1e   :  { %797 = vrot.lane.b32.xlu0 %v795_v31, %s4303_s16 }
 0xc3d   :  { %v828_v44 = vpop.permute.xlu1 %827 }
 0xc3e   :  { %v830_v45 = vmul.f32 %v4149_v24, %v828_v44 }
 0xc40   :  { %832 = vrot.lane.b32.xlu1 %v830_v45, %s4303_s16 }
 0xc90   :  { %v798_v46 = vpop.permute.xlu0 %797 }
 0xc91   :  { %v800_v47 = vadd.f32 %v4151_v30, %v798_v46 }
 0xc93   :  { %837 = vrot.lane.b32.xlu0 %v800_v47, %s4308_s25 }
 0xcb2   :  { %v833_v48 = vpop.permute.xlu1 %832 }
 0xcb3   :  { %v4540_v49 = vadd.f32 %v4153_v39, %v833_v48 }
 0xcb5   :  { %841 = vrot.lane.b32.xlu1 %v4540_v49, %s4310_s27 }
 0xd05   :  { %v838_v50 = vpop.permute.xlu0 %837 }
 0xd27   :  { %v842_v51 = vpop.permute.xlu1 %841 }
 0xd28   :  { %v844_v52 = vsel %vm385_vm2, %v838_v50, %v842_v51 }
 0xd29   :  { %v846_v53 = vrot.slane %v844_v52, 6 }
 0xd2b   :  { %3895 = vmatmul.mubr.msk.f32.vlgmr.msra.gmra.mxu0 %vm62_vm1, %v846_v53 }
 0xd2c   :  { %3909 = vmatpush3.msra.mxu0 %v4347_v10  ;;  %3916 = vmatprep.mubr.msk.f32.mxu0 %vm4305_vm0, %v4304_v0 }
 0xd2d   :  { %3910 = vmatprep.subr.mxu0 %v4304_v0 }
 0xd2e   :  { %3911 = vmatpush3.msra.mxu0 %v4352_v11 }
 0xd2f   :  { %3912 = vmatprep.subr.mxu0 %v4304_v0 }
 0xd30   :  { %3913 = vmatpush3.msra.mxu0 %v4361_v14 }
 0xd31   :  { %3914 = vmatprep.subr.mxu0 %v4304_v0 }
 0xd32   :  { %3915 = vmatpush3.msra.mxu0 %v4366_v15 }
 0xd33   :  { %3930 = vmatprep.subr.mxu0 %v4304_v0 }
 0xdeb   :  { %v915_v54 = vpop.f32.mrf.mxu0 }
 0xdec   :  { %v916_v56 = vadd.f32 %v915_v54, %v4403_v25 }
 0xded   :  { %v3896_v57 = vpop.f32.mrf.mxu0 }
 0xdee   :  { %927 = vrot.lane.b32.xlu1 %v916_v56, %s4308_s25  ;;  %952 = vrot.lane.b32.xlu0 %v916_v56, %s4307_s24  ;;  %v919_v58 = vadd.f32 %v916_v56, %v4398_v22 }
 0xdf0   :  { %v3644_v59 = vmul.f32 -1.442695, %v919_v58 }
 0xdf2   :  { %962 = vrot.lane.b32.xlu0 %v916_v56, %s4306_s23  ;;  %4154 = vpow2.f32 %v3644_v59 }
 0xdff   :  { %v4155_v60 = vpop.eup %4154 }
 0xe00   :  { %v923_v62 = vadd.f32 1.0, %v4155_v60 }
 0xe02   :  { %4156 = vrcp.f32 %v923_v62 }
 0xe0f   :  { %v4157_v1 = vpop.eup %4156 }
 0xe60   :  { %v928_v2 = vpop.permute.xlu1 %927  ;;  %v953_v3 = vpop.permute.xlu0 %952 }
 0xe61   :  { %v930_v5 = vmul.f32 %v4157_v1, %v928_v2  ;;  %v955_v6 = vadd.f32 %v953_v3, %v4563_v63 }
 0xe63   :  { %v3645_v7 = vmul.f32 -1.442695, %v955_v6  ;;  %932 = vrot.lane.b32.xlu1 %v930_v5, %s4309_s26 }
 0xe64   :  { %v963_v18 = vpop.permute.xlu0 %962 }
 0xe65   :  { %4158 = vpow2.f32 %v3645_v7 }
 0xe72   :  { %v4159_v9 = vpop.eup %4158 }
 0xe73   :  { %v959_v13 = vadd.f32 1.0, %v4159_v9 }
 0xe75   :  { %4160 = vrcp.f32 %v959_v13 }
 0xe82   :  { %v4161_v16 = vpop.eup %4160 }
 0xe83   :  { %v965_v19 = vmul.f32 %v4161_v16, %v963_v18 }
 0xe85   :  { %967 = vrot.lane.b32.xlu0 %v965_v19, %s4309_s26 }
 0xed5   :  { %v933_v8 = vpop.permute.xlu1 %932 }
 0xed6   :  { %v935_v20 = vadd.f32 %v933_v8, %v4398_v22 }
 0xed8   :  { %4162 = vtanh.f32 %v935_v20 }
 0xee5   :  { %v4163_v21 = vpop.eup %4162 }
 0xee6   :  { %v938_v24 = vrot.slane %v4163_v21, 2 }
 0xee8   :  { %v940_v26 = vsub.f32 %v800_v47, %v938_v24 }
 0xeea   :  { %v942_v27 = vrot.slane %v940_v26, 6 }
 0xeec   :  { %943 = vrot.lane.b32.xlu1 %v942_v27, %s4310_s27 }
 0xef7   :  { %v968_v28 = vpop.permute.xlu0 %967 }
 0xef8   :  { %v970_v29 = vadd.f32 %v968_v28, %v4563_v63 }
 0xefa   :  { %4164 = vtanh.f32 %v970_v29 }
 0xf07   :  { %v4165_v30 = vpop.eup %4164 }
 0xf08   :  { %v973_v32 = vrot.slane %v4165_v30, 2 }
 0xf0a   :  { %v975_v33 = vsub.f32 %v4540_v49, %v973_v32 }
 0xf0c   :  { %v977_v34 = vrot.slane %v975_v33, 6 }
 0xf0e   :  { %978 = vrot.lane.b32.xlu0 %v977_v34, %s4310_s27 }
 0xf5e   :  { %v944_v35 = vpop.permute.xlu1 %943 }
 0xf5f   :  { %v946_v36 = vmul.f32 %v4157_v1, %v944_v35 }
 0xf61   :  { %948 = vrot.lane.b32.xlu1 %v946_v36, %s4303_s16 }
 0xf80   :  { %v979_v39 = vpop.permute.xlu0 %978 }
 0xf81   :  { %v981_v40 = vmul.f32 %v4161_v16, %v979_v39 }
 0xf83   :  { %983 = vrot.lane.b32.xlu0 %v981_v40, %s4303_s16 }
 0xfd3   :  { %v949_v41 = vpop.permute.xlu1 %948 }
 0xfd4   :  { %v951_v42 = vadd.f32 %v4163_v21, %v949_v41 }
 0xfd6   :  { %988 = vrot.lane.b32.xlu1 %v951_v42, %s4308_s25 }
 0xff5   :  { %v984_v43 = vpop.permute.xlu0 %983 }
 0xff6   :  { %v986_v31 = vadd.f32 %v4165_v30, %v984_v43 }
 0xff8   :  { %992 = vrot.lane.b32.xlu0 %v986_v31, %s4310_s27 }
0x1048   :  { %v989_v44 = vpop.permute.xlu1 %988 }
0x106a   :  { %v4577_v45 = vpop.permute.xlu0 %992 }
0x106b   :  { %v995_v46 = vsel %vm385_vm2, %v989_v44, %v4577_v45 }
0x106c   :  { %3906 = vmatmul.mubr.msk.f32.vlgmr.msra.gmra.mxu1 %vm62_vm1, %v995_v46 }
0x106d   :  { %3920 = vmatpush3.msra.mxu1 %v4347_v10  ;;  %3927 = vmatprep.mubr.msk.f32.mxu1 %vm4305_vm0, %v4304_v0 }
0x106e   :  { %3921 = vmatprep.subr.mxu1 %v4304_v0 }
0x106f   :  { %3922 = vmatpush3.msra.mxu1 %v4352_v11 }
0x1070   :  { %3923 = vmatprep.subr.mxu1 %v4304_v0 }
0x1071   :  { %3924 = vmatpush3.msra.mxu1 %v4361_v14 }
0x1072   :  { %3925 = vmatprep.subr.mxu1 %v4304_v0 }
0x1073   :  { %3926 = vmatpush3.msra.mxu1 %v4366_v15 }
0x1074   :  { %3937 = vmatprep.subr.mxu1 %v4304_v0 }
0x112c   :  { %v1065_v47 = vpop.f32.mrf.mxu1 }
0x112d   :  { %v1066_v10 = vadd.f32 %v1065_v47, %v4403_v25 }
0x112e   :  { %v3907_v48 = vpop.f32.mrf.mxu1 }
0x112f   :  { %v1070_v50 = vrot.slane %v1066_v10, 6 }
0x1131   :  { %1079 = vrot.lane.b32.xlu0 %v1070_v50, %s4308_s25  ;;  %1104 = vrot.lane.b32.xlu1 %v1070_v50, %s4307_s24  ;;  %v1072_v11 = vadd.f32 %v1070_v50, %v4398_v22 }
0x1133   :  { %v3647_v14 = vmul.f32 -1.442695, %v1072_v11 }
0x1135   :  { %1114 = vrot.lane.b32.xlu1 %v1070_v50, %s4306_s23  ;;  %4166 = vpow2.f32 %v3647_v14 }
0x1142   :  { %v4167_v51 = vpop.eup %4166 }
0x1143   :  { %v1076_v52 = vadd.f32 1.0, %v4167_v51 }
0x1145   :  { %4168 = vrcp.f32 %v1076_v52 }
0x1152   :  { %v4169_v15 = vpop.eup %4168 }
0x11a3   :  { %v1080_v53 = vpop.permute.xlu0 %1079  ;;  %v1105_v54 = vpop.permute.xlu1 %1104 }
0x11a4   :  { %v1082_v56 = vmul.f32 %v4169_v15, %v1080_v53  ;;  %v1107_v57 = vadd.f32 %v1105_v54, %v4563_v63 }
0x11a6   :  { %v3648_v58 = vmul.f32 -1.442695, %v1107_v57  ;;  %1084 = vrot.lane.b32.xlu0 %v1082_v56, %s4309_s26 }
0x11a7   :  { %v1115_v1 = vpop.permute.xlu1 %1114 }
0x11a8   :  { %4170 = vpow2.f32 %v3648_v58 }
0x11b5   :  { %v4171_v59 = vpop.eup %4170 }
0x11b6   :  { %v1111_v60 = vadd.f32 1.0, %v4171_v59 }
0x11b8   :  { %4172 = vrcp.f32 %v1111_v60 }
0x11c5   :  { %v4173_v62 = vpop.eup %4172 }
0x11c6   :  { %v1117_v2 = vmul.f32 %v4173_v62, %v1115_v1 }
0x11c8   :  { %1119 = vrot.lane.b32.xlu1 %v1117_v2, %s4309_s26 }
0x1218   :  { %v1085_v3 = vpop.permute.xlu0 %1084 }
0x1219   :  { %v1087_v5 = vadd.f32 %v1085_v3, %v4398_v22 }
0x121b   :  { %4174 = vtanh.f32 %v1087_v5 }
0x1228   :  { %v4175_v6 = vpop.eup %4174 }
0x1229   :  { %v1090_v7 = vrot.slane %v4175_v6, 2 }
0x122b   :  { %v1092_v9 = vsub.f32 %v951_v42, %v1090_v7 }
0x122d   :  { %v1094_v13 = vrot.slane %v1092_v9, 6 }
0x122f   :  { %1095 = vrot.lane.b32.xlu0 %v1094_v13, %s4310_s27 }
0x123a   :  { %v1120_v16 = vpop.permute.xlu1 %1119 }
0x123b   :  { %v1122_v18 = vadd.f32 %v1120_v16, %v4563_v63 }
0x123d   :  { %4176 = vtanh.f32 %v1122_v18 }
0x124a   :  { %v4177_v19 = vpop.eup %4176 }
0x124b   :  { %v1125_v8 = vrot.slane %v4177_v19, 2 }
0x124d   :  { %v1127_v20 = vsub.f32 %v986_v31, %v1125_v8 }
0x124f   :  { %v1129_v21 = vrot.slane %v1127_v20, 6 }
0x1251   :  { %1130 = vrot.lane.b32.xlu1 %v1129_v21, %s4310_s27 }
0x12a1   :  { %v1096_v24 = vpop.permute.xlu0 %1095 }
0x12a2   :  { %v1098_v26 = vmul.f32 %v4169_v15, %v1096_v24 }
0x12a4   :  { %1100 = vrot.lane.b32.xlu0 %v1098_v26, %s4303_s16 }
0x12c3   :  { %v1131_v27 = vpop.permute.xlu1 %1130 }
0x12c4   :  { %v1133_v28 = vmul.f32 %v4173_v62, %v1131_v27 }
0x12c6   :  { %1135 = vrot.lane.b32.xlu1 %v1133_v28, %s4303_s16 }
0x1316   :  { %v1101_v29 = vpop.permute.xlu0 %1100 }
0x1317   :  { %v1103_v30 = vadd.f32 %v4175_v6, %v1101_v29 }
0x1319   :  { %1140 = vrot.lane.b32.xlu0 %v1103_v30, %s4308_s25 }
0x1338   :  { %v1136_v32 = vpop.permute.xlu1 %1135 }
0x1339   :  { %v4607_v33 = vadd.f32 %v4177_v19, %v1136_v32 }
0x133b   :  { %1144 = vrot.lane.b32.xlu1 %v4607_v33, %s4310_s27 }
0x138b   :  { %v1141_v34 = vpop.permute.xlu0 %1140 }
0x13ad   :  { %v1145_v35 = vpop.permute.xlu1 %1144 }
0x13ae   :  { %v1147_v36 = vsel %vm385_vm2, %v1141_v34, %v1145_v35 }
0x13af   :  { %v1149_v39 = vrot.slane %v1147_v36, 2 }
0x13b1   :  { %3917 = vmatmul.mubr.msk.f32.vlgmr.msra.gmra.mxu0 %vm62_vm1, %v1149_v39 }
0x13b2   :  { %3934 = vmatprep.mubr.msk.f32.mxu0 %vm4305_vm0, %v4304_v0 }
0x1471   :  { %v1218_v40 = vpop.f32.mrf.mxu0 }
0x1472   :  { %v1219_v41 = vadd.f32 %v1218_v40, %v4403_v25 }
0x1473   :  { %v3918_v42 = vpop.f32.mrf.mxu0 }
0x1474   :  { %v1223_v43 = vrot.slane %v1219_v41, 4 }
0x1476   :  { %1232 = vrot.lane.b32.xlu1 %v1223_v43, %s4308_s25  ;;  %1257 = vrot.lane.b32.xlu0 %v1223_v43, %s4307_s24  ;;  %v1225_v31 = vadd.f32 %v1223_v43, %v4398_v22 }
0x1478   :  { %v3650_v44 = vmul.f32 -1.442695, %v1225_v31 }
0x147a   :  { %1267 = vrot.lane.b32.xlu0 %v1223_v43, %s4306_s23  ;;  %4178 = vpow2.f32 %v3650_v44 }
0x1487   :  { %v4179_v46 = vpop.eup %4178 }
0x1488   :  { %v1229_v47 = vadd.f32 1.0, %v4179_v46 }
0x148a   :  { %4180 = vrcp.f32 %v1229_v47 }
0x1497   :  { %v4181_v10 = vpop.eup %4180 }
0x14e8   :  { %v1233_v48 = vpop.permute.xlu1 %1232  ;;  %v1258_v50 = vpop.permute.xlu0 %1257 }
0x14e9   :  { %v1235_v11 = vmul.f32 %v4181_v10, %v1233_v48  ;;  %v1260_v14 = vadd.f32 %v1258_v50, %v4563_v63 }
0x14eb   :  { %v3651_v51 = vmul.f32 -1.442695, %v1260_v14  ;;  %1237 = vrot.lane.b32.xlu1 %v1235_v11, %s4309_s26 }
0x14ec   :  { %v1268_v54 = vpop.permute.xlu0 %1267 }
0x14ed   :  { %4182 = vpow2.f32 %v3651_v51 }
0x14fa   :  { %v4183_v52 = vpop.eup %4182 }
0x14fb   :  { %v1264_v15 = vadd.f32 1.0, %v4183_v52 }
0x14fd   :  { %4184 = vrcp.f32 %v1264_v15 }
0x150a   :  { %v4185_v53 = vpop.eup %4184 }
0x150b   :  { %v1270_v56 = vmul.f32 %v4185_v53, %v1268_v54 }
0x150d   :  { %1272 = vrot.lane.b32.xlu0 %v1270_v56, %s4309_s26 }
0x155d   :  { %v1238_v57 = vpop.permute.xlu1 %1237 }
0x155e   :  { %v1240_v58 = vadd.f32 %v1238_v57, %v4398_v22 }
0x1560   :  { %4186 = vtanh.f32 %v1240_v58 }
0x156d   :  { %v4187_v59 = vpop.eup %4186 }
0x156e   :  { %v1243_v60 = vrot.slane %v4187_v59, 2 }
0x1570   :  { %v1245_v62 = vsub.f32 %v1103_v30, %v1243_v60 }
0x1572   :  { %v1247_v1 = vrot.slane %v1245_v62, 6 }
0x1574   :  { %1248 = vrot.lane.b32.xlu1 %v1247_v1, %s4310_s27 }
0x157f   :  { %v1273_v2 = vpop.permute.xlu0 %1272 }
0x1580   :  { %v1275_v3 = vadd.f32 %v1273_v2, %v4563_v63 }
0x1582   :  { %4188 = vtanh.f32 %v1275_v3  ;;  %v4653_v3 = vld [vmem:[#allocation2 + $0x70] sm:$0xff] }
0x158f   :  { %v4189_v5 = vpop.eup %4188 }
0x1590   :  { %v1278_v6 = vrot.slane %v4189_v5, 2 }
0x1592   :  { %v1280_v7 = vsub.f32 %v4607_v33, %v1278_v6  ;;  %v4661_v6 = vld [vmem:[#allocation2 + $0x58] sm:$0xff] }
0x1594   :  { %v1282_v9 = vrot.slane %v1280_v7, 6  ;;  %v51_v7 = vld [vmem:[#allocation2 + $0x110] sm:$0xff] }
0x1595   :  { %3931 = vmatpush3.msra.mxu0 %v51_v7 }
0x1596   :  { %1283 = vrot.lane.b32.xlu0 %v1282_v9, %s4310_s27  ;;  %v50_v9 = vld [vmem:[#allocation2 + $0x100] sm:$0xff]  ;;  %3932 = vmatprep.subr.mxu0 %v4304_v0 }
0x1597   :  { %3933 = vmatpush3.msra.mxu0 %v50_v9 }
0x15e6   :  { %v1249_v13 = vpop.permute.xlu1 %1248 }
0x15e7   :  { %v1251_v16 = vmul.f32 %v4181_v10, %v1249_v13 }
0x15e9   :  { %1253 = vrot.lane.b32.xlu1 %v1251_v16, %s4303_s16 }
0x1608   :  { %v1284_v18 = vpop.permute.xlu0 %1283 }
0x1609   :  { %v1286_v19 = vmul.f32 %v4185_v53, %v1284_v18  ;;  %v4667_v18 = vld [vmem:[#allocation2 + $0x78] sm:$0xff] }
0x160b   :  { %1288 = vrot.lane.b32.xlu0 %v1286_v19, %s4303_s16  ;;  %v4671_v19 = vld [vmem:[#allocation2 + $0x60] sm:$0xff] }
0x165b   :  { %v1254_v8 = vpop.permute.xlu1 %1253 }
0x165c   :  { %v1256_v20 = vadd.f32 %v4187_v59, %v1254_v8  ;;  %v4675_v8 = vld [vmem:[#allocation2 + $0x50] sm:$0xff] }
0x165e   :  { %1293 = vrot.lane.b32.xlu1 %v1256_v20, %s4308_s25 }
0x167d   :  { %v1289_v21 = vpop.permute.xlu0 %1288 }
0x167e   :  { %v4631_v24 = vadd.f32 %v4189_v5, %v1289_v21  ;;  %v4657_v5 = vld [vmem:[#allocation2 + $0x68] sm:$0xff]  ;;  %v33_v21 = vld [vmem:[#allocation2 + $0x38] sm:$0xff] }
0x1680   :  { %1297 = vrot.lane.b32.xlu0 %v4631_v24, %s4310_s27 }
0x16d0   :  { %v1294_v26 = vpop.permute.xlu1 %1293 }
0x16f2   :  { %v1298_v27 = vpop.permute.xlu0 %1297 }
0x16f3   :  { %v1300_v28 = vsel %vm385_vm2, %v1294_v26, %v1298_v27  ;;  %v4684_v26 = vld [vmem:[#allocation2 + $0x130] sm:$0xff]  ;;  %v4686_v27 = vld [vmem:[#allocation2 + $0x120] sm:$0xff] }
0x16f4   :  { %v1302_v29 = vrot.slane %v1300_v28, 4 }
0x16f6   :  { %3928 = vmatmul.mubr.msk.f32.vlgmr.msra.gmra.mxu1 %vm62_vm1, %v1302_v29 }
0x16f7   :  { %3941 = vmatprep.mubr.msk.f32.mxu1 %vm4305_vm0, %v4304_v0  ;;  %3938 = vmatpush3.msra.mxu1 %v4684_v26 }
0x16f8   :  { %3939 = vmatprep.subr.mxu1 %v4304_v0 }
0x16f9   :  { %3940 = vmatpush3.msra.mxu1 %v4686_v27 }
0x17b6   :  { %v1371_v30 = vpop.f32.mrf.mxu1 }
0x17b7   :  { %v1372_v32 = vadd.f32 %v1371_v30, %v4403_v25 }
0x17b8   :  { %v3929_v34 = vpop.f32.mrf.mxu1 }
0x17b9   :  { %v1376_v35 = vrot.slane %v1372_v32, 2  ;;  %v4692_v32 = vld [vmem:[#allocation2 + $0x48] sm:$0xff]  ;;  %v4274_v34 = vld [vmem:[#allocation2 + $0x30] sm:$0xff] }
0x17bb   :  { %1385 = vrot.lane.b32.xlu0 %v1376_v35, %s4308_s25  ;;  %1410 = vrot.lane.b32.xlu1 %v1376_v35, %s4307_s24  ;;  %v1378_v36 = vadd.f32 %v1376_v35, %v4398_v22 }
0x17bd   :  { %v3653_v39 = vmul.f32 -1.442695, %v1378_v36 }
0x17bf   :  { %1420 = vrot.lane.b32.xlu1 %v1376_v35, %s4306_s23  ;;  %4190 = vpow2.f32 %v3653_v39  ;;  %v4275_v35 = vld [vmem:[#allocation2 + $0x20] sm:$0xff] }
0x17cc   :  { %v4191_v40 = vpop.eup %4190 }
0x17cd   :  { %v1382_v41 = vadd.f32 1.0, %v4191_v40  ;;  %v31_v40 = vld [vmem:[#allocation2 + $0x28] sm:$0xff] }
0x17cf   :  { %4192 = vrcp.f32 %v1382_v41 }
0x17dc   :  { %v4193_v42 = vpop.eup %4192 }
0x182d   :  { %v1386_v43 = vpop.permute.xlu0 %1385  ;;  %v1411_v31 = vpop.permute.xlu1 %1410 }
0x182e   :  { %v1388_v44 = vmul.f32 %v4193_v42, %v1386_v43  ;;  %v1413_v46 = vadd.f32 %v1411_v31, %v4563_v63 }
0x1830   :  { %v3654_v47 = vmul.f32 -1.442695, %v1413_v46  ;;  %1390 = vrot.lane.b32.xlu0 %v1388_v44, %s4309_s26 }
0x1831   :  { %v1421_v11 = vpop.permute.xlu1 %1420 }
0x1832   :  { %4194 = vpow2.f32 %v3654_v47 }
0x183f   :  { %v4195_v10 = vpop.eup %4194 }
0x1840   :  { %v1417_v48 = vadd.f32 1.0, %v4195_v10 }
0x1842   :  { %4196 = vrcp.f32 %v1417_v48 }
0x184f   :  { %v4197_v50 = vpop.eup %4196 }
0x1850   :  { %v1423_v14 = vmul.f32 %v4197_v50, %v1421_v11 }
0x1852   :  { %1425 = vrot.lane.b32.xlu1 %v1423_v14, %s4309_s26 }
0x18a2   :  { %v1391_v51 = vpop.permute.xlu0 %1390 }
0x18a3   :  { %v1393_v52 = vadd.f32 %v1391_v51, %v4398_v22 }
0x18a5   :  { %4198 = vtanh.f32 %v1393_v52 }
0x18b2   :  { %v4199_v15 = vpop.eup %4198 }
0x18b3   :  { %v1396_v53 = vrot.slane %v4199_v15, 2 }
0x18b5   :  { %v1398_v54 = vsub.f32 %v1256_v20, %v1396_v53  ;;  %v4679_v20 = vld [vmem:[#allocation2 + $0x40] sm:$0xff] }
0x18b7   :  { %v1400_v56 = vrot.slane %v1398_v54, 6 }
0x18b9   :  { %1401 = vrot.lane.b32.xlu0 %v1400_v56, %s4310_s27  ;;  %v1529_v56 = vrot.slane %v4440_v4, 2  ;;  %v1447_v4 = vsub.s32 2, %v4395_v17 }
0x18c4   :  { %v1426_v57 = vpop.permute.xlu1 %1425 }
0x18c5   :  { %v1428_v58 = vadd.f32 %v1426_v57, %v4563_v63 }
0x18c7   :  { %4200 = vtanh.f32 %v1428_v58 }
0x18d4   :  { %v4201_v59 = vpop.eup %4200 }
0x18d5   :  { %v1431_v60 = vrot.slane %v4201_v59, 2 }
0x18d7   :  { %v1433_v62 = vsub.f32 %v4631_v24, %v1431_v60 }
0x18d9   :  { %v1435_v1 = vrot.slane %v1433_v62, 6 }
0x18db   :  { %1436 = vrot.lane.b32.xlu1 %v1435_v1, %s4310_s27 }
0x192b   :  { %v1402_v2 = vpop.permute.xlu0 %1401 }
0x192c   :  { %v1404_v22 = vmul.f32 %v4193_v42, %v1402_v2  ;;  %v55_v42 = vld [vmem:[#allocation2 + $0x148] sm:$0xff] }
0x192d   :  { %v4709_v43 = vrot.slane %v55_v42, %v242_v23 }
0x192e   :  { %1406 = vrot.lane.b32.xlu0 %v1404_v22, %s4303_s16  ;;  %v4771_v22 = vld [vmem:[#allocation2 + $0x140] sm:$0xff] }
0x192f   :  { %v1448_v7 = vrot.slane %v4771_v22, %v1447_v4 }
0x1932   :  { %1571 = vrot.lane.b32.xlu0 %v4653_v3, %s4307_s24 }
0x1936   :  { %1569 = vrot.lane.b32.xlu0 %v4657_v5, %s4307_s24 }
0x193a   :  { %1565 = vrot.lane.b32.xlu0 %v4661_v6, %s4307_s24 }
0x194d   :  { %v1437_v13 = vpop.permute.xlu1 %1436 }
0x194e   :  { %v1439_v16 = vmul.f32 %v4197_v50, %v1437_v13 }
0x1950   :  { %1441 = vrot.lane.b32.xlu1 %v1439_v16, %s4303_s16 }
0x1954   :  { %1573 = vrot.lane.b32.xlu1 %v4667_v18, %s4307_s24 }
0x1958   :  { %1567 = vrot.lane.b32.xlu1 %v4671_v19, %s4307_s24 }
0x195c   :  { %1563 = vrot.lane.b32.xlu1 %v4675_v8, %s4307_s24 }
0x1960   :  { %1559 = vrot.lane.b32.xlu1 %v4679_v20, %s4307_s24 }
0x1964   :  { %1557 = vrot.lane.b32.xlu1 %v33_v21, %s4307_s24 }
0x19a0   :  { %v1407_v28 = vpop.permute.xlu0 %1406 }
0x19a1   :  { %v1409_v29 = vadd.f32 %v4199_v15, %v1407_v28 }
0x19a3   :  { %v1450_v30 = vrot.slane %v1409_v29, 6 }
0x19a4   :  { %v1572_v31 = vpop.permute.xlu0 %1571 }
0x19a5   :  { %1451 = vrot.lane.b32.xlu0 %v1450_v30, %s4308_s25 }
0x19a8   :  { %v4713_v44 = vpop.permute.xlu0 %1569 }
0x19a9   :  { %1561 = vrot.lane.b32.xlu0 %v4692_v32, %s4307_s24 }
0x19ac   :  { %v4715_v47 = vpop.permute.xlu0 %1565 }
0x19ad   :  { %1555 = vrot.lane.b32.xlu0 %v4274_v34, %s4307_s24 }
0x19b1   :  { %1551 = vrot.lane.b32.xlu0 %v4275_v35, %s4307_s24  ;;  %v4790_v35 = vadd.f32 %v4458_v12, %v4413_v37 }
0x19b5   :  { %1596 = vrot.lane.b32.xlu0 %v4403_v25, %s4307_s24 }
0x19b9   :  { %1711 = vrot.lane.b32.xlu0 %v4416_v38, %s4306_s23 }
0x19c2   :  { %v1442_v36 = vpop.permute.xlu1 %1441 }
0x19c3   :  { %v4702_v39 = vadd.f32 %v4201_v59, %v1442_v36 }
0x19c5   :  { %1526 = vrot.lane.b32.xlu1 %v4702_v39, %s4308_s25 }
0x19c6   :  { %v1574_v41 = vpop.permute.xlu1 %1573 }
0x19c7   :  { %1626 = vmatprep.subr.mxu0 %v1574_v41  ;;  %1865 = vmatprep.subr.mxu1 %v1574_v41  ;;  %v4718_v48 = vsel %vm1575_vm3, %v1572_v31, %v1574_v41 }
0x19c9   :  { %1553 = vrot.lane.b32.xlu1 %v31_v40, %s4307_s24 }
0x19ca   :  { %v1568_v46 = vpop.permute.xlu1 %1567 }
0x19cb   :  { %v4723_v23 = vsel %vm1575_vm3, %v1568_v46, %v4713_v44 }
0x19cd   :  { %1598 = vrot.lane.b32.xlu1 %v4709_v43, %s4307_s24 }
0x19ce   :  { %v1564_v10 = vpop.permute.xlu1 %1563 }
0x19cf   :  { %v4730_v14 = vsel %vm1575_vm3, %v1564_v10, %v4715_v47 }
0x19d2   :  { %v1560_v11 = vpop.permute.xlu1 %1559 }
0x19d6   :  { %v4741_v15 = vpop.permute.xlu1 %1557 }
0x1a17   :  { %v1452_v50 = vpop.permute.xlu0 %1451 }
0x1a18   :  { %3935 = vmatmul.mubr.msk.f32.vlgmr.msra.gmra.mxu0 %vm385_vm2, %v1452_v50 }
0x1a19   :  { %1627 = vmatpush1.msra.mxu0 %v4718_v48  ;;  %1670 = vmatprep.mubr.f32.mxu0 %v4304_v0 }
0x1a1a   :  { %1628 = vmatprep.subr.mxu0 %v4713_v44 }
0x1a1b   :  { %v4732_v51 = vpop.permute.xlu0 %1561  ;;  %1629 = vmatpush1.msra.mxu0 %v4723_v23 }
0x1a1c   :  { %1630 = vmatprep.subr.mxu0 %v4715_v47  ;;  %v4738_v52 = vsel %vm1575_vm3, %v1560_v11, %v4732_v51 }
0x1a1d   :  { %1631 = vmatpush1.msra.mxu0 %v4730_v14 }
0x1a1e   :  { %1632 = vmatprep.subr.mxu0 %v4732_v51 }
0x1a1f   :  { %v1556_v53 = vpop.permute.xlu0 %1555  ;;  %1633 = vmatpush1.msra.mxu0 %v4738_v52 }
0x1a20   :  { %1634 = vmatprep.subr.mxu0 %v4741_v15  ;;  %v4748_v54 = vsel %vm1575_vm3, %v1556_v53, %v4741_v15 }
0x1a21   :  { %1635 = vmatpush1.msra.mxu0 %v4748_v54 }
0x1a23   :  { %v1552_v60 = vpop.permute.xlu0 %1551 }
0x1a27   :  { %v1597_v28 = vpop.permute.xlu0 %1596 }
0x1a2b   :  { %v1712_v31 = vpop.permute.xlu0 %1711 }
0x1a37   :  { %v1527_v57 = vpop.permute.xlu1 %1526 }
0x1a38   :  { %v1531_v58 = vsel %vm385_vm2, %v1527_v57, 0.0 }
0x1a39   :  { %v1532_v59 = vsel %vm62_vm1, %v1531_v58, %v1529_v56 }
0x1a3a   :  { %v1538_v1 = vrot.slane %v1532_v59, 6 }
0x1a3b   :  { %v4754_v62 = vpop.permute.xlu1 %1553 }
0x1a3c   :  { %1636 = vmatprep.subr.mxu0 %v4754_v62  ;;  %v4759_v2 = vsel %vm1575_vm3, %v1552_v60, %v4754_v62 }
0x1a3d   :  { %1637 = vmatpush1.msra.mxu0 %v4759_v2 }
0x1a3e   :  { %3656 = vmatmul.mubr.msk.f32.vlgmr.msra.gmra.mxu0 %vm1603_vm4, %v1538_v1  ;;  %3944 = vmatprep.subr.mxu0 %v4304_v0 }
0x1a3f   :  { %3945 = vmatpush3.msra.mxu0 %v4684_v26  ;;  %3948 = vmatprep.mubr.msk.f32.mxu0 %vm4305_vm0, %v4304_v0  ;;  %v4778_v21 = vpop.permute.xlu1 %1598 }
0x1a40   :  { %3946 = vmatprep.subr.mxu0 %v4304_v0  ;;  %v4782_v29 = vsel %vm1575_vm3, %v1597_v28, %v4778_v21 }
0x1a41   :  { %3947 = vmatpush3.msra.mxu0 %v4686_v27 }
0x1a42   :  { %3951 = vmatprep.subr.mxu0 %v4304_v0 }
0x1ad8   :  { %v1521_v9 = vpop.f32.mrf.mxu0 }
0x1ad9   :  { %v4774_v13 = vadd.f32 %v1521_v9, %v1448_v7 }
0x1ada   :  { %v3936_v16 = vpop.f32.mrf.mxu0 }
0x1adb   :  { %1717 = vrot.lane.b32.xlu1 %v4774_v13, %s4308_s25 }
0x1afe   :  { %v1672_v30 = vpop.f32.mrf.mxu0 }
0x1aff   :  { %v1673_v34 = vadd.f32 %v1672_v30, %v4782_v29 }
0x1b01   :  { %1685 = vrot.lane.b32.xlu1 %v1673_v34, %s4308_s25  ;;  %1722 = vrot.lane.b32.xlu0 %v1673_v34, %s4306_s23  ;;  %v1677_v36 = vadd.f32 %v1673_v34, %v4790_v35  ;;  %v1714_v10 = vadd.f32 %v1712_v31, %v1673_v34 }
0x1b03   :  { %v3657_v40 = vmul.f32 -1.442695, %v1677_v36  ;;  %v1674_v36 = vpop.f32.mrf.mxu0 }
0x1b05   :  { %1732 = vrot.lane.b32.xlu0 %v1673_v34, %s4303_s16  ;;  %4202 = vpow2.f32 %v3657_v40  ;;  %v1675_v40 = vadd.f32 %v1674_v36, %v4778_v21 }
0x1b12   :  { %v4203_v41 = vpop.eup %4202 }
0x1b13   :  { %v1681_v42 = vadd.f32 1.0, %v4203_v41  ;;  %v1715_v41 = vadd.f32 %v1712_v31, %v1675_v40  ;;  %v1951_v31 = vrot.slane %v4416_v38, 2 }
0x1b15   :  { %4204 = vrcp.f32 %v1681_v42 }
0x1b22   :  { %v4205_v11 = vpop.eup %4204 }
0x1b4d   :  { %v4793_v46 = vpop.permute.xlu1 %1717 }
0x1b4e   :  { %v1720_v50 = vadd.f32 %v4793_v46, %v1714_v10  ;;  %v1721_v42 = vadd.f32 %v4793_v46, %v1715_v41 }
0x1b73   :  { %v1686_v53 = vpop.permute.xlu1 %1685  ;;  %v1723_v56 = vpop.permute.xlu0 %1722 }
0x1b74   :  { %v1688_v57 = vmul.f32 %v4205_v11, %v1686_v53  ;;  %v1725_v58 = vadd.f32 %v1723_v56, %v1720_v50 }
0x1b76   :  { %v3658_v37 = vmul.f32 -1.442695, %v1725_v58  ;;  %1690 = vrot.lane.b32.xlu1 %v1688_v57, %s4309_s26 }
0x1b77   :  { %v1733_v1 = vpop.permute.xlu0 %1732 }
0x1b78   :  { %4206 = vpow2.f32 %v3658_v37 }
0x1b85   :  { %v4207_v12 = vpop.eup %4206 }
0x1b86   :  { %v1729_v59 = vadd.f32 1.0, %v4207_v12 }
0x1b88   :  { %4208 = vrcp.f32 %v1729_v59 }
0x1b95   :  { %v4209_v60 = vpop.eup %4208 }
0x1b96   :  { %v1735_v4 = vmul.f32 %v4209_v60, %v1733_v1 }
0x1b98   :  { %1737 = vrot.lane.b32.xlu0 %v1735_v4, %s4309_s26 }
0x1be8   :  { %v1691_v7 = vpop.permute.xlu1 %1690 }
0x1be9   :  { %v1693_v9 = vadd.f32 %v1691_v7, %v4790_v35 }
0x1beb   :  { %4210 = vtanh.f32 %v1693_v9 }
0x1bf8   :  { %v4211_v16 = vpop.eup %4210 }
0x1bf9   :  { %v1696_v28 = vrot.slane %v4211_v16, 2 }
0x1bfb   :  { %v1698_v30 = vsub.f32 %v4702_v39, %v1696_v28 }
0x1bfd   :  { %v1700_v34 = vrot.slane %v1698_v30, 6 }
0x1bff   :  { %1701 = vrot.lane.b32.xlu1 %v1700_v34, %s4310_s27 }
0x1c0a   :  { %v1738_v10 = vpop.permute.xlu0 %1737 }
0x1c0b   :  { %v1740_v50 = vadd.f32 %v1738_v10, %v1721_v42 }
0x1c0d   :  { %4212 = vtanh.f32 %v1740_v50 }
0x1c1a   :  { %v4213_v53 = vpop.eup %4212 }
0x1c1b   :  { %v1742_v56 = vsub.f32 0.0, %v4213_v53 }
0x1c1d   :  { %1744 = vrot.lane.b32.xlu0 %v1742_v56, %s4310_s27 }
0x1c71   :  { %v1702_v57 = vpop.permute.xlu1 %1701 }
0x1c72   :  { %v1704_v58 = vmul.f32 %v4205_v11, %v1702_v57 }
0x1c74   :  { %1706 = vrot.lane.b32.xlu1 %v1704_v58, %s4303_s16 }
0x1c8f   :  { %v1745_v37 = vpop.permute.xlu0 %1744 }
0x1c90   :  { %v1747_v12 = vmul.f32 %v4209_v60, %v1745_v37 }
0x1c92   :  { %1749 = vrot.lane.b32.xlu0 %v1747_v12, %s4303_s16 }
0x1ce6   :  { %v1707_v59 = vpop.permute.xlu1 %1706 }
0x1ce7   :  { %v4806_v1 = vadd.f32 %v4211_v16, %v1707_v59 }
0x1ce9   :  { %1832 = vrot.lane.b32.xlu1 %v4806_v1, %s4308_s25 }
0x1ced   :  { %1952 = vrot.lane.b32.xlu1 %v1951_v31, %s4306_s23 }
0x1d04   :  { %v1750_v4 = vpop.permute.xlu0 %1749 }
0x1d05   :  { %v1752_v7 = vadd.f32 %v4213_v53, %v1750_v4 }
0x1d07   :  { %1835 = vrot.lane.b32.xlu0 %v1752_v7, %s4303_s16  ;;  %3942 = vmatmul.mubr.msk.f32.vlgmr.msra.gmra.mxu1 %vm385_vm2, %v1752_v7 }
0x1d08   :  { %1866 = vmatpush1.msra.mxu1 %v4718_v48  ;;  %1909 = vmatprep.mubr.f32.mxu1 %v4304_v0 }
0x1d09   :  { %1867 = vmatprep.subr.mxu1 %v4713_v44  ;;  %v1838_v44 = vrot.slane %v4476_v61, 2  ;;  %v1755_v61 = vsub.s32 4, %v4395_v17 }
0x1d0a   :  { %1868 = vmatpush1.msra.mxu1 %v4723_v23 }
0x1d0b   :  { %1869 = vmatprep.subr.mxu1 %v4715_v47 }
0x1d0c   :  { %1870 = vmatpush1.msra.mxu1 %v4730_v14 }
0x1d0d   :  { %1871 = vmatprep.subr.mxu1 %v4732_v51  ;;  %v4839_v51 = vrot.slane %v4771_v22, %v1755_v61 }
0x1d0e   :  { %1872 = vmatpush1.msra.mxu1 %v4738_v52 }
0x1d0f   :  { %1873 = vmatprep.subr.mxu1 %v4741_v15 }
0x1d10   :  { %1874 = vmatpush1.msra.mxu1 %v4748_v54 }
0x1d11   :  { %1875 = vmatprep.subr.mxu1 %v4754_v62 }
0x1d12   :  { %1876 = vmatpush1.msra.mxu1 %v4759_v2 }
0x1d13   :  { %3962 = vmatprep.subr.mxu1 %v4304_v0 }
0x1d5b   :  { %v1833_v48 = vpop.permute.xlu1 %1832 }
0x1d5f   :  { %v1953_v17 = vpop.permute.xlu1 %1952 }
0x1d79   :  { %v1836_v47 = vpop.permute.xlu0 %1835 }
0x1d7a   :  { %v1840_v23 = vsel %vm385_vm2, %v1833_v48, %v1836_v47 }
0x1d7b   :  { %v1841_v14 = vsel %vm62_vm1, %v1840_v23, %v1838_v44 }
0x1d7c   :  { %3660 = vmatmul.mubr.msk.f32.vlgmr.msra.gmra.mxu1 %vm1603_vm4, %v1841_v14 }
0x1d7d   :  { %3963 = vmatpush3.msra.mxu1 %v4684_v26  ;;  %3966 = vmatprep.mubr.msk.f32.mxu1 %vm4305_vm0, %v4304_v0 }
0x1d7e   :  { %3964 = vmatprep.subr.mxu1 %v4304_v0 }
0x1d7f   :  { %3965 = vmatpush3.msra.mxu1 %v4686_v27 }
0x1d80   :  { %3969 = vmatprep.subr.mxu1 %v4304_v0 }
0x1dc7   :  { %v1826_v52 = vpop.f32.mrf.mxu1 }
0x1dc8   :  { %v1827_v15 = vadd.f32 %v1826_v52, %v4839_v51 }
0x1dc9   :  { %v3943_v54 = vpop.f32.mrf.mxu1 }
0x1dca   :  { %1830 = vst [vmem:[%s5180_s3] sm:$0x3] %v1827_v15  ;;  %v2172_v15 = vrot.slane %v4416_v38, 4 }
0x1e3c   :  { %v1911_v62 = vpop.f32.mrf.mxu1 }
0x1e3d   :  { %v4846_v2 = vadd.f32 %v1911_v62, %v4782_v29 }
0x1e3e   :  { %v1913_v40 = vpop.f32.mrf.mxu1 }
0x1e3f   :  { %1969 = vrot.lane.b32.xlu1 %v4846_v2, %s4303_s16  ;;  %1959 = vrot.lane.b32.xlu0 %v4846_v2, %s4306_s23  ;;  %v1955_v22 = vadd.f32 %v1953_v17, %v4846_v2  ;;  %v1914_v41 = vadd.f32 %v1913_v40, %v4778_v21 }
0x1e41   :  { %v1957_v11 = vadd.f32 %v1955_v22, %v4793_v46  ;;  %v1956_v42 = vadd.f32 %v1953_v17, %v1914_v41 }
0x1e43   :  { %v1958_v10 = vadd.f32 %v1956_v42, %v4793_v46 }
0x1eb1   :  { %v1960_v60 = vpop.permute.xlu0 %1959  ;;  %v1970_v34 = vpop.permute.xlu1 %1969 }
0x1eb2   :  { %v1962_v9 = vadd.f32 %v1960_v60, %v1957_v11 }
0x1eb4   :  { %v3662_v16 = vmul.f32 -1.442695, %v1962_v9 }
0x1eb6   :  { %4214 = vpow2.f32 %v3662_v16 }
0x1ec3   :  { %v4215_v28 = vpop.eup %4214 }
0x1ec4   :  { %v1966_v30 = vadd.f32 1.0, %v4215_v28 }
0x1ec6   :  { %4216 = vrcp.f32 %v1966_v30 }
0x1ed3   :  { %v4217_v29 = vpop.eup %4216 }
0x1ed4   :  { %v1972_v36 = vmul.f32 %v4217_v29, %v1970_v34 }
0x1ed6   :  { %1974 = vrot.lane.b32.xlu0 %v1972_v36, %s4309_s26 }
0x1eda   :  { %2083 = vrot.lane.b32.xlu0 %v4667_v18, %s4309_s26 }
0x1ede   :  { %2079 = vrot.lane.b32.xlu0 %v4657_v5, %s4309_s26  ;;  %v2064_v5 = vrot.slane %v4508_v55, 4 }
0x1f48   :  { %v1975_v50 = vpop.permute.xlu0 %1974 }
0x1f49   :  { %v1977_v53 = vadd.f32 %v1975_v50, %v1958_v10 }
0x1f4b   :  { %4218 = vtanh.f32 %v1977_v53  ;;  %v2292_v53 = vrot.slane %v4540_v49, 6 }
0x1f58   :  { %v4219_v56 = vpop.eup %4218 }
0x1f59   :  { %v1979_v57 = vsub.f32 %v1752_v7, %v4219_v56 }
0x1f5b   :  { %1981 = vrot.lane.b32.xlu1 %v1979_v57, %s4310_s27 }
0x1f5f   :  { %2081 = vrot.lane.b32.xlu1 %v4653_v3, %s4309_s26  ;;  %v2084_v3 = vpop.permute.xlu0 %2083 }
0x1f63   :  { %2077 = vrot.lane.b32.xlu1 %v4671_v19, %s4309_s26 }
0x1f67   :  { %2073 = vrot.lane.b32.xlu1 %v4675_v8, %s4309_s26  ;;  %v2080_v8 = vpop.permute.xlu0 %2079 }
0x1f6b   :  { %2069 = vrot.lane.b32.xlu1 %v4679_v20, %s4309_s26 }
0x1f6f   :  { %2065 = vrot.lane.b32.xlu1 %v2064_v5, %s4310_s27 }
0x1f73   :  { %2095 = vrot.lane.b32.xlu1 %v4709_v43, %s4309_s26 }
0x1fcd   :  { %v1982_v18 = vpop.permute.xlu1 %1981 }
0x1fce   :  { %v1984_v21 = vmul.f32 %v4217_v29, %v1982_v18 }
0x1fd0   :  { %1986 = vrot.lane.b32.xlu0 %v1984_v21, %s4303_s16 }
0x1fd1   :  { %v2082_v55 = vpop.permute.xlu1 %2081 }
0x1fd2   :  { %v4884_v37 = vsel %vm62_vm1, %v2082_v55, %v2084_v3 }
0x1fd4   :  { %2075 = vrot.lane.b32.xlu0 %v4661_v6, %s4309_s26 }
0x1fd5   :  { %v2078_v19 = vpop.permute.xlu1 %2077 }
0x1fd8   :  { %2071 = vrot.lane.b32.xlu0 %v4692_v32, %s4309_s26 }
0x1fd9   :  { %v2074_v20 = vpop.permute.xlu1 %2073 }
0x1fdc   :  { %2093 = vrot.lane.b32.xlu0 %v4403_v25, %s4309_s26  ;;  %v4891_v25 = vsel %vm62_vm1, %v2078_v19, %v2080_v8 }
0x1fdd   :  { %v2070_v58 = vpop.permute.xlu1 %2069 }
0x1fe0   :  { %2175 = vrot.lane.b32.xlu0 %v4774_v13, %s4306_s23 }
0x1fe1   :  { %v2066_v12 = vpop.permute.xlu1 %2065 }
0x1fe5   :  { %v2096_v48 = vpop.permute.xlu1 %2095 }
0x2042   :  { %v1987_v43 = vpop.permute.xlu0 %1986 }
0x2043   :  { %v1989_v46 = vadd.f32 %v4219_v56, %v1987_v43  ;;  %v2370_v43 = vrot.slane %v4416_v38, 6 }
0x2045   :  { %3949 = vmatmul.mubr.msk.f32.vlgmr.msra.gmra.mxu0 %vm385_vm2, %v1989_v46  ;;  %v2068_v31 = vsel %vm385_vm2, %v1989_v46, %v2066_v12 }
0x2046   :  { %3952 = vmatpush3.msra.mxu0 %v4884_v37  ;;  %v2076_v6 = vpop.permute.xlu0 %2075  ;;  %3959 = vmatprep.mubr.msk.f32.mxu0 %vm4305_vm0, %v4304_v0 }
0x2047   :  { %3953 = vmatprep.subr.mxu0 %v4304_v0  ;;  %v4895_v32 = vsel %vm62_vm1, %v2074_v20, %v2076_v6 }
0x2048   :  { %3954 = vmatpush3.msra.mxu0 %v4891_v25 }
0x2049   :  { %3955 = vmatprep.subr.mxu0 %v4304_v0 }
0x204a   :  { %3956 = vmatpush3.msra.mxu0 %v4895_v32  ;;  %v2072_v13 = vpop.permute.xlu0 %2071 }
0x204b   :  { %v4901_v59 = vsel %vm62_vm1, %v2070_v58, %v2072_v13  ;;  %3957 = vmatprep.subr.mxu0 %v4304_v0 }
0x204c   :  { %3958 = vmatpush3.msra.mxu0 %v4901_v59 }
0x204d   :  { %3960 = vmatmul.mubr.msk.f32.vlgmr.msra.gmra.mxu0 %vm62_vm1, %v2068_v31  ;;  %3980 = vmatprep.subr.mxu0 %v4304_v0 }
0x204e   :  { %3981 = vmatpush3.msra.mxu0 %v4684_v26  ;;  %3984 = vmatprep.mubr.msk.f32.mxu0 %vm4305_vm0, %v4304_v0  ;;  %v2094_v47 = vpop.permute.xlu0 %2093 }
0x204f   :  { %3982 = vmatprep.subr.mxu0 %v4304_v0  ;;  %v4919_v23 = vsel %vm62_vm1, %v2094_v47, %v2096_v48 }
0x2050   :  { %3983 = vmatpush3.msra.mxu0 %v4686_v27 }
0x2051   :  { %3987 = vmatprep.subr.mxu0 %v4304_v0 }
0x2052   :  { %v4925_v62 = vpop.permute.xlu0 %2175 }
0x2105   :  { %v2059_v4 = vpop.f32.mrf.mxu0 }
0x2106   :  { %v2060_v7 = vadd.f32 %v2059_v4, %v4839_v51 }
0x2107   :  { %v3950_v44 = vpop.f32.mrf.mxu0 }
0x2108   :  { %2063 = vst [vmem:[%s5180_s3 + $0x2] sm:$0x3] %v2060_v7 }
0x210d   :  { %v2168_v14 = vpop.f32.mrf.mxu0 }
0x210e   :  { %v2169_v61 = vadd.f32 %v2168_v14, %v4919_v23 }
0x210f   :  { %v3961_v52 = vpop.f32.mrf.mxu0 }
0x2110   :  { %2190 = vrot.lane.b32.xlu0 %v2169_v61, %s4303_s16  ;;  %2180 = vrot.lane.b32.xlu1 %v2169_v61, %s4306_s23  ;;  %v2174_v54 = vadd.f32 %v2172_v15, %v2169_v61 }
0x2112   :  { %v2178_v17 = vadd.f32 %v4925_v62, %v2174_v54 }
0x2182   :  { %v2181_v22 = vpop.permute.xlu1 %2180  ;;  %v2191_v30 = vpop.permute.xlu0 %2190 }
0x2183   :  { %v2183_v11 = vadd.f32 %v2181_v22, %v2178_v17 }
0x2185   :  { %v3665_v60 = vmul.f32 -1.442695, %v2183_v11 }
0x2187   :  { %4220 = vpow2.f32 %v3665_v60 }
0x2194   :  { %v4221_v9 = vpop.eup %4220 }
0x2195   :  { %v2187_v16 = vadd.f32 1.0, %v4221_v9 }
0x2197   :  { %4222 = vrcp.f32 %v2187_v16 }
0x21a4   :  { %v4223_v28 = vpop.eup %4222 }
0x21a5   :  { %v2193_v29 = vmul.f32 %v4223_v28, %v2191_v30 }
0x21a7   :  { %2195 = vrot.lane.b32.xlu1 %v2193_v29, %s4309_s26 }
0x2219   :  { %v2196_v34 = vpop.permute.xlu1 %2195 }
0x221a   :  { %v2198_v36 = vadd.f32 %v2196_v34, %v2178_v17 }
0x221c   :  { %4224 = vtanh.f32 %v2198_v36 }
0x2229   :  { %v4225_v40 = vpop.eup %4224 }
0x222a   :  { %2201 = vrot.lane.b32.xlu0 %v4225_v40, %s4306_s23 }
0x229c   :  { %v2202_v41 = vpop.permute.xlu0 %2201 }
0x229d   :  { %v2204_v42 = vsub.f32 %v1989_v46, %v2202_v41 }
0x229f   :  { %2206 = vrot.lane.b32.xlu1 %v2204_v42, %s4311_s8 }
0x2311   :  { %v2207_v10 = vpop.permute.xlu1 %2206 }
0x2312   :  { %v2209_v50 = vmul.f32 %v4223_v28, %v2207_v10 }
0x2314   :  { %2211 = vrot.lane.b32.xlu0 %v2209_v50, %s4303_s16 }
0x2318   :  { %2293 = vrot.lane.b32.xlu0 %v2292_v53, %s4310_s27 }
0x2386   :  { %v2212_v56 = vpop.permute.xlu0 %2211 }
0x2387   :  { %v2214_v57 = vadd.f32 %v4225_v40, %v2212_v56 }
0x2389   :  { %2216 = vrot.lane.b32.xlu1 %v2214_v57, %s4306_s23 }
0x238a   :  { %v2294_v49 = vpop.permute.xlu0 %2293 }
0x23fb   :  { %v2217_v5 = vpop.permute.xlu1 %2216 }
0x23fc   :  { %3967 = vmatmul.mubr.msk.f32.vlgmr.msra.gmra.mxu1 %vm385_vm2, %v2217_v5  ;;  %v2296_v18 = vsel %vm385_vm2, %v2217_v5, %v2294_v49 }
0x23fd   :  { %3970 = vmatpush3.msra.mxu1 %v4884_v37  ;;  %3977 = vmatprep.mubr.msk.f32.mxu1 %vm4305_vm0, %v4304_v0 }
0x23fe   :  { %3971 = vmatprep.subr.mxu1 %v4304_v0 }
0x23ff   :  { %3972 = vmatpush3.msra.mxu1 %v4891_v25 }
0x2400   :  { %3973 = vmatprep.subr.mxu1 %v4304_v0 }
0x2401   :  { %3974 = vmatpush3.msra.mxu1 %v4895_v32 }
0x2402   :  { %3975 = vmatprep.subr.mxu1 %v4304_v0 }
0x2403   :  { %3976 = vmatpush3.msra.mxu1 %v4901_v59 }
0x2404   :  { %3978 = vmatmul.mubr.msk.f32.vlgmr.msra.gmra.mxu1 %vm62_vm1, %v2296_v18  ;;  %3998 = vmatprep.subr.mxu1 %v4304_v0 }
0x2405   :  { %3999 = vmatpush3.msra.mxu1 %v4684_v26  ;;  %4002 = vmatprep.mubr.msk.f32.mxu1 %vm4305_vm0, %v4304_v0 }
0x2406   :  { %4000 = vmatprep.subr.mxu1 %v4304_v0 }
0x2407   :  { %4001 = vmatpush3.msra.mxu1 %v4686_v27 }
0x2408   :  { %4005 = vmatprep.subr.mxu1 %v4304_v0 }
0x24bc   :  { %v2286_v21 = vpop.f32.mrf.mxu1 }
0x24bd   :  { %v2287_v55 = vadd.f32 %v2286_v21, %v4839_v51 }
0x24be   :  { %v3968_v3 = vpop.f32.mrf.mxu1 }
0x24bf   :  { %2290 = vst [vmem:[%s5180_s3 + $0x4] sm:$0x3] %v2287_v55  ;;  %v2668_v3 = vrot.slane %v4607_v33, 2 }
0x24c4   :  { %v2366_v19 = vpop.f32.mrf.mxu1 }
0x24c5   :  { %v2367_v8 = vadd.f32 %v2366_v19, %v4919_v23 }
0x24c6   :  { %v3979_v20 = vpop.f32.mrf.mxu1 }
0x24c7   :  { %2385 = vrot.lane.b32.xlu0 %v2367_v8, %s4303_s16  ;;  %2375 = vrot.lane.b32.xlu1 %v2367_v8, %s4306_s23  ;;  %v2372_v46 = vadd.f32 %v2370_v43, %v2367_v8 }
0x24c9   :  { %v2373_v58 = vadd.f32 %v2372_v46, %v4925_v62 }
0x2539   :  { %v2376_v6 = vpop.permute.xlu1 %2375  ;;  %v2386_v44 = vpop.permute.xlu0 %2385 }
0x253a   :  { %v2378_v13 = vadd.f32 %v2376_v6, %v2373_v58 }
0x253c   :  { %v3668_v12 = vmul.f32 -1.442695, %v2378_v13 }
0x253e   :  { %4226 = vpow2.f32 %v3668_v12 }
0x254b   :  { %v4227_v31 = vpop.eup %4226 }
0x254c   :  { %v2382_v4 = vadd.f32 1.0, %v4227_v31 }
0x254e   :  { %4228 = vrcp.f32 %v2382_v4  ;;  %v2747_v4 = vrot.slane %v4563_v63, 2 }
0x255b   :  { %v4229_v7 = vpop.eup %4228 }
0x255c   :  { %v2388_v48 = vmul.f32 %v4229_v7, %v2386_v44 }
0x255e   :  { %2390 = vrot.lane.b32.xlu1 %v2388_v48, %s4309_s26 }
0x25d0   :  { %v2391_v47 = vpop.permute.xlu1 %2390 }
0x25d1   :  { %v2393_v14 = vadd.f32 %v2391_v47, %v2373_v58 }
0x25d3   :  { %4230 = vtanh.f32 %v2393_v14 }
0x25e0   :  { %v4231_v61 = vpop.eup %4230 }
0x25e1   :  { %v2395_v38 = vsub.f32 %v2214_v57, %v4231_v61 }
0x25e3   :  { %2397 = vrot.lane.b32.xlu0 %v2395_v38, %s4310_s27 }
0x2655   :  { %v2398_v52 = vpop.permute.xlu0 %2397 }
0x2656   :  { %v2400_v15 = vmul.f32 %v4229_v7, %v2398_v52 }
0x2658   :  { %2402 = vrot.lane.b32.xlu1 %v2400_v15, %s4303_s16 }
0x26ca   :  { %v2403_v54 = vpop.permute.xlu1 %2402 }
0x26cb   :  { %v2405_v17 = vadd.f32 %v4231_v61, %v2403_v54 }
0x26cd   :  { %2407 = vrot.lane.b32.xlu0 %v2405_v17, %s4306_s23 }
0x273f   :  { %v2408_v22 = vpop.permute.xlu0 %2407 }
0x2740   :  { %3985 = vmatmul.mubr.msk.f32.vlgmr.msra.gmra.mxu0 %vm385_vm2, %v2408_v22  ;;  %v2483_v11 = vsel %vm385_vm2, %v2408_v22, %v4577_v45 }
0x2741   :  { %3988 = vmatpush3.msra.mxu0 %v4884_v37  ;;  %3995 = vmatprep.mubr.msk.f32.mxu0 %vm4305_vm0, %v4304_v0 }
0x2742   :  { %3989 = vmatprep.subr.mxu0 %v4304_v0 }
0x2743   :  { %3990 = vmatpush3.msra.mxu0 %v4891_v25 }
0x2744   :  { %3991 = vmatprep.subr.mxu0 %v4304_v0 }
0x2745   :  { %3992 = vmatpush3.msra.mxu0 %v4895_v32 }
0x2746   :  { %3993 = vmatprep.subr.mxu0 %v4304_v0 }
0x2747   :  { %3994 = vmatpush3.msra.mxu0 %v4901_v59 }
0x2748   :  { %3996 = vmatmul.mubr.msk.f32.vlgmr.msra.gmra.mxu0 %vm62_vm1, %v2483_v11  ;;  %4016 = vmatprep.subr.mxu0 %v4304_v0 }
0x2749   :  { %4017 = vmatpush3.msra.mxu0 %v4684_v26  ;;  %4020 = vmatprep.mubr.msk.f32.mxu0 %vm4305_vm0, %v4304_v0 }
0x274a   :  { %4018 = vmatprep.subr.mxu0 %v4304_v0 }
0x274b   :  { %4019 = vmatpush3.msra.mxu0 %v4686_v27 }
0x274c   :  { %4023 = vmatprep.subr.mxu0 %v4304_v0 }
0x2800   :  { %v2477_v60 = vpop.f32.mrf.mxu0 }
0x2801   :  { %v2478_v45 = vadd.f32 %v2477_v60, %v4839_v51 }
0x2802   :  { %v3986_v9 = vpop.f32.mrf.mxu0 }
0x2803   :  { %2481 = vst [vmem:[%s5180_s3 + $0x6] sm:$0x3] %v2478_v45 }
0x2808   :  { %v2553_v16 = vpop.f32.mrf.mxu0 }
0x2809   :  { %v2554_v28 = vadd.f32 %v2553_v16, %v4919_v23  ;;  %v2860_v16 = vrot.slane %v4631_v24, 4 }
0x280a   :  { %v3997_v30 = vpop.f32.mrf.mxu0 }
0x280b   :  { %2570 = vrot.lane.b32.xlu0 %v2554_v28, %s4303_s16  ;;  %2560 = vrot.lane.b32.xlu1 %v2554_v28, %s4306_s23  ;;  %v2557_v29 = vadd.f32 %v2554_v28, %v4563_v63 }
0x280d   :  { %v2558_v34 = vadd.f32 %v2557_v29, %v4925_v62 }
0x287d   :  { %v2561_v36 = vpop.permute.xlu1 %2560  ;;  %v2571_v53 = vpop.permute.xlu0 %2570 }
0x287e   :  { %v2563_v40 = vadd.f32 %v2561_v36, %v2558_v34 }
0x2880   :  { %v3671_v41 = vmul.f32 -1.442695, %v2563_v40 }
0x2882   :  { %4232 = vpow2.f32 %v3671_v41 }
0x288f   :  { %v4233_v42 = vpop.eup %4232 }
0x2890   :  { %v2567_v10 = vadd.f32 1.0, %v4233_v42 }
0x2892   :  { %4234 = vrcp.f32 %v2567_v10 }
0x289f   :  { %v4235_v50 = vpop.eup %4234 }
0x28a0   :  { %v2573_v56 = vmul.f32 %v4235_v50, %v2571_v53 }
0x28a2   :  { %2575 = vrot.lane.b32.xlu1 %v2573_v56, %s4309_s26 }
0x2914   :  { %v2576_v57 = vpop.permute.xlu1 %2575 }
0x2915   :  { %v2578_v5 = vadd.f32 %v2576_v57, %v2558_v34 }
0x2917   :  { %4236 = vtanh.f32 %v2578_v5 }
0x2924   :  { %v4237_v49 = vpop.eup %4236 }
0x2925   :  { %v2580_v18 = vsub.f32 %v2405_v17, %v4237_v49 }
0x2927   :  { %2582 = vrot.lane.b32.xlu0 %v2580_v18, %s4310_s27 }
0x2999   :  { %v2583_v21 = vpop.permute.xlu0 %2582 }
0x299a   :  { %v2585_v55 = vmul.f32 %v4235_v50, %v2583_v21 }
0x299c   :  { %2587 = vrot.lane.b32.xlu1 %v2585_v55, %s4303_s16 }
0x29a0   :  { %2669 = vrot.lane.b32.xlu1 %v2668_v3, %s4310_s27 }
0x2a0e   :  { %v2588_v19 = vpop.permute.xlu1 %2587 }
0x2a0f   :  { %v2590_v8 = vadd.f32 %v4237_v49, %v2588_v19 }
0x2a11   :  { %2592 = vrot.lane.b32.xlu0 %v2590_v8, %s4306_s23 }
0x2a12   :  { %v2670_v33 = vpop.permute.xlu1 %2669 }
0x2a83   :  { %v2593_v20 = vpop.permute.xlu0 %2592 }
0x2a84   :  { %4003 = vmatmul.mubr.msk.f32.vlgmr.msra.gmra.mxu1 %vm385_vm2, %v2593_v20  ;;  %v2672_v43 = vsel %vm385_vm2, %v2593_v20, %v2670_v33 }
0x2a85   :  { %4006 = vmatpush3.msra.mxu1 %v4884_v37  ;;  %4013 = vmatprep.mubr.msk.f32.mxu1 %vm4305_vm0, %v4304_v0 }
0x2a86   :  { %4007 = vmatprep.subr.mxu1 %v4304_v0 }
0x2a87   :  { %4008 = vmatpush3.msra.mxu1 %v4891_v25 }
0x2a88   :  { %4009 = vmatprep.subr.mxu1 %v4304_v0 }
0x2a89   :  { %4010 = vmatpush3.msra.mxu1 %v4895_v32 }
0x2a8a   :  { %4011 = vmatprep.subr.mxu1 %v4304_v0 }
0x2a8b   :  { %4012 = vmatpush3.msra.mxu1 %v4901_v59 }
0x2a8c   :  { %4014 = vmatmul.mubr.msk.f32.vlgmr.msra.gmra.mxu1 %vm62_vm1, %v2672_v43  ;;  %4034 = vmatprep.subr.mxu1 %v4304_v0 }
0x2a8d   :  { %4035 = vmatpush3.msra.mxu1 %v4684_v26  ;;  %4038 = vmatprep.mubr.msk.f32.mxu1 %vm4305_vm0, %v4304_v0 }
0x2a8e   :  { %4036 = vmatprep.subr.mxu1 %v4304_v0 }
0x2a8f   :  { %4037 = vmatpush3.msra.mxu1 %v4686_v27 }
0x2a90   :  { %4041 = vmatprep.subr.mxu1 %v4304_v0 }
0x2b44   :  { %v2662_v46 = vpop.f32.mrf.mxu1 }
0x2b45   :  { %v2663_v58 = vadd.f32 %v2662_v46, %v4839_v51 }
0x2b46   :  { %v4004_v6 = vpop.f32.mrf.mxu1 }
0x2b47   :  { %2666 = vst [vmem:[%s5180_s3 + $0x8] sm:$0x3] %v2663_v58  ;;  %v3051_v58 = vrot.slane %v4702_v39, 6 }
0x2b4c   :  { %v2742_v13 = vpop.f32.mrf.mxu1 }
0x2b4d   :  { %v2743_v12 = vadd.f32 %v2742_v13, %v4919_v23 }
0x2b4e   :  { %v4015_v31 = vpop.f32.mrf.mxu1 }
0x2b4f   :  { %2762 = vrot.lane.b32.xlu1 %v2743_v12, %s4303_s16  ;;  %2752 = vrot.lane.b32.xlu0 %v2743_v12, %s4306_s23  ;;  %v2749_v7 = vadd.f32 %v2747_v4, %v2743_v12  ;;  %v5082_v4 = vld [vmem:[#allocation2 + $0x130] sm:$0xff] }
0x2b51   :  { %v2750_v44 = vadd.f32 %v2749_v7, %v4925_v62  ;;  %v5088_v7 = vld [vmem:[#allocation2 + $0x120] sm:$0xff] }
0x2bc1   :  { %v2753_v48 = vpop.permute.xlu0 %2752  ;;  %v2763_v15 = vpop.permute.xlu1 %2762 }
0x2bc2   :  { %v2755_v47 = vadd.f32 %v2753_v48, %v2750_v44 }
0x2bc4   :  { %v3674_v14 = vmul.f32 -1.442695, %v2755_v47 }
0x2bc6   :  { %4238 = vpow2.f32 %v3674_v14 }
0x2bd3   :  { %v4239_v61 = vpop.eup %4238 }
0x2bd4   :  { %v2759_v38 = vadd.f32 1.0, %v4239_v61 }
0x2bd6   :  { %4240 = vrcp.f32 %v2759_v38 }
0x2be3   :  { %v4241_v52 = vpop.eup %4240 }
0x2be4   :  { %v2765_v54 = vmul.f32 %v4241_v52, %v2763_v15 }
0x2be6   :  { %2767 = vrot.lane.b32.xlu0 %v2765_v54, %s4309_s26 }
0x2c58   :  { %v2768_v17 = vpop.permute.xlu0 %2767 }
0x2c59   :  { %v2770_v22 = vadd.f32 %v2768_v17, %v2750_v44 }
0x2c5b   :  { %4242 = vtanh.f32 %v2770_v22 }
0x2c68   :  { %v4243_v11 = vpop.eup %4242 }
0x2c69   :  { %v2772_v60 = vsub.f32 %v2590_v8, %v4243_v11 }
0x2c6b   :  { %2774 = vrot.lane.b32.xlu1 %v2772_v60, %s4310_s27 }
0x2cdd   :  { %v2775_v45 = vpop.permute.xlu1 %2774 }
0x2cde   :  { %v2777_v9 = vmul.f32 %v4241_v52, %v2775_v45  ;;  %v3129_v52 = vrot.slane %v4563_v63, 6 }
0x2ce0   :  { %2779 = vrot.lane.b32.xlu0 %v2777_v9, %s4303_s16 }
0x2ce4   :  { %2861 = vrot.lane.b32.xlu0 %v2860_v16, %s4310_s27 }
0x2d52   :  { %v2780_v28 = vpop.permute.xlu0 %2779 }
0x2d53   :  { %v2782_v30 = vadd.f32 %v4243_v11, %v2780_v28 }
0x2d55   :  { %2784 = vrot.lane.b32.xlu1 %v2782_v30, %s4306_s23 }
0x2d56   :  { %v2862_v24 = vpop.permute.xlu0 %2861 }
0x2dc7   :  { %v2785_v29 = vpop.permute.xlu1 %2784 }
0x2dc8   :  { %4021 = vmatmul.mubr.msk.f32.vlgmr.msra.gmra.mxu0 %vm385_vm2, %v2785_v29  ;;  %v2864_v34 = vsel %vm385_vm2, %v2785_v29, %v2862_v24 }
0x2dc9   :  { %4024 = vmatpush3.msra.mxu0 %v4884_v37  ;;  %4031 = vmatprep.mubr.msk.f32.mxu0 %vm4305_vm0, %v4304_v0 }
0x2dca   :  { %4025 = vmatprep.subr.mxu0 %v4304_v0 }
0x2dcb   :  { %4026 = vmatpush3.msra.mxu0 %v4891_v25 }
0x2dcc   :  { %4027 = vmatprep.subr.mxu0 %v4304_v0 }
0x2dcd   :  { %4028 = vmatpush3.msra.mxu0 %v4895_v32 }
0x2dce   :  { %4029 = vmatprep.subr.mxu0 %v4304_v0 }
0x2dcf   :  { %4030 = vmatpush3.msra.mxu0 %v4901_v59 }
0x2dd0   :  { %4032 = vmatmul.mubr.msk.f32.vlgmr.msra.gmra.mxu0 %vm62_vm1, %v2864_v34  ;;  %4052 = vmatprep.subr.mxu0 %v4304_v0 }
0x2dd1   :  { %4053 = vmatpush3.msra.mxu0 %v4684_v26  ;;  %4056 = vmatprep.mubr.msk.f32.mxu0 %vm4305_vm0, %v4304_v0 }
0x2dd2   :  { %4054 = vmatprep.subr.mxu0 %v4304_v0 }
0x2dd3   :  { %4055 = vmatpush3.msra.mxu0 %v4686_v27  ;;  %v2938_v27 = vrot.slane %v4563_v63, 4 }
0x2dd4   :  { %4059 = vmatprep.subr.mxu0 %v4304_v0 }
0x2e88   :  { %v2854_v36 = vpop.f32.mrf.mxu0 }
0x2e89   :  { %v2855_v40 = vadd.f32 %v2854_v36, %v4839_v51 }
0x2e8a   :  { %v4022_v41 = vpop.f32.mrf.mxu0 }
0x2e8b   :  { %2858 = vst [vmem:[%s5180_s3 + $0xa] sm:$0x3] %v2855_v40  ;;  %v1917_v40 = vrot.slane %v4846_v2, 6 }
0x2e8d   :  { %v1919_v41 = vadd.f32 %v1917_v40, %v4790_v35 }
0x2e90   :  { %v2934_v42 = vpop.f32.mrf.mxu0 }
0x2e91   :  { %v2935_v26 = vadd.f32 %v2934_v42, %v4919_v23  ;;  %v3661_v42 = vmul.f32 -1.442695, %v1919_v41 }
0x2e92   :  { %v4033_v10 = vpop.f32.mrf.mxu0 }
0x2e93   :  { %2953 = vrot.lane.b32.xlu0 %v2935_v26, %s4303_s16  ;;  %2943 = vrot.lane.b32.xlu1 %v2935_v26, %s4306_s23  ;;  %v2940_v50 = vadd.f32 %v2938_v27, %v2935_v26 }
0x2e95   :  { %v2941_v53 = vadd.f32 %v2940_v50, %v4925_v62 }
0x2f05   :  { %v2944_v56 = vpop.permute.xlu1 %2943  ;;  %v2954_v55 = vpop.permute.xlu0 %2953 }
0x2f06   :  { %v2946_v57 = vadd.f32 %v2944_v56, %v2941_v53 }
0x2f08   :  { %v3677_v5 = vmul.f32 -1.442695, %v2946_v57 }
0x2f0a   :  { %4244 = vpow2.f32 %v3677_v5 }
0x2f17   :  { %v4245_v49 = vpop.eup %4244 }
0x2f18   :  { %v2950_v18 = vadd.f32 1.0, %v4245_v49 }
0x2f1a   :  { %4246 = vrcp.f32 %v2950_v18 }
0x2f27   :  { %v4247_v21 = vpop.eup %4246 }
0x2f28   :  { %v2956_v3 = vmul.f32 %v4247_v21, %v2954_v55 }
0x2f2a   :  { %2958 = vrot.lane.b32.xlu1 %v2956_v3, %s4309_s26 }
0x2f9c   :  { %v2959_v19 = vpop.permute.xlu1 %2958 }
0x2f9d   :  { %v2961_v8 = vadd.f32 %v2959_v19, %v2941_v53 }
0x2f9f   :  { %4248 = vtanh.f32 %v2961_v8 }
0x2fac   :  { %v4249_v20 = vpop.eup %4248 }
0x2fad   :  { %v2963_v33 = vsub.f32 %v2782_v30, %v4249_v20 }
0x2faf   :  { %2965 = vrot.lane.b32.xlu0 %v2963_v33, %s4310_s27 }
0x3021   :  { %v2966_v43 = vpop.permute.xlu0 %2965 }
0x3022   :  { %v2968_v46 = vmul.f32 %v4247_v21, %v2966_v43 }
0x3024   :  { %2970 = vrot.lane.b32.xlu1 %v2968_v46, %s4303_s16 }
0x3028   :  { %3052 = vrot.lane.b32.xlu1 %v3051_v58, %s4310_s27 }
0x3096   :  { %v2971_v6 = vpop.permute.xlu1 %2970 }
0x3097   :  { %v2973_v13 = vadd.f32 %v4249_v20, %v2971_v6 }
0x3099   :  { %2975 = vrot.lane.b32.xlu0 %v2973_v13, %s4306_s23 }
0x309a   :  { %v3053_v39 = vpop.permute.xlu1 %3052 }
0x310b   :  { %v2976_v12 = vpop.permute.xlu0 %2975 }
0x310c   :  { %4039 = vmatmul.mubr.msk.f32.vlgmr.msra.gmra.mxu1 %vm385_vm2, %v2976_v12  ;;  %v3055_v31 = vsel %vm385_vm2, %v2976_v12, %v3053_v39 }
0x310d   :  { %4042 = vmatpush3.msra.mxu1 %v4884_v37  ;;  %4049 = vmatprep.mubr.msk.f32.mxu1 %vm4305_vm0, %v4304_v0 }
0x310e   :  { %4043 = vmatprep.subr.mxu1 %v4304_v0 }
0x310f   :  { %4044 = vmatpush3.msra.mxu1 %v4891_v25 }
0x3110   :  { %4045 = vmatprep.subr.mxu1 %v4304_v0 }
0x3111   :  { %4046 = vmatpush3.msra.mxu1 %v4895_v32 }
0x3112   :  { %4047 = vmatprep.subr.mxu1 %v4304_v0 }
0x3113   :  { %4048 = vmatpush3.msra.mxu1 %v4901_v59 }
0x3114   :  { %4050 = vmatmul.mubr.msk.f32.vlgmr.msra.gmra.mxu1 %vm62_vm1, %v3055_v31  ;;  %4070 = vmatprep.subr.mxu1 %v4304_v0 }
0x3115   :  { %4071 = vmatpush3.msra.mxu1 %v5082_v4  ;;  %4074 = vmatprep.mubr.msk.f32.mxu1 %vm4305_vm0, %v4304_v0 }
0x3116   :  { %4072 = vmatprep.subr.mxu1 %v4304_v0 }
0x3117   :  { %4073 = vmatpush3.msra.mxu1 %v5088_v7 }
0x3118   :  { %4077 = vmatprep.subr.mxu1 %v4304_v0 }
0x31cc   :  { %v3045_v44 = vpop.f32.mrf.mxu1 }
0x31cd   :  { %v3046_v48 = vadd.f32 %v3045_v44, %v4839_v51 }
0x31ce   :  { %v4040_v47 = vpop.f32.mrf.mxu1 }
0x31cf   :  { %3049 = vst [vmem:[%s5180_s3 + $0xc] sm:$0x3] %v3046_v48 }
0x31d4   :  { %v3125_v14 = vpop.f32.mrf.mxu1 }
0x31d5   :  { %v3126_v61 = vadd.f32 %v3125_v14, %v4919_v23 }
0x31d6   :  { %v4051_v38 = vpop.f32.mrf.mxu1 }
0x31d7   :  { %3144 = vrot.lane.b32.xlu1 %v3126_v61, %s4303_s16  ;;  %3134 = vrot.lane.b32.xlu0 %v3126_v61, %s4306_s23  ;;  %v3131_v15 = vadd.f32 %v3129_v52, %v3126_v61 }
0x31d9   :  { %v3132_v54 = vadd.f32 %v3131_v15, %v4925_v62 }
0x3249   :  { %v3135_v17 = vpop.permute.xlu0 %3134  ;;  %v3145_v16 = vpop.permute.xlu1 %3144 }
0x324a   :  { %v3137_v22 = vadd.f32 %v3135_v17, %v3132_v54 }
0x324c   :  { %v3680_v11 = vmul.f32 -1.442695, %v3137_v22 }
0x324e   :  { %4250 = vpow2.f32 %v3680_v11 }
0x325b   :  { %v4251_v60 = vpop.eup %4250 }
0x325c   :  { %v3141_v45 = vadd.f32 1.0, %v4251_v60 }
0x325e   :  { %4252 = vrcp.f32 %v3141_v45 }
0x326b   :  { %v4253_v9 = vpop.eup %4252 }
0x326c   :  { %v3147_v28 = vmul.f32 %v4253_v9, %v3145_v16 }
0x326e   :  { %3149 = vrot.lane.b32.xlu0 %v3147_v28, %s4309_s26 }
0x32e0   :  { %v3150_v30 = vpop.permute.xlu0 %3149 }
0x32e1   :  { %v3152_v29 = vadd.f32 %v3150_v30, %v3132_v54 }
0x32e3   :  { %4254 = vtanh.f32 %v3152_v29 }
0x32e4   :  { %4256 = vpow2.f32 %v3661_v42 }
0x32f0   :  { %v4255_v24 = vpop.eup %4254 }
0x32f1   :  { %v3154_v63 = vsub.f32 %v2973_v13, %v4255_v24  ;;  %v4257_v26 = vpop.eup %4256 }
0x32f2   :  { %v1923_v10 = vadd.f32 1.0, %v4257_v26 }
0x32f3   :  { %3156 = vrot.lane.b32.xlu1 %v3154_v63, %s4310_s27 }
0x32f4   :  { %4258 = vrcp.f32 %v1923_v10 }
0x3301   :  { %v4259_v56 = vpop.eup %4258 }
0x3365   :  { %v3157_v34 = vpop.permute.xlu1 %3156 }
0x3366   :  { %v3159_v36 = vmul.f32 %v4253_v9, %v3157_v34 }
0x3368   :  { %3161 = vrot.lane.b32.xlu0 %v3159_v36, %s4303_s16 }
0x336c   :  { %3242 = vrot.lane.b32.xlu0 %v4806_v1, %s4310_s27 }
0x3370   :  { %1926 = vrot.lane.b32.xlu0 %v1917_v40, %s4308_s25 }
0x33da   :  { %v3162_v27 = vpop.permute.xlu0 %3161 }
0x33db   :  { %v3164_v50 = vadd.f32 %v4255_v24, %v3162_v27 }
0x33dd   :  { %3166 = vrot.lane.b32.xlu1 %v3164_v50, %s4306_s23 }
0x33de   :  { %v3243_v53 = vpop.permute.xlu0 %3242 }
0x33e2   :  { %v1927_v57 = vpop.permute.xlu0 %1926 }
0x33e3   :  { %v1929_v5 = vmul.f32 %v4259_v56, %v1927_v57 }
0x33e5   :  { %1931 = vrot.lane.b32.xlu0 %v1929_v5, %s4309_s26 }
0x344f   :  { %v3167_v2 = vpop.permute.xlu1 %3166 }
0x3450   :  { %4057 = vmatmul.mubr.msk.f32.vlgmr.msra.gmra.mxu0 %vm385_vm2, %v3167_v2  ;;  %v3245_v49 = vsel %vm385_vm2, %v3167_v2, %v3243_v53 }
0x3451   :  { %4060 = vmatpush3.msra.mxu0 %v4884_v37  ;;  %4067 = vmatprep.mubr.msk.f32.mxu0 %vm4305_vm0, %v4304_v0 }
0x3452   :  { %4061 = vmatprep.subr.mxu0 %v4304_v0 }
0x3453   :  { %4062 = vmatpush3.msra.mxu0 %v4891_v25 }
0x3454   :  { %4063 = vmatprep.subr.mxu0 %v4304_v0 }
0x3455   :  { %4064 = vmatpush3.msra.mxu0 %v4895_v32 }
0x3456   :  { %4065 = vmatprep.subr.mxu0 %v4304_v0 }
0x3457   :  { %4066 = vmatpush3.msra.mxu0 %v4901_v59  ;;  %v1932_v6 = vpop.permute.xlu0 %1931 }
0x3458   :  { %4068 = vmatmul.mubr.msk.f32.vlgmr.msra.gmra.mxu0 %vm62_vm1, %v3245_v49  ;;  %4088 = vmatprep.subr.mxu0 %v4304_v0  ;;  %v1934_v13 = vadd.f32 %v1932_v6, %v4790_v35 }
0x3459   :  { %4089 = vmatpush3.msra.mxu0 %v5082_v4  ;;  %4092 = vmatprep.mubr.msk.f32.mxu0 %vm4305_vm0, %v4304_v0 }
0x345a   :  { %4090 = vmatprep.subr.mxu0 %v4304_v0 }
0x345b   :  { %4091 = vmatpush3.msra.mxu0 %v5088_v7 }
0x3510   :  { %v3236_v18 = vpop.f32.mrf.mxu0 }
0x3511   :  { %v3237_v21 = vadd.f32 %v3236_v18, %v4839_v51 }
0x3512   :  { %v4058_v55 = vpop.f32.mrf.mxu0 }
0x3513   :  { %3240 = vst [vmem:[%s5180_s3 + $0xe] sm:$0x3] %v3237_v21 }
0x3518   :  { %v3315_v3 = vpop.f32.mrf.mxu0 }
0x3519   :  { %v3316_v19 = vadd.f32 %v3315_v3, %v4919_v23 }
0x351a   :  { %v4069_v8 = vpop.f32.mrf.mxu0 }
0x351b   :  { %3322 = vrot.lane.b32.xlu1 %v3316_v19, %s4306_s23  ;;  %v3319_v20 = vadd.f32 %v3316_v19, %v4790_v35 }
0x351d   :  { %v3320_v33 = vadd.f32 %v3319_v20, %v4925_v62 }
0x351f   :  { %3332 = vrot.lane.b32.xlu1 %v3316_v19, %s4303_s16 }
0x358d   :  { %v3323_v43 = vpop.permute.xlu1 %3322 }
0x358e   :  { %v3325_v46 = vadd.f32 %v3323_v43, %v3320_v33 }
0x3590   :  { %v3683_v58 = vmul.f32 -1.442695, %v3325_v46 }
0x3591   :  { %v3333_v44 = vpop.permute.xlu1 %3332 }
0x3592   :  { %4260 = vpow2.f32 %v3683_v58 }
0x3593   :  { %4262 = vtanh.f32 %v1934_v13 }
0x359f   :  { %v4261_v12 = vpop.eup %4260 }
0x35a0   :  { %v3329_v39 = vadd.f32 1.0, %v4261_v12  ;;  %v4263_v31 = vpop.eup %4262 }
0x35a1   :  { %v1937_v4 = vrot.slane %v4263_v31, 2 }
0x35a2   :  { %4264 = vrcp.f32 %v3329_v39 }
0x35a3   :  { %v1939_v47 = vsub.f32 %v4806_v1, %v1937_v4 }
0x35a5   :  { %v1941_v14 = vrot.slane %v1939_v47, 6 }
0x35af   :  { %v4265_v7 = vpop.eup %4264 }
0x35b0   :  { %v3335_v48 = vmul.f32 %v4265_v7, %v3333_v44 }
0x35b2   :  { %3337 = vrot.lane.b32.xlu1 %v3335_v48, %s4309_s26 }
0x35b6   :  { %1942 = vrot.lane.b32.xlu1 %v1941_v14, %s4310_s27 }
0x3624   :  { %v3338_v61 = vpop.permute.xlu1 %3337 }
0x3625   :  { %v3340_v38 = vadd.f32 %v3338_v61, %v3320_v33 }
0x3627   :  { %4266 = vtanh.f32 %v3340_v38 }
0x3628   :  { %v1943_v52 = vpop.permute.xlu1 %1942 }
0x3629   :  { %v1945_v15 = vmul.f32 %v4259_v56, %v1943_v52 }
0x362b   :  { %1947 = vrot.lane.b32.xlu1 %v1945_v15, %s4303_s16 }
0x3634   :  { %v4267_v54 = vpop.eup %4266 }
0x3635   :  { %v3342_v17 = vsub.f32 %v3164_v50, %v4267_v54 }
0x3637   :  { %3344 = vrot.lane.b32.xlu0 %v3342_v17, %s4310_s27 }
0x369d   :  { %v1948_v22 = vpop.permute.xlu1 %1947 }
0x369e   :  { %v1950_v11 = vadd.f32 %v4263_v31, %v1948_v22 }
0x36a0   :  { %v3431_v60 = vrot.slane %v1950_v11, 2 }
0x36a2   :  { %3432 = vrot.lane.b32.xlu1 %v3431_v60, %s4310_s27 }
0x36a9   :  { %v3345_v1 = vpop.permute.xlu0 %3344 }
0x36aa   :  { %v3347_v45 = vmul.f32 %v4265_v7, %v3345_v1 }
0x36ac   :  { %3349 = vrot.lane.b32.xlu0 %v3347_v45, %s4303_s16 }
0x3714   :  { %v3433_v30 = vpop.permute.xlu1 %3432 }
0x371e   :  { %v3350_v9 = vpop.permute.xlu0 %3349 }
0x371f   :  { %v3352_v16 = vadd.f32 %v4267_v54, %v3350_v9 }
0x3721   :  { %3354 = vrot.lane.b32.xlu0 %v3352_v16, %s4306_s23 }
0x3793   :  { %v3355_v28 = vpop.permute.xlu0 %3354 }
0x3794   :  { %4075 = vmatmul.mubr.msk.f32.vlgmr.msra.gmra.mxu1 %vm385_vm2, %v3355_v28  ;;  %v3435_v29 = vsel %vm385_vm2, %v3355_v28, %v3433_v30 }
0x3795   :  { %4078 = vmatpush3.msra.mxu1 %v4884_v37  ;;  %4085 = vmatprep.mubr.msk.f32.mxu1 %vm4305_vm0, %v4304_v0 }
0x3796   :  { %4079 = vmatprep.subr.mxu1 %v4304_v0 }
0x3797   :  { %4080 = vmatpush3.msra.mxu1 %v4891_v25 }
0x3798   :  { %4081 = vmatprep.subr.mxu1 %v4304_v0 }
0x3799   :  { %4082 = vmatpush3.msra.mxu1 %v4895_v32 }
0x379a   :  { %4083 = vmatprep.subr.mxu1 %v4304_v0  ;;  %v3510_v0 = vrot.slane %v4790_v35, 2 }
0x379b   :  { %4084 = vmatpush3.msra.mxu1 %v4901_v59 }
0x379c   :  { %4086 = vmatmul.mubr.msk.f32.vlgmr.msra.gmra.mxu1 %vm62_vm1, %v3435_v29 }
0x3854   :  { %v3424_v37 = vpop.f32.mrf.mxu1 }
0x3855   :  { %v3425_v24 = vadd.f32 %v3424_v37, %v4839_v51 }
0x3856   :  { %v4076_v63 = vpop.f32.mrf.mxu1 }
0x3857   :  { %3428 = vst [vmem:[%s5180_s3 + $0x10] sm:$0x3] %v3425_v24 }
0x385c   :  { %v3505_v25 = vpop.f32.mrf.mxu1 }
0x385d   :  { %v3506_v32 = vadd.f32 %v3505_v25, %v4919_v23 }
0x385e   :  { %v4087_v34 = vpop.f32.mrf.mxu1 }
0x385f   :  { %3525 = vrot.lane.b32.xlu1 %v3506_v32, %s4303_s16  ;;  %3515 = vrot.lane.b32.xlu0 %v3506_v32, %s4306_s23  ;;  %v3512_v59 = vadd.f32 %v3510_v0, %v3506_v32 }
0x3861   :  { %v3513_v36 = vadd.f32 %v3512_v59, %v4925_v62 }
0x38d1   :  { %v3516_v40 = vpop.permute.xlu0 %3515  ;;  %v3526_v50 = vpop.permute.xlu1 %3525 }
0x38d2   :  { %v3518_v41 = vadd.f32 %v3516_v40, %v3513_v36 }
0x38d4   :  { %v3686_v42 = vmul.f32 -1.442695, %v3518_v41 }
0x38d6   :  { %4268 = vpow2.f32 %v3686_v42 }
0x38e3   :  { %v4269_v26 = vpop.eup %4268 }
0x38e4   :  { %v3522_v10 = vadd.f32 1.0, %v4269_v26 }
0x38e6   :  { %4270 = vrcp.f32 %v3522_v10 }
0x38f3   :  { %v4271_v27 = vpop.eup %4270 }
0x38f4   :  { %v3528_v23 = vmul.f32 %v4271_v27, %v3526_v50 }
0x38f6   :  { %3530 = vrot.lane.b32.xlu0 %v3528_v23, %s4309_s26 }
0x3968   :  { %v3531_v53 = vpop.permute.xlu0 %3530 }
0x3969   :  { %v3533_v56 = vadd.f32 %v3531_v53, %v3513_v36 }
0x396b   :  { %4272 = vtanh.f32 %v3533_v56 }
0x3978   :  { %v4273_v57 = vpop.eup %4272 }
0x3979   :  { %v3535_v35 = vsub.f32 %v3352_v16, %v4273_v57 }
0x397b   :  { %3537 = vrot.lane.b32.xlu1 %v3535_v35, %s4310_s27 }
0x39ed   :  { %v3538_v62 = vpop.permute.xlu1 %3537 }
0x39ee   :  { %v3540_v5 = vmul.f32 %v4271_v27, %v3538_v62 }
0x39f0   :  { %3542 = vrot.lane.b32.xlu0 %v3540_v5, %s4303_s16 }
0x3a62   :  { %v3543_v2 = vpop.permute.xlu0 %3542 }
0x3a63   :  { %v3545_v49 = vadd.f32 %v4273_v57, %v3543_v2 }
0x3a65   :  { %3547 = vrot.lane.b32.xlu1 %v3545_v49, %s4306_s23 }
0x3ad7   :  { %v3548_v18 = vpop.permute.xlu1 %3547 }
0x3ad8   :  { %4093 = vmatmul.mubr.msk.f32.vlgmr.msra.gmra.mxu0 %vm385_vm2, %v3548_v18 }
0x3b98   :  { %v3617_v21 = vpop.f32.mrf.mxu0 }
0x3b99   :  { %v3618_v55 = vadd.f32 %v3617_v21, %v4839_v51 }
0x3b9a   :  { %v4094_v3 = vpop.f32.mrf.mxu0 }
0x3b9b   :  { %3621 = vst [vmem:[%s5180_s3 + $0x12] sm:$0x3] %v3618_v55 }
0x3b9c   :  { %3626 = vsyncpa [#allocation3], 1 }

</bundles_post_ra>
